<compile_context>
chip_gen: v7x
topology: tpu7x:2x2x1
jax: 0.10.0
libtpu: 0.0.40
codegen_flags: <defaults>
</compile_context>

<pallas_src>
import functools

import numpy as np

import jax
import jax.numpy as jnp
from jax.experimental import pallas as pl


# ----------------------------------------------------------------------------
# Fused kernel: seg head + MSE, crop/nearest-resize, 3x (conv3x3+ReLU), 3x L1
# ----------------------------------------------------------------------------
def _lane_shift(x, off, ntot):
    """shifted[p] = x[(p + off) mod ntot] for a static offset (two-piece lane concat).

    Equivalent to an XLU lane rotate; written with static slices + concat so it
    lowers both under Mosaic and under interpret mode.
    """
    s = off % ntot
    if s == 0:
        return x
    return jnp.concatenate([x[:, s:], x[:, :s]], axis=1)


def _combined_kernel(x_ref, wseg_ref, bseg_ref, lab_ref, sel_ref, mask_ref,
                     w1_ref, b1_ref, w2_ref, b2_ref, w3_ref, b3_ref,
                     loss_seg_ref, loss_per_ref,
                     *, offsets, n, inv_seg, inv_l1):
    x = x_ref[...]                        # (Cin, N)  f32, lane-dense spatial axis
    labels = lab_ref[...]                 # (Cp,  N)  f32

    # ---- model1: 1x1-conv seg head + fused MSE seg loss ---------------------
    preds = jnp.dot(wseg_ref[...], x, preferred_element_type=jnp.float32)
    preds = preds + bseg_ref[...]
    d = preds - labels
    loss_seg_ref[...] = jnp.reshape(jnp.sum(d * d) * inv_seg, (1, 1))

    # ---- preds[:, :, 448:] -> nearest-resize: static lane-gather via MXU ----
    pred_rs = jnp.dot(preds, sel_ref[...], preferred_element_type=jnp.float32)

    # ---- both branches (pred | labels) side by side on the lane axis --------
    a = jnp.concatenate([pred_rs, labels], axis=1)        # (Cp, 2N)
    ntot = a.shape[1]
    mask = mask_ref[...]                                   # (9, 2N) tap validity

    def conv3x3_relu(a_in, w_ref_, b_ref_):
        # One fused K = 9*Cin MXU matmul per layer: sublane-stack the 9 masked,
        # lane-shifted tap views.  Per-tap masks reproduce exact padding=1
        # semantics and zero out any wraparound across boundaries.
        taps = []
        for t, off in enumerate(offsets):
            xt = _lane_shift(a_in, off, ntot)
            if off != 0:                                   # center tap is all-valid
                xt = xt * mask[t:t + 1, :]
            taps.append(xt)
        stacked = jnp.concatenate(taps, axis=0)            # (9*Cin, 2N)
        out = jnp.dot(w_ref_[...], stacked, preferred_element_type=jnp.float32)
        return jnp.maximum(out + b_ref_[...], 0.0)

    def l1_halves(a_l, inv):
        dd = a_l[:, :n] - a_l[:, n:]       # pred branch vs labels branch
        return jnp.sum(jnp.abs(dd)) * inv

    a1 = conv3x3_relu(a, w1_ref, b1_ref)
    a2 = conv3x3_relu(a1, w2_ref, b2_ref)
    a3 = conv3x3_relu(a2, w3_ref, b3_ref)

    loss_per_ref[...] = jnp.reshape(
        l1_halves(a1, inv_l1[0]) + l1_halves(a2, inv_l1[1]) + l1_halves(a3, inv_l1[2]),
        (1, 1))


# ----------------------------------------------------------------------------
# CombinedModel forward (wrapper: layout prep at trace time, one pallas_call)
# ----------------------------------------------------------------------------
def combined_model_forward(pixel_values, labels, params, widths=(8, 16, 32)):
    B, Cin, H, W = pixel_values.shape
    Cp = params["w_seg"].shape[1]
    N = B * H * W                           # per-branch lane width (512 at toy size)

    # Channel-major, spatial fully lane-flattened (weights-as-LHS layout).
    x_cin_m = jnp.transpose(pixel_values, (1, 0, 2, 3)).reshape(Cin, N).astype(jnp.float32)
    labels_cp_m = jnp.transpose(labels, (1, 0, 2, 3)).reshape(Cp, N).astype(jnp.float32)

    # Crop at 448/512 of H + nearest resize back to (H, W): a static per-lane
    # gather, encoded as a 0/1 selection matrix so it runs on the MXU in-kernel.
    start = (H * 448) // 512
    rows = start + (np.arange(H) * (H - start)) // H       # nearest: floor(dst*in/out)
    bb = np.arange(B)[:, None, None]
    rr = np.arange(H)[None, :, None]
    cc = np.arange(W)[None, None, :]
    dst = (bb * H * W + rr * W + cc).reshape(-1)
    src = (bb * H * W + rows[None, :, None] * W + cc).reshape(-1)
    sel = np.zeros((N, N), np.float32)
    sel[src, dst] = 1.0

    # Per-tap validity masks (conv2d padding=1 semantics), identical for both
    # branches.  Any lane-shift wraparound lands only on masked positions.
    offsets = []
    mask9 = np.zeros((9, N), np.float32)
    yy = np.arange(H)[:, None]
    xx = np.arange(W)[None, :]
    t = 0
    for dy in (-1, 0, 1):
        for dx in (-1, 0, 1):
            offsets.append(dy * W + dx)
            valid = ((yy + dy >= 0) & (yy + dy < H)
                     & (xx + dx >= 0) & (xx + dx < W)).astype(np.float32)
            mask9[t] = np.tile(valid.reshape(-1), B)
            t += 1
    mask = np.concatenate([mask9, mask9], axis=1)           # (9, 2N)

    # Seg-head params (weights-as-LHS) + frozen conv weights reshaped once at
    # trace time to (Cout, 9*Cin) so each conv layer is a single MXU matmul.
    w_seg = params["w_seg"].T.astype(jnp.float32)            # (Cp, Cin)
    b_seg = params["b_seg"].reshape(Cp, 1).astype(jnp.float32)
    convs, inv_l1 = [], []
    c_in = Cp
    for i, cout in enumerate(widths):
        w = params[f"w{i}"]                                   # (9, cout, c_in), tap t = (dy+1)*3+(dx+1)
        w_mat = jnp.transpose(w, (1, 0, 2)).reshape(cout, 9 * c_in).astype(jnp.float32)
        convs.append((w_mat, params[f"b{i}"].reshape(cout, 1).astype(jnp.float32)))
        inv_l1.append(1.0 / float(cout * N))
        c_in = cout
    (w1, b1), (w2, b2), (w3, b3) = convs

    kernel = functools.partial(_combined_kernel, offsets=tuple(offsets), n=N,
                               inv_seg=1.0 / float(Cp * N), inv_l1=tuple(inv_l1))
    loss_seg, loss_per = pl.pallas_call(
        kernel,
        out_shape=(jax.ShapeDtypeStruct((1, 1), jnp.float32),
                   jax.ShapeDtypeStruct((1, 1), jnp.float32)),
    )(x_cin_m, w_seg, b_seg, labels_cp_m,
      jnp.asarray(sel), jnp.asarray(mask), w1, b1, w2, b2, w3, b3)
    return loss_seg[0, 0], loss_per[0, 0]


# ----------------------------------------------------------------------------
# Deterministic parameter construction (synthetic stand-ins for model1 / model2)
# ----------------------------------------------------------------------------
def make_params(key, cin=4, cpred=4, widths=(8, 16, 32)):
    keys = jax.random.split(key, 2 + 2 * len(widths))
    params = {
        "w_seg": 0.1 * jax.random.normal(keys[0], (cin, cpred), jnp.float32),
        "b_seg": 0.1 * jax.random.normal(keys[1], (cpred,), jnp.float32),
    }
    c = cpred
    for i, cout in enumerate(widths):
        fan_in = 9 * c
        params[f"w{i}"] = jax.random.normal(
            keys[2 + 2 * i], (9, cout, c), jnp.float32) / jnp.sqrt(float(fan_in))
        params[f"b{i}"] = 0.05 * jax.random.normal(
            keys[3 + 2 * i], (cout,), jnp.float32)
        c = cout
    return params


if __name__ == "__main__":
    key = jax.random.PRNGKey(0)
    k_x, k_y, k_p = jax.random.split(key, 3)

    B, C, H, W = 2, 4, 16, 16
    pixel_values = jax.random.normal(k_x, (B, C, H, W), jnp.float32)
    labels = jax.random.normal(k_y, (B, C, H, W), jnp.float32)
    params = make_params(k_p, cin=C, cpred=C)

    fwd = jax.jit(combined_model_forward)
    loss_seg, loss_percept = fwd(pixel_values, labels, params)
    jax.block_until_ready((loss_seg, loss_percept))
    print("KERNEL_OK")
</pallas_src>

<mosaic_0001>
module attributes {stable_mosaic.version = 11 : i64} {
  func.func @_combined_kernel(%arg0: memref<4x512xf32, #tpu.memory_space<vmem>>, %arg1: memref<4x4xf32, #tpu.memory_space<vmem>>, %arg2: memref<4x1xf32, #tpu.memory_space<vmem>>, %arg3: memref<4x512xf32, #tpu.memory_space<vmem>>, %arg4: memref<512x512xf32, #tpu.memory_space<vmem>>, %arg5: memref<9x1024xf32, #tpu.memory_space<vmem>>, %arg6: memref<8x36xf32, #tpu.memory_space<vmem>>, %arg7: memref<8x1xf32, #tpu.memory_space<vmem>>, %arg8: memref<16x72xf32, #tpu.memory_space<vmem>>, %arg9: memref<16x1xf32, #tpu.memory_space<vmem>>, %arg10: memref<32x144xf32, #tpu.memory_space<vmem>>, %arg11: memref<32x1xf32, #tpu.memory_space<vmem>>, %arg12: memref<1x1xf32, #tpu.memory_space<vmem>>, %arg13: memref<1x1xf32, #tpu.memory_space<vmem>>) attributes {dimension_semantics = [], scalar_prefetch = 0 : i64, scratch_operands = 0 : i64, tpu.core_type = #tpu.core_type<tc>} {
    %c0 = arith.constant 0 : index
    %c0_0 = arith.constant 0 : index
    %0 = vector.load %arg0[%c0, %c0_0] : memref<4x512xf32, #tpu.memory_space<vmem>>, vector<4x512xf32>
    %c0_1 = arith.constant 0 : index
    %c0_2 = arith.constant 0 : index
    %1 = vector.load %arg3[%c0_1, %c0_2] : memref<4x512xf32, #tpu.memory_space<vmem>>, vector<4x512xf32>
    %c0_3 = arith.constant 0 : index
    %c0_4 = arith.constant 0 : index
    %2 = vector.load %arg1[%c0_3, %c0_4] : memref<4x4xf32, #tpu.memory_space<vmem>>, vector<4x4xf32>
    %cst = arith.constant dense<0.000000e+00> : vector<4x512xf32>
    %3 = tpu.matmul %2, %0, %cst {dimension_numbers = #tpu.dot_dimension_numbers<[1], [0], [0], [1], [0, 0, 1, 1], [], []>} : vector<4x4xf32>, vector<4x512xf32>, vector<4x512xf32> -> vector<4x512xf32>
    %c0_5 = arith.constant 0 : index
    %c0_6 = arith.constant 0 : index
    %4 = vector.load %arg2[%c0_5, %c0_6] : memref<4x1xf32, #tpu.memory_space<vmem>>, vector<4x1xf32>
    %5 = vector.broadcast %4 : vector<4x1xf32> to vector<4x512xf32>
    %6 = arith.addf %3, %5 : vector<4x512xf32>
    %7 = arith.subf %6, %1 : vector<4x512xf32>
    %8 = arith.mulf %7, %7 : vector<4x512xf32>
    %9 = vector.shape_cast %8 : vector<4x512xf32> to vector<1x4x512xf32>
    %cst_7 = arith.constant dense<0.000000e+00> : vector<1xf32>
    %10 = vector.multi_reduction <add>, %9, %cst_7 [1, 2] : vector<1x4x512xf32> to vector<1xf32>
    %11 = vector.shape_cast %10 : vector<1xf32> to vector<1x1x1xf32>
    %12 = vector.extract %11[0, 0, 0] : f32 from vector<1x1x1xf32>
    %cst_8 = arith.constant 4.8828125E-4 : f32
    %13 = arith.mulf %12, %cst_8 : f32
    %14 = vector.broadcast %13 : f32 to vector<1x1xf32>
    %c0_9 = arith.constant 0 : index
    %c0_10 = arith.constant 0 : index
    %15 = vector.load %arg12[%c0_9, %c0_10] : memref<1x1xf32, #tpu.memory_space<vmem>>, vector<1x1xf32>
    tpu.vector_store %arg12[%c0_9, %c0_10], %14 {strides = array<i32>} : memref<1x1xf32, #tpu.memory_space<vmem>>, vector<1x1xf32>,
    %c0_11 = arith.constant 0 : index
    %c0_12 = arith.constant 0 : index
    %16 = vector.load %arg4[%c0_11, %c0_12] : memref<512x512xf32, #tpu.memory_space<vmem>>, vector<512x512xf32>
    %cst_13 = arith.constant dense<0.000000e+00> : vector<4x512xf32>
    %17 = tpu.matmul %6, %16, %cst_13 {dimension_numbers = #tpu.dot_dimension_numbers<[1], [0], [0], [1], [0, 0, 1, 1], [], []>} : vector<4x512xf32>, vector<512x512xf32>, vector<4x512xf32> -> vector<4x512xf32>
    %18 = tpu.concatenate %17, %1 in 1 : vector<4x512xf32>, vector<4x512xf32> -> vector<4x1024xf32>
    %c0_14 = arith.constant 0 : index
    %c0_15 = arith.constant 0 : index
    %19 = vector.load %arg5[%c0_14, %c0_15] : memref<9x1024xf32, #tpu.memory_space<vmem>>, vector<9x1024xf32>
    %20 = vector.extract_strided_slice %18 {offsets = [0, 1007], sizes = [4, 17], strides = [1, 1]} : vector<4x1024xf32> to vector<4x17xf32>
    %21 = vector.extract_strided_slice %18 {offsets = [0, 0], sizes = [4, 1007], strides = [1, 1]} : vector<4x1024xf32> to vector<4x1007xf32>
    %22 = tpu.concatenate %20, %21 in 1 : vector<4x17xf32>, vector<4x1007xf32> -> vector<4x1024xf32>
    %23 = vector.extract_strided_slice %19 {offsets = [0, 0], sizes = [1, 1024], strides = [1, 1]} : vector<9x1024xf32> to vector<1x1024xf32>
    %24 = vector.broadcast %23 : vector<1x1024xf32> to vector<4x1024xf32>
    %25 = arith.mulf %22, %24 : vector<4x1024xf32>
    %26 = vector.extract_strided_slice %18 {offsets = [0, 1008], sizes = [4, 16], strides = [1, 1]} : vector<4x1024xf32> to vector<4x16xf32>
    %27 = vector.extract_strided_slice %18 {offsets = [0, 0], sizes = [4, 1008], strides = [1, 1]} : vector<4x1024xf32> to vector<4x1008xf32>
    %28 = tpu.concatenate %26, %27 in 1 : vector<4x16xf32>, vector<4x1008xf32> -> vector<4x1024xf32>
    %29 = vector.extract_strided_slice %19 {offsets = [1, 0], sizes = [1, 1024], strides = [1, 1]} : vector<9x1024xf32> to vector<1x1024xf32>
    %30 = vector.broadcast %29 : vector<1x1024xf32> to vector<4x1024xf32>
    %31 = arith.mulf %28, %30 : vector<4x1024xf32>
    %32 = vector.extract_strided_slice %18 {offsets = [0, 1009], sizes = [4, 15], strides = [1, 1]} : vector<4x1024xf32> to vector<4x15xf32>
    %33 = vector.extract_strided_slice %18 {offsets = [0, 0], sizes = [4, 1009], strides = [1, 1]} : vector<4x1024xf32> to vector<4x1009xf32>
    %34 = tpu.concatenate %32, %33 in 1 : vector<4x15xf32>, vector<4x1009xf32> -> vector<4x1024xf32>
    %35 = vector.extract_strided_slice %19 {offsets = [2, 0], sizes = [1, 1024], strides = [1, 1]} : vector<9x1024xf32> to vector<1x1024xf32>
    %36 = vector.broadcast %35 : vector<1x1024xf32> to vector<4x1024xf32>
    %37 = arith.mulf %34, %36 : vector<4x1024xf32>
    %38 = vector.extract_strided_slice %18 {offsets = [0, 1023], sizes = [4, 1], strides = [1, 1]} : vector<4x1024xf32> to vector<4x1xf32>
    %39 = vector.extract_strided_slice %18 {offsets = [0, 0], sizes = [4, 1023], strides = [1, 1]} : vector<4x1024xf32> to vector<4x1023xf32>
    %40 = tpu.concatenate %38, %39 in 1 : vector<4x1xf32>, vector<4x1023xf32> -> vector<4x1024xf32>
    %41 = vector.extract_strided_slice %19 {offsets = [3, 0], sizes = [1, 1024], strides = [1, 1]} : vector<9x1024xf32> to vector<1x1024xf32>
    %42 = vector.broadcast %41 : vector<1x1024xf32> to vector<4x1024xf32>
    %43 = arith.mulf %40, %42 : vector<4x1024xf32>
    %44 = vector.extract_strided_slice %18 {offsets = [0, 1], sizes = [4, 1023], strides = [1, 1]} : vector<4x1024xf32> to vector<4x1023xf32>
    %45 = vector.extract_strided_slice %18 {offsets = [0, 0], sizes = [4, 1], strides = [1, 1]} : vector<4x1024xf32> to vector<4x1xf32>
    %46 = tpu.concatenate %44, %45 in 1 : vector<4x1023xf32>, vector<4x1xf32> -> vector<4x1024xf32>
    %47 = vector.extract_strided_slice %19 {offsets = [5, 0], sizes = [1, 1024], strides = [1, 1]} : vector<9x1024xf32> to vector<1x1024xf32>
    %48 = vector.broadcast %47 : vector<1x1024xf32> to vector<4x1024xf32>
    %49 = arith.mulf %46, %48 : vector<4x1024xf32>
    %50 = vector.extract_strided_slice %18 {offsets = [0, 15], sizes = [4, 1009], strides = [1, 1]} : vector<4x1024xf32> to vector<4x1009xf32>
    %51 = vector.extract_strided_slice %18 {offsets = [0, 0], sizes = [4, 15], strides = [1, 1]} : vector<4x1024xf32> to vector<4x15xf32>
    %52 = tpu.concatenate %50, %51 in 1 : vector<4x1009xf32>, vector<4x15xf32> -> vector<4x1024xf32>
    %53 = vector.extract_strided_slice %19 {offsets = [6, 0], sizes = [1, 1024], strides = [1, 1]} : vector<9x1024xf32> to vector<1x1024xf32>
    %54 = vector.broadcast %53 : vector<1x1024xf32> to vector<4x1024xf32>
    %55 = arith.mulf %52, %54 : vector<4x1024xf32>
    %56 = vector.extract_strided_slice %18 {offsets = [0, 16], sizes = [4, 1008], strides = [1, 1]} : vector<4x1024xf32> to vector<4x1008xf32>
    %57 = vector.extract_strided_slice %18 {offsets = [0, 0], sizes = [4, 16], strides = [1, 1]} : vector<4x1024xf32> to vector<4x16xf32>
    %58 = tpu.concatenate %56, %57 in 1 : vector<4x1008xf32>, vector<4x16xf32> -> vector<4x1024xf32>
    %59 = vector.extract_strided_slice %19 {offsets = [7, 0], sizes = [1, 1024], strides = [1, 1]} : vector<9x1024xf32> to vector<1x1024xf32>
    %60 = vector.broadcast %59 : vector<1x1024xf32> to vector<4x1024xf32>
    %61 = arith.mulf %58, %60 : vector<4x1024xf32>
    %62 = vector.extract_strided_slice %18 {offsets = [0, 17], sizes = [4, 1007], strides = [1, 1]} : vector<4x1024xf32> to vector<4x1007xf32>
    %63 = vector.extract_strided_slice %18 {offsets = [0, 0], sizes = [4, 17], strides = [1, 1]} : vector<4x1024xf32> to vector<4x17xf32>
    %64 = tpu.concatenate %62, %63 in 1 : vector<4x1007xf32>, vector<4x17xf32> -> vector<4x1024xf32>
    %65 = vector.extract_strided_slice %19 {offsets = [8, 0], sizes = [1, 1024], strides = [1, 1]} : vector<9x1024xf32> to vector<1x1024xf32>
    %66 = vector.broadcast %65 : vector<1x1024xf32> to vector<4x1024xf32>
    %67 = arith.mulf %64, %66 : vector<4x1024xf32>
    %68 = tpu.concatenate %25, %31, %37, %43, %18, %49, %55, %61, %67 in 0 : vector<4x1024xf32>, vector<4x1024xf32>, vector<4x1024xf32>, vector<4x1024xf32>, vector<4x1024xf32>, vector<4x1024xf32>, vector<4x1024xf32>, vector<4x1024xf32>, vector<4x1024xf32> -> vector<36x1024xf32>
    %c0_16 = arith.constant 0 : index
    %c0_17 = arith.constant 0 : index
    %69 = vector.load %arg6[%c0_16, %c0_17] : memref<8x36xf32, #tpu.memory_space<vmem>>, vector<8x36xf32>
    %cst_18 = arith.constant dense<0.000000e+00> : vector<8x1024xf32>
    %70 = tpu.matmul %69, %68, %cst_18 {dimension_numbers = #tpu.dot_dimension_numbers<[1], [0], [0], [1], [0, 0, 1, 1], [], []>} : vector<8x36xf32>, vector<36x1024xf32>, vector<8x1024xf32> -> vector<8x1024xf32>
    %c0_19 = arith.constant 0 : index
    %c0_20 = arith.constant 0 : index
    %71 = vector.load %arg7[%c0_19, %c0_20] : memref<8x1xf32, #tpu.memory_space<vmem>>, vector<8x1xf32>
    %72 = vector.broadcast %71 : vector<8x1xf32> to vector<8x1024xf32>
    %73 = arith.addf %70, %72 : vector<8x1024xf32>
    %cst_21 = arith.constant 0.000000e+00 : f32
    %74 = vector.broadcast %cst_21 : f32 to vector<8x1024xf32>
    %75 = arith.maximumf %73, %74 : vector<8x1024xf32>
    %76 = vector.extract_strided_slice %75 {offsets = [0, 1007], sizes = [8, 17], strides = [1, 1]} : vector<8x1024xf32> to vector<8x17xf32>
    %77 = vector.extract_strided_slice %75 {offsets = [0, 0], sizes = [8, 1007], strides = [1, 1]} : vector<8x1024xf32> to vector<8x1007xf32>
    %78 = tpu.concatenate %76, %77 in 1 : vector<8x17xf32>, vector<8x1007xf32> -> vector<8x1024xf32>
    %79 = vector.extract_strided_slice %19 {offsets = [0, 0], sizes = [1, 1024], strides = [1, 1]} : vector<9x1024xf32> to vector<1x1024xf32>
    %80 = vector.broadcast %79 : vector<1x1024xf32> to vector<8x1024xf32>
    %81 = arith.mulf %78, %80 : vector<8x1024xf32>
    %82 = vector.extract_strided_slice %75 {offsets = [0, 1008], sizes = [8, 16], strides = [1, 1]} : vector<8x1024xf32> to vector<8x16xf32>
    %83 = vector.extract_strided_slice %75 {offsets = [0, 0], sizes = [8, 1008], strides = [1, 1]} : vector<8x1024xf32> to vector<8x1008xf32>
    %84 = tpu.concatenate %82, %83 in 1 : vector<8x16xf32>, vector<8x1008xf32> -> vector<8x1024xf32>
    %85 = vector.extract_strided_slice %19 {offsets = [1, 0], sizes = [1, 1024], strides = [1, 1]} : vector<9x1024xf32> to vector<1x1024xf32>
    %86 = vector.broadcast %85 : vector<1x1024xf32> to vector<8x1024xf32>
    %87 = arith.mulf %84, %86 : vector<8x1024xf32>
    %88 = vector.extract_strided_slice %75 {offsets = [0, 1009], sizes = [8, 15], strides = [1, 1]} : vector<8x1024xf32> to vector<8x15xf32>
    %89 = vector.extract_strided_slice %75 {offsets = [0, 0], sizes = [8, 1009], strides = [1, 1]} : vector<8x1024xf32> to vector<8x1009xf32>
    %90 = tpu.concatenate %88, %89 in 1 : vector<8x15xf32>, vector<8x1009xf32> -> vector<8x1024xf32>
    %91 = vector.extract_strided_slice %19 {offsets = [2, 0], sizes = [1, 1024], strides = [1, 1]} : vector<9x1024xf32> to vector<1x1024xf32>
    %92 = vector.broadcast %91 : vector<1x1024xf32> to vector<8x1024xf32>
    %93 = arith.mulf %90, %92 : vector<8x1024xf32>
    %94 = vector.extract_strided_slice %75 {offsets = [0, 1023], sizes = [8, 1], strides = [1, 1]} : vector<8x1024xf32> to vector<8x1xf32>
    %95 = vector.extract_strided_slice %75 {offsets = [0, 0], sizes = [8, 1023], strides = [1, 1]} : vector<8x1024xf32> to vector<8x1023xf32>
    %96 = tpu.concatenate %94, %95 in 1 : vector<8x1xf32>, vector<8x1023xf32> -> vector<8x1024xf32>
    %97 = vector.extract_strided_slice %19 {offsets = [3, 0], sizes = [1, 1024], strides = [1, 1]} : vector<9x1024xf32> to vector<1x1024xf32>
    %98 = vector.broadcast %97 : vector<1x1024xf32> to vector<8x1024xf32>
    %99 = arith.mulf %96, %98 : vector<8x1024xf32>
    %100 = vector.extract_strided_slice %75 {offsets = [0, 1], sizes = [8, 1023], strides = [1, 1]} : vector<8x1024xf32> to vector<8x1023xf32>
    %101 = vector.extract_strided_slice %75 {offsets = [0, 0], sizes = [8, 1], strides = [1, 1]} : vector<8x1024xf32> to vector<8x1xf32>
    %102 = tpu.concatenate %100, %101 in 1 : vector<8x1023xf32>, vector<8x1xf32> -> vector<8x1024xf32>
    %103 = vector.extract_strided_slice %19 {offsets = [5, 0], sizes = [1, 1024], strides = [1, 1]} : vector<9x1024xf32> to vector<1x1024xf32>
    %104 = vector.broadcast %103 : vector<1x1024xf32> to vector<8x1024xf32>
    %105 = arith.mulf %102, %104 : vector<8x1024xf32>
    %106 = vector.extract_strided_slice %75 {offsets = [0, 15], sizes = [8, 1009], strides = [1, 1]} : vector<8x1024xf32> to vector<8x1009xf32>
    %107 = vector.extract_strided_slice %75 {offsets = [0, 0], sizes = [8, 15], strides = [1, 1]} : vector<8x1024xf32> to vector<8x15xf32>
    %108 = tpu.concatenate %106, %107 in 1 : vector<8x1009xf32>, vector<8x15xf32> -> vector<8x1024xf32>
    %109 = vector.extract_strided_slice %19 {offsets = [6, 0], sizes = [1, 1024], strides = [1, 1]} : vector<9x1024xf32> to vector<1x1024xf32>
    %110 = vector.broadcast %109 : vector<1x1024xf32> to vector<8x1024xf32>
    %111 = arith.mulf %108, %110 : vector<8x1024xf32>
    %112 = vector.extract_strided_slice %75 {offsets = [0, 16], sizes = [8, 1008], strides = [1, 1]} : vector<8x1024xf32> to vector<8x1008xf32>
    %113 = vector.extract_strided_slice %75 {offsets = [0, 0], sizes = [8, 16], strides = [1, 1]} : vector<8x1024xf32> to vector<8x16xf32>
    %114 = tpu.concatenate %112, %113 in 1 : vector<8x1008xf32>, vector<8x16xf32> -> vector<8x1024xf32>
    %115 = vector.extract_strided_slice %19 {offsets = [7, 0], sizes = [1, 1024], strides = [1, 1]} : vector<9x1024xf32> to vector<1x1024xf32>
    %116 = vector.broadcast %115 : vector<1x1024xf32> to vector<8x1024xf32>
    %117 = arith.mulf %114, %116 : vector<8x1024xf32>
    %118 = vector.extract_strided_slice %75 {offsets = [0, 17], sizes = [8, 1007], strides = [1, 1]} : vector<8x1024xf32> to vector<8x1007xf32>
    %119 = vector.extract_strided_slice %75 {offsets = [0, 0], sizes = [8, 17], strides = [1, 1]} : vector<8x1024xf32> to vector<8x17xf32>
    %120 = tpu.concatenate %118, %119 in 1 : vector<8x1007xf32>, vector<8x17xf32> -> vector<8x1024xf32>
    %121 = vector.extract_strided_slice %19 {offsets = [8, 0], sizes = [1, 1024], strides = [1, 1]} : vector<9x1024xf32> to vector<1x1024xf32>
    %122 = vector.broadcast %121 : vector<1x1024xf32> to vector<8x1024xf32>
    %123 = arith.mulf %120, %122 : vector<8x1024xf32>
    %124 = tpu.concatenate %81, %87, %93, %99, %75, %105, %111, %117, %123 in 0 : vector<8x1024xf32>, vector<8x1024xf32>, vector<8x1024xf32>, vector<8x1024xf32>, vector<8x1024xf32>, vector<8x1024xf32>, vector<8x1024xf32>, vector<8x1024xf32>, vector<8x1024xf32> -> vector<72x1024xf32>
    %c0_22 = arith.constant 0 : index
    %c0_23 = arith.constant 0 : index
    %125 = vector.load %arg8[%c0_22, %c0_23] : memref<16x72xf32, #tpu.memory_space<vmem>>, vector<16x72xf32>
    %cst_24 = arith.constant dense<0.000000e+00> : vector<16x1024xf32>
    %126 = tpu.matmul %125, %124, %cst_24 {dimension_numbers = #tpu.dot_dimension_numbers<[1], [0], [0], [1], [0, 0, 1, 1], [], []>} : vector<16x72xf32>, vector<72x1024xf32>, vector<16x1024xf32> -> vector<16x1024xf32>
    %c0_25 = arith.constant 0 : index
    %c0_26 = arith.constant 0 : index
    %127 = vector.load %arg9[%c0_25, %c0_26] : memref<16x1xf32, #tpu.memory_space<vmem>>, vector<16x1xf32>
    %128 = vector.broadcast %127 : vector<16x1xf32> to vector<16x1024xf32>
    %129 = arith.addf %126, %128 : vector<16x1024xf32>
    %cst_27 = arith.constant 0.000000e+00 : f32
    %130 = vector.broadcast %cst_27 : f32 to vector<16x1024xf32>
    %131 = arith.maximumf %129, %130 : vector<16x1024xf32>
    %132 = vector.extract_strided_slice %131 {offsets = [0, 1007], sizes = [16, 17], strides = [1, 1]} : vector<16x1024xf32> to vector<16x17xf32>
    %133 = vector.extract_strided_slice %131 {offsets = [0, 0], sizes = [16, 1007], strides = [1, 1]} : vector<16x1024xf32> to vector<16x1007xf32>
    %134 = tpu.concatenate %132, %133 in 1 : vector<16x17xf32>, vector<16x1007xf32> -> vector<16x1024xf32>
    %135 = vector.extract_strided_slice %19 {offsets = [0, 0], sizes = [1, 1024], strides = [1, 1]} : vector<9x1024xf32> to vector<1x1024xf32>
    %136 = vector.broadcast %135 : vector<1x1024xf32> to vector<16x1024xf32>
    %137 = arith.mulf %134, %136 : vector<16x1024xf32>
    %138 = vector.extract_strided_slice %131 {offsets = [0, 1008], sizes = [16, 16], strides = [1, 1]} : vector<16x1024xf32> to vector<16x16xf32>
    %139 = vector.extract_strided_slice %131 {offsets = [0, 0], sizes = [16, 1008], strides = [1, 1]} : vector<16x1024xf32> to vector<16x1008xf32>
    %140 = tpu.concatenate %138, %139 in 1 : vector<16x16xf32>, vector<16x1008xf32> -> vector<16x1024xf32>
    %141 = vector.extract_strided_slice %19 {offsets = [1, 0], sizes = [1, 1024], strides = [1, 1]} : vector<9x1024xf32> to vector<1x1024xf32>
    %142 = vector.broadcast %141 : vector<1x1024xf32> to vector<16x1024xf32>
    %143 = arith.mulf %140, %142 : vector<16x1024xf32>
    %144 = vector.extract_strided_slice %131 {offsets = [0, 1009], sizes = [16, 15], strides = [1, 1]} : vector<16x1024xf32> to vector<16x15xf32>
    %145 = vector.extract_strided_slice %131 {offsets = [0, 0], sizes = [16, 1009], strides = [1, 1]} : vector<16x1024xf32> to vector<16x1009xf32>
    %146 = tpu.concatenate %144, %145 in 1 : vector<16x15xf32>, vector<16x1009xf32> -> vector<16x1024xf32>
    %147 = vector.extract_strided_slice %19 {offsets = [2, 0], sizes = [1, 1024], strides = [1, 1]} : vector<9x1024xf32> to vector<1x1024xf32>
    %148 = vector.broadcast %147 : vector<1x1024xf32> to vector<16x1024xf32>
    %149 = arith.mulf %146, %148 : vector<16x1024xf32>
    %150 = vector.extract_strided_slice %131 {offsets = [0, 1023], sizes = [16, 1], strides = [1, 1]} : vector<16x1024xf32> to vector<16x1xf32>
    %151 = vector.extract_strided_slice %131 {offsets = [0, 0], sizes = [16, 1023], strides = [1, 1]} : vector<16x1024xf32> to vector<16x1023xf32>
    %152 = tpu.concatenate %150, %151 in 1 : vector<16x1xf32>, vector<16x1023xf32> -> vector<16x1024xf32>
    %153 = vector.extract_strided_slice %19 {offsets = [3, 0], sizes = [1, 1024], strides = [1, 1]} : vector<9x1024xf32> to vector<1x1024xf32>
    %154 = vector.broadcast %153 : vector<1x1024xf32> to vector<16x1024xf32>
    %155 = arith.mulf %152, %154 : vector<16x1024xf32>
    %156 = vector.extract_strided_slice %131 {offsets = [0, 1], sizes = [16, 1023], strides = [1, 1]} : vector<16x1024xf32> to vector<16x1023xf32>
    %157 = vector.extract_strided_slice %131 {offsets = [0, 0], sizes = [16, 1], strides = [1, 1]} : vector<16x1024xf32> to vector<16x1xf32>
    %158 = tpu.concatenate %156, %157 in 1 : vector<16x1023xf32>, vector<16x1xf32> -> vector<16x1024xf32>
    %159 = vector.extract_strided_slice %19 {offsets = [5, 0], sizes = [1, 1024], strides = [1, 1]} : vector<9x1024xf32> to vector<1x1024xf32>
    %160 = vector.broadcast %159 : vector<1x1024xf32> to vector<16x1024xf32>
    %161 = arith.mulf %158, %160 : vector<16x1024xf32>
    %162 = vector.extract_strided_slice %131 {offsets = [0, 15], sizes = [16, 1009], strides = [1, 1]} : vector<16x1024xf32> to vector<16x1009xf32>
    %163 = vector.extract_strided_slice %131 {offsets = [0, 0], sizes = [16, 15], strides = [1, 1]} : vector<16x1024xf32> to vector<16x15xf32>
    %164 = tpu.concatenate %162, %163 in 1 : vector<16x1009xf32>, vector<16x15xf32> -> vector<16x1024xf32>
    %165 = vector.extract_strided_slice %19 {offsets = [6, 0], sizes = [1, 1024], strides = [1, 1]} : vector<9x1024xf32> to vector<1x1024xf32>
    %166 = vector.broadcast %165 : vector<1x1024xf32> to vector<16x1024xf32>
    %167 = arith.mulf %164, %166 : vector<16x1024xf32>
    %168 = vector.extract_strided_slice %131 {offsets = [0, 16], sizes = [16, 1008], strides = [1, 1]} : vector<16x1024xf32> to vector<16x1008xf32>
    %169 = vector.extract_strided_slice %131 {offsets = [0, 0], sizes = [16, 16], strides = [1, 1]} : vector<16x1024xf32> to vector<16x16xf32>
    %170 = tpu.concatenate %168, %169 in 1 : vector<16x1008xf32>, vector<16x16xf32> -> vector<16x1024xf32>
    %171 = vector.extract_strided_slice %19 {offsets = [7, 0], sizes = [1, 1024], strides = [1, 1]} : vector<9x1024xf32> to vector<1x1024xf32>
    %172 = vector.broadcast %171 : vector<1x1024xf32> to vector<16x1024xf32>
    %173 = arith.mulf %170, %172 : vector<16x1024xf32>
    %174 = vector.extract_strided_slice %131 {offsets = [0, 17], sizes = [16, 1007], strides = [1, 1]} : vector<16x1024xf32> to vector<16x1007xf32>
    %175 = vector.extract_strided_slice %131 {offsets = [0, 0], sizes = [16, 17], strides = [1, 1]} : vector<16x1024xf32> to vector<16x17xf32>
    %176 = tpu.concatenate %174, %175 in 1 : vector<16x1007xf32>, vector<16x17xf32> -> vector<16x1024xf32>
    %177 = vector.extract_strided_slice %19 {offsets = [8, 0], sizes = [1, 1024], strides = [1, 1]} : vector<9x1024xf32> to vector<1x1024xf32>
    %178 = vector.broadcast %177 : vector<1x1024xf32> to vector<16x1024xf32>
    %179 = arith.mulf %176, %178 : vector<16x1024xf32>
    %180 = tpu.concatenate %137, %143, %149, %155, %131, %161, %167, %173, %179 in 0 : vector<16x1024xf32>, vector<16x1024xf32>, vector<16x1024xf32>, vector<16x1024xf32>, vector<16x1024xf32>, vector<16x1024xf32>, vector<16x1024xf32>, vector<16x1024xf32>, vector<16x1024xf32> -> vector<144x1024xf32>
    %c0_28 = arith.constant 0 : index
    %c0_29 = arith.constant 0 : index
    %181 = vector.load %arg10[%c0_28, %c0_29] : memref<32x144xf32, #tpu.memory_space<vmem>>, vector<32x144xf32>
    %cst_30 = arith.constant dense<0.000000e+00> : vector<32x1024xf32>
    %182 = tpu.matmul %181, %180, %cst_30 {dimension_numbers = #tpu.dot_dimension_numbers<[1], [0], [0], [1], [0, 0, 1, 1], [], []>} : vector<32x144xf32>, vector<144x1024xf32>, vector<32x1024xf32> -> vector<32x1024xf32>
    %c0_31 = arith.constant 0 : index
    %c0_32 = arith.constant 0 : index
    %183 = vector.load %arg11[%c0_31, %c0_32] : memref<32x1xf32, #tpu.memory_space<vmem>>, vector<32x1xf32>
    %184 = vector.broadcast %183 : vector<32x1xf32> to vector<32x1024xf32>
    %185 = arith.addf %182, %184 : vector<32x1024xf32>
    %cst_33 = arith.constant 0.000000e+00 : f32
    %186 = vector.broadcast %cst_33 : f32 to vector<32x1024xf32>
    %187 = arith.maximumf %185, %186 : vector<32x1024xf32>
    %188 = vector.extract_strided_slice %75 {offsets = [0, 0], sizes = [8, 512], strides = [1, 1]} : vector<8x1024xf32> to vector<8x512xf32>
    %189 = vector.extract_strided_slice %75 {offsets = [0, 512], sizes = [8, 512], strides = [1, 1]} : vector<8x1024xf32> to vector<8x512xf32>
    %190 = arith.subf %188, %189 : vector<8x512xf32>
    %191 = math.absf %190 : vector<8x512xf32>
    %192 = vector.shape_cast %191 : vector<8x512xf32> to vector<1x8x512xf32>
    %cst_34 = arith.constant dense<0.000000e+00> : vector<1xf32>
    %193 = vector.multi_reduction <add>, %192, %cst_34 [1, 2] : vector<1x8x512xf32> to vector<1xf32>
    %194 = vector.shape_cast %193 : vector<1xf32> to vector<1x1x1xf32>
    %195 = vector.extract %194[0, 0, 0] : f32 from vector<1x1x1xf32>
    %cst_35 = arith.constant 2.44140625E-4 : f32
    %196 = arith.mulf %195, %cst_35 : f32
    %197 = vector.extract_strided_slice %131 {offsets = [0, 0], sizes = [16, 512], strides = [1, 1]} : vector<16x1024xf32> to vector<16x512xf32>
    %198 = vector.extract_strided_slice %131 {offsets = [0, 512], sizes = [16, 512], strides = [1, 1]} : vector<16x1024xf32> to vector<16x512xf32>
    %199 = arith.subf %197, %198 : vector<16x512xf32>
    %200 = math.absf %199 : vector<16x512xf32>
    %201 = vector.shape_cast %200 : vector<16x512xf32> to vector<1x16x512xf32>
    %cst_36 = arith.constant dense<0.000000e+00> : vector<1xf32>
    %202 = vector.multi_reduction <add>, %201, %cst_36 [1, 2] : vector<1x16x512xf32> to vector<1xf32>
    %203 = vector.shape_cast %202 : vector<1xf32> to vector<1x1x1xf32>
    %204 = vector.extract %203[0, 0, 0] : f32 from vector<1x1x1xf32>
    %cst_37 = arith.constant 1.22070313E-4 : f32
    %205 = arith.mulf %204, %cst_37 : f32
    %206 = arith.addf %196, %205 : f32
    %207 = vector.extract_strided_slice %187 {offsets = [0, 0], sizes = [32, 512], strides = [1, 1]} : vector<32x1024xf32> to vector<32x512xf32>
    %208 = vector.extract_strided_slice %187 {offsets = [0, 512], sizes = [32, 512], strides = [1, 1]} : vector<32x1024xf32> to vector<32x512xf32>
    %209 = arith.subf %207, %208 : vector<32x512xf32>
    %210 = math.absf %209 : vector<32x512xf32>
    %211 = vector.shape_cast %210 : vector<32x512xf32> to vector<1x32x512xf32>
    %cst_38 = arith.constant dense<0.000000e+00> : vector<1xf32>
    %212 = vector.multi_reduction <add>, %211, %cst_38 [1, 2] : vector<1x32x512xf32> to vector<1xf32>
    %213 = vector.shape_cast %212 : vector<1xf32> to vector<1x1x1xf32>
    %214 = vector.extract %213[0, 0, 0] : f32 from vector<1x1x1xf32>
    %cst_39 = arith.constant 6.10351563E-5 : f32
    %215 = arith.mulf %214, %cst_39 : f32
    %216 = arith.addf %206, %215 : f32
    %217 = vector.broadcast %216 : f32 to vector<1x1xf32>
    %c0_40 = arith.constant 0 : index
    %c0_41 = arith.constant 0 : index
    %218 = vector.load %arg13[%c0_40, %c0_41] : memref<1x1xf32, #tpu.memory_space<vmem>>, vector<1x1xf32>
    tpu.vector_store %arg13[%c0_40, %c0_41], %217 {strides = array<i32>} : memref<1x1xf32, #tpu.memory_space<vmem>>, vector<1x1xf32>,
    return
  }
}

</mosaic_0001>

<bundles_post_ra>
// kernel: combined_model_forward.1
= control target key start
LH: loop header
LB: loop body
LE: loop exit
PB: predicated region body
PF: predicated region fallthrough
CT: control target
= control target key end

     0   :  { %19 = vsyncpa [#allocation3], 0  ;;  %s7155_s0 = inlined_call_operand.vmem [shape: f32[4,512], index: 0, kind: input, shape index: {}]   ;;  %s7156_s1 = inlined_call_operand.vmem [shape: f32[4,4], index: 1, kind: input, shape index: {}]   ;;  %s7157_s2 = inlined_call_operand.vmem [shape: f32[4,1], index: 2, kind: input, shape index: {}]   ;;  %s7158_s3 = inlined_call_operand.vmem [shape: f32[4,512], index: 3, kind: input, shape index: {}]   ;;  %s7159_s4 = inlined_call_operand.hbm [shape: f32[512,512], index: 4, kind: input, shape index: {}]   ;;  %s7160_s5 = inlined_call_operand.vmem [shape: f32[9,1024], index: 5, kind: input, shape index: {}]   ;;  %s7161_s6 = inlined_call_operand.vmem [shape: f32[8,36], index: 6, kind: input, shape index: {}]   ;;  %s7162_s7 = inlined_call_operand.vmem [shape: f32[8,1], index: 7, kind: input, shape index: {}]   ;;  %s7163_s8 = inlined_call_operand.vmem [shape: f32[16,72], index: 8, kind: input, shape index: {}]   ;;  %s7164_s9 = inlined_call_operand.vmem [shape: f32[16,1], index: 9, kind: input, shape index: {}]   ;;  %s7165_s10 = inlined_call_operand.vmem [shape: f32[32,144], index: 10, kind: input, shape index: {}]   ;;  %s7166_s11 = inlined_call_operand.vmem [shape: f32[32,1], index: 11, kind: input, shape index: {}]   ;;  %s7167_s12 = inlined_call_operand.hbm [shape: f32[1,1], index: 12, kind: output, shape index: {0}]   ;;  %s7168_s13 = inlined_call_operand.hbm [shape: f32[1,1], index: 13, kind: output, shape index: {1}]  }
   0x1   :  { %20 = vsyncpa [#allocation4], 0 }
   0x2   :  { %21 = vsyncpa [#allocation7], 0  ;;  %s4459_s25 = smov [#allocation2]   ;;  %s4387_s29 = scalar_lea.hbm %s7159_s4, 32768 }
   0x3   :  { %s35_s26 = sshll.u32 %s4459_s25, 4  ;;  %p4388_p0 = scmp.ne.s32.totalorder %s7159_s4, %s4387_s29  ;;  %s36_s26 = int_to_ptr.vmem [resolvable:$true] %s35_s26 }
   0x4   :  { %p4391_p1 = scmp.lt.u32.totalorder %s4387_s29, %s7159_s4 }
   0x6   :  { %p4393_p2 = pnand %p4391_p1, %p4388_p0 }
   0x8   :  { %4396 = shalt.err (!%p4393_p2)
}
   0x9   :  { %s4397_s17 = scalar_lea.vmem %s36_s26, 32768  ;;  %p4402_p4 = scmp.lt.s32.totalorder %s36_s26, %s36_s26 }
   0xa   :  { %p4398_p3 = scmp.ne.s32.totalorder %s36_s26, %s4397_s17  ;;  %p4403_p5 = scmp.lt.s32.totalorder %s4397_s17, %s4397_s17 }
   0xc   :  { %p4404_p6 = por %p4403_p5, %p4402_p4 }
   0xe   :  { %p4405_p7 = pnand %p4404_p6, %p4398_p3 }
  0x10   :  { %4408 = shalt.err (!%p4405_p7)
}
  0x11   :  { %s4460_s18 = smov 512   ;;  %s4461_s19 = smov 32  }
  0x12   :  { %41 = dma.hbm_to_vmem [thread:$0]  %s7159_s4, 32768, %s36_s26, [#allocation3], %s4460_s18, %s4460_s18, %s4461_s19  }
  0x13   :  { %4453 = dma.done.wait [#allocation3], 32768  }
  0x14   :  { %4454 = vsyncadd [#allocation3], 4294934528  ;;  %v7169_v0 = vmov 0.0   ;;  %v4463_v1 = vmov 0   ;;  %v59_v2 = vld [vmem:[%s7155_s0] sm:$0xff]  ;;  %vm78_vm0 = vcmask 1043456  }
  0x15   :  { %151 = vmatprep.mubr.f32.mxu0 %v7169_v0  ;;  %222 = vmatprep.mubr.f32.mxu1 %v7169_v0  ;;  %v60_v3 = vld [vmem:[%s7155_s0 + $0x8] sm:$0xff]  ;;  %v63_v4 = vld [vmem:[%s7156_s1] sm:$0xf]  ;;  %v72_v5 = vcombine.high %v59_v2, %v59_v2  ;;  %vm74_vm1 = vcmask 31744   ;;  %v266_v11 = vld [vmem:[#allocation2 + $0x18] sm:$0xff]  ;;  %s4465_s29 = smov 1  }
  0x16   :  { %4372 = vset.pattern.permute.xlu0 %v4463_v1  ;;  %4373 = vset.pattern.permute.xlu1 %v4463_v1  ;;  %v73_v6 = vcombine.high %v60_v3, %v60_v3  ;;  %v64_v7 = vld [vmem:[%s7157_s2] sm:$0xf]  ;;  %v264_v8 = vld [vmem:[#allocation2 + $0x8] sm:$0xff]  ;;  %v270_v12 = vld [vmem:[#allocation2 + $0x38] sm:$0xff]  ;;  %s4464_s2 = smov 16   ;;  %s4466_s30 = smov 17  }
  0x17   :  { %v268_v9 = vld [vmem:[#allocation2 + $0x28] sm:$0xff]  ;;  %67 = vperm.xlu0 %4372, %v64_v7   ;;  %v263_v13 = vld [vmem:[#allocation2] sm:$0xff]  ;;  %3799 = vmatprep.subr.msk.mxu0 %vm78_vm0, %v72_v5  ;;  %v3977_v14 = vpack.c.bf16 %v270_v12, %v266_v11  ;;  %v265_v16 = vld [vmem:[#allocation2 + $0x10] sm:$0xff]  ;;  %s4467_s14 = smov 15   ;;  %s4468_s17 = smov 127   ;;  %vm914_vm2 = vcmask 130048  }
  0x18   :  { %v3849_v10 = vpack.c.bf16 %v268_v9, %v264_v8  ;;  %3802 = vmatprep.subr.msk.mxu1 %vm78_vm0, %v73_v6  ;;  %v267_v15 = vld [vmem:[#allocation2 + $0x20] sm:$0xff]  ;;  %v269_v17 = vld [vmem:[#allocation2 + $0x30] sm:$0xff]  ;;  %3800 = vmatpush1.msk.msra.mxu0 %vm78_vm0, %v59_v2  ;;  %v272_v20 = vld [vmem:[#allocation2 + $0x48] sm:$0xff]  ;;  %s4469_s18 = smov 112   ;;  %s4470_s19 = smov 113   ;;  %vm1062_vm3 = vcmask 7168  }
  0x19   :  { %3803 = vmatpush1.msk.msra.mxu1 %vm78_vm0, %v60_v3  ;;  %v3851_v18 = vpack.c.bf16 %v267_v15, %v263_v13  ;;  %v3979_v19 = vpack.c.bf16 %v269_v17, %v265_v16  ;;  %v276_v21 = vld [vmem:[#allocation2 + $0x68] sm:$0xff]  ;;  %v274_v22 = vld [vmem:[#allocation2 + $0x58] sm:$0xff]  ;;  %3801 = vmatmul.mubr.msk.f32.vlgmr.msra.gmra.mrb[0].mxu0 %vm74_vm1, %v63_v4  ;;  %v271_v25 = vld [vmem:[#allocation2 + $0x40] sm:$0xff]  ;;  %s4471_s20 = smov 111   ;;  %vm840_vm4 = vcmask 138240   ;;  %vm988_vm5 = vcmask 121856  }
  0x1a   :  { %3804 = vmatmul.mubr.msk.f32.vlgmr.msra.gmra.mrb[0].mxu1 %vm74_vm1, %v63_v4  ;;  %v3853_v23 = vpack.c.bf16 %v276_v21, %v272_v20  ;;  %v278_v24 = vld [vmem:[#allocation2 + $0x78] sm:$0xff]  ;;  %v275_v26 = vld [vmem:[#allocation2 + $0x60] sm:$0xff]  ;;  %3850 = vmatprep.subr.bf16.mxu0 %v3849_v10  ;;  %v273_v28 = vld [vmem:[#allocation2 + $0x50] sm:$0xff]  ;;  %vm1135_vm6 = vcmask 1039360   ;;  %vm1283_vm7 = vcmask 916480   ;;  %vm1209_vm8 = vcmask 924672  }
  0x1b   :  { %3978 = vmatprep.subr.bf16.mxu1 %v3977_v14  ;;  %v3981_v27 = vpack.c.bf16 %v278_v24, %v274_v22  ;;  %v277_v29 = vld [vmem:[#allocation2 + $0x70] sm:$0xff]  ;;  %v280_v30 = vld [vmem:[#allocation2 + $0x88] sm:$0xff]  ;;  %3852 = vmatpush1.bf16.msra.mxu0 %v3851_v18  ;;  %v3855_v31 = vpack.c.bf16 %v275_v26, %v271_v25  ;;  %v282_v34 = vld [vmem:[#allocation2 + $0x98] sm:$0xff]  ;;  %vm1357_vm9 = vcmask 908288   ;;  %vm1550_vm10 = vcmask 293888   ;;  %s4472_s23 = smov [#allocation5]  }
  0x1c   :  { %3980 = vmatpush1.bf16.msra.mxu1 %v3979_v19  ;;  %v3983_v32 = vpack.c.bf16 %v277_v29, %v273_v28  ;;  %v284_v33 = vld [vmem:[#allocation2 + $0xa8] sm:$0xff]  ;;  %v286_v35 = vld [vmem:[#allocation2 + $0xb8] sm:$0xff]  ;;  %3854 = vmatprep.subr.bf16.mxu0 %v3853_v23  ;;  %v279_v38 = vld [vmem:[#allocation2 + $0x80] sm:$0xff]  ;;  %vm2220_vm11 = vcmask 588800   ;;  %vm261_vm12 = vcmask 0   ;;  %s3776_s24 = sshll.u32 %s4472_s23, 4  ;;  %s3777_s24 = int_to_ptr.vmem [resolvable:$true] %s3776_s24 }
  0x1d   :  { %3982 = vmatprep.subr.bf16.mxu1 %v3981_v27  ;;  %v3857_v36 = vpack.c.bf16 %v284_v33, %v280_v30  ;;  %v3985_v37 = vpack.c.bf16 %v286_v35, %v282_v34  ;;  %v283_v39 = vld [vmem:[#allocation2 + $0xa0] sm:$0xff]  ;;  %v281_v40 = vld [vmem:[#allocation2 + $0x90] sm:$0xff]  ;;  %v288_v42 = vld [vmem:[#allocation2 + $0xc8] sm:$0xff]  ;;  %s4409_s25 = scalar_lea.vmem %s3777_s24, 16  ;;  %s4413_s4 = scalar_lea.vmem %s3777_s24, 32 }
  0x1e   :  { %v285_v41 = vld [vmem:[#allocation2 + $0xb0] sm:$0xff]  ;;  %v292_v43 = vld [vmem:[#allocation2 + $0xe8] sm:$0xff]  ;;  %v290_v44 = vld [vmem:[#allocation2 + $0xd8] sm:$0xff]  ;;  %v3859_v46 = vpack.c.bf16 %v283_v39, %v279_v38  ;;  %p4410_p8 = scmp.ne.s32.totalorder %s3777_s24, %s4409_s25  ;;  %p4414_p9 = scmp.lt.s32.totalorder %s3777_s24, %s3777_s24 }
  0x1f   :  { %v294_v45 = vld [vmem:[#allocation2 + $0xf8] sm:$0xff]  ;;  %3856 = vmatpush1.bf16.msra.mxu0 %v3855_v31  ;;  %v3987_v47 = vpack.c.bf16 %v285_v41, %v281_v40  ;;  %v287_v48 = vld [vmem:[#allocation2 + $0xc0] sm:$0xff]  ;;  %v3861_v50 = vpack.c.bf16 %v292_v43, %v288_v42  ;;  %v289_v52 = vld [vmem:[#allocation2 + $0xd0] sm:$0xff]  ;;  %p4415_p10 = scmp.lt.s32.totalorder %s4413_s4, %s4409_s25 }
  0x20   :  { %3984 = vmatpush1.bf16.msra.mxu1 %v3983_v32  ;;  %v291_v49 = vld [vmem:[#allocation2 + $0xe0] sm:$0xff]  ;;  %3858 = vmatprep.subr.bf16.mxu0 %v3857_v36  ;;  %v3989_v51 = vpack.c.bf16 %v294_v45, %v290_v44  ;;  %v293_v53 = vld [vmem:[#allocation2 + $0xf0] sm:$0xff]  ;;  %v296_v54 = vld [vmem:[#allocation2 + $0x108] sm:$0xff] }
  0x21   :  { %3986 = vmatprep.subr.bf16.mxu1 %v3985_v37  ;;  %v300_v55 = vld [vmem:[#allocation2 + $0x128] sm:$0xff]  ;;  %v298_v56 = vld [vmem:[#allocation2 + $0x118] sm:$0xff]  ;;  %v3863_v58 = vpack.c.bf16 %v291_v49, %v287_v48  ;;  %v3991_v59 = vpack.c.bf16 %v293_v53, %v289_v52  ;;  %v295_v60 = vld [vmem:[#allocation2 + $0x100] sm:$0xff]  ;;  %p4416_p11 = por %p4415_p10, %p4414_p9 }
  0x22   :  { %v302_v57 = vld [vmem:[#allocation2 + $0x138] sm:$0xff]  ;;  %v299_v61 = vld [vmem:[#allocation2 + $0x120] sm:$0xff]  ;;  %v3865_v62 = vpack.c.bf16 %v300_v55, %v296_v54  ;;  %v297_v1 = vld [vmem:[#allocation2 + $0x110] sm:$0xff] }
  0x23   :  { %3860 = vmatpush1.bf16.msra.mxu0 %v3859_v46  ;;  %v3993_v63 = vpack.c.bf16 %v302_v57, %v298_v56  ;;  %v301_v2 = vld [vmem:[#allocation2 + $0x130] sm:$0xff]  ;;  %v304_v3 = vld [vmem:[#allocation2 + $0x148] sm:$0xff]  ;;  %v306_v5 = vld [vmem:[#allocation2 + $0x158] sm:$0xff]  ;;  %v3867_v7 = vpack.c.bf16 %v299_v61, %v295_v60  ;;  %p4417_p12 = pnand %p4416_p11, %p4410_p8 }
  0x24   :  { %3988 = vmatpush1.bf16.msra.mxu1 %v3987_v47  ;;  %3862 = vmatprep.subr.bf16.mxu0 %v3861_v50  ;;  %v308_v4 = vld [vmem:[#allocation2 + $0x168] sm:$0xff]  ;;  %v310_v6 = vld [vmem:[#allocation2 + $0x178] sm:$0xff]  ;;  %v3995_v8 = vpack.c.bf16 %v301_v2, %v297_v1  ;;  %v303_v9 = vld [vmem:[#allocation2 + $0x140] sm:$0xff] }
  0x25   :  { %3990 = vmatprep.subr.bf16.mxu1 %v3989_v51  ;;  %v307_v10 = vld [vmem:[#allocation2 + $0x160] sm:$0xff]  ;;  %v3869_v11 = vpack.c.bf16 %v308_v4, %v304_v3  ;;  %v3997_v12 = vpack.c.bf16 %v310_v6, %v306_v5  ;;  %v305_v13 = vld [vmem:[#allocation2 + $0x150] sm:$0xff]  ;;  %v312_v15 = vld [vmem:[#allocation2 + $0x188] sm:$0xff] }
  0x26   :  { %v309_v14 = vld [vmem:[#allocation2 + $0x170] sm:$0xff]  ;;  %v316_v16 = vld [vmem:[#allocation2 + $0x1a8] sm:$0xff]  ;;  %v314_v17 = vld [vmem:[#allocation2 + $0x198] sm:$0xff]  ;;  %v3871_v19 = vpack.c.bf16 %v307_v10, %v303_v9 }
  0x27   :  { %3864 = vmatpush1.bf16.msra.mxu0 %v3863_v58  ;;  %v318_v18 = vld [vmem:[#allocation2 + $0x1b8] sm:$0xff]  ;;  %v3999_v20 = vpack.c.bf16 %v309_v14, %v305_v13  ;;  %v311_v21 = vld [vmem:[#allocation2 + $0x180] sm:$0xff]  ;;  %v3873_v23 = vpack.c.bf16 %v316_v16, %v312_v15  ;;  %v313_v25 = vld [vmem:[#allocation2 + $0x190] sm:$0xff] }
  0x28   :  { %3992 = vmatpush1.bf16.msra.mxu1 %v3991_v59  ;;  %3866 = vmatprep.subr.bf16.mxu0 %v3865_v62  ;;  %v315_v22 = vld [vmem:[#allocation2 + $0x1a0] sm:$0xff]  ;;  %v4001_v24 = vpack.c.bf16 %v318_v18, %v314_v17  ;;  %v317_v26 = vld [vmem:[#allocation2 + $0x1b0] sm:$0xff]  ;;  %v320_v27 = vld [vmem:[#allocation2 + $0x1c8] sm:$0xff] }
  0x29   :  { %3994 = vmatprep.subr.bf16.mxu1 %v3993_v63  ;;  %v324_v28 = vld [vmem:[#allocation2 + $0x1e8] sm:$0xff]  ;;  %v322_v29 = vld [vmem:[#allocation2 + $0x1d8] sm:$0xff]  ;;  %v3875_v31 = vpack.c.bf16 %v315_v22, %v311_v21  ;;  %v4003_v32 = vpack.c.bf16 %v317_v26, %v313_v25  ;;  %v319_v33 = vld [vmem:[#allocation2 + $0x1c0] sm:$0xff] }
  0x2a   :  { %v326_v30 = vld [vmem:[#allocation2 + $0x1f8] sm:$0xff]  ;;  %v323_v34 = vld [vmem:[#allocation2 + $0x1e0] sm:$0xff]  ;;  %v3877_v35 = vpack.c.bf16 %v324_v28, %v320_v27  ;;  %v321_v37 = vld [vmem:[#allocation2 + $0x1d0] sm:$0xff] }
  0x2b   :  { %3868 = vmatpush1.bf16.msra.mxu0 %v3867_v7  ;;  %v4005_v36 = vpack.c.bf16 %v326_v30, %v322_v29  ;;  %v325_v38 = vld [vmem:[#allocation2 + $0x1f0] sm:$0xff]  ;;  %v328_v39 = vld [vmem:[#allocation2 + $0x208] sm:$0xff]  ;;  %v330_v41 = vld [vmem:[#allocation2 + $0x218] sm:$0xff]  ;;  %v3879_v43 = vpack.c.bf16 %v323_v34, %v319_v33 }
  0x2c   :  { %3996 = vmatpush1.bf16.msra.mxu1 %v3995_v8  ;;  %3870 = vmatprep.subr.bf16.mxu0 %v3869_v11  ;;  %v332_v40 = vld [vmem:[#allocation2 + $0x228] sm:$0xff]  ;;  %v334_v42 = vld [vmem:[#allocation2 + $0x238] sm:$0xff]  ;;  %v4007_v44 = vpack.c.bf16 %v325_v38, %v321_v37  ;;  %v327_v45 = vld [vmem:[#allocation2 + $0x200] sm:$0xff] }
  0x2d   :  { %3998 = vmatprep.subr.bf16.mxu1 %v3997_v12  ;;  %v331_v46 = vld [vmem:[#allocation2 + $0x220] sm:$0xff]  ;;  %v3881_v47 = vpack.c.bf16 %v332_v40, %v328_v39  ;;  %v4009_v48 = vpack.c.bf16 %v334_v42, %v330_v41  ;;  %v329_v49 = vld [vmem:[#allocation2 + $0x210] sm:$0xff]  ;;  %v336_v51 = vld [vmem:[#allocation2 + $0x248] sm:$0xff] }
  0x2e   :  { %v333_v50 = vld [vmem:[#allocation2 + $0x230] sm:$0xff]  ;;  %v340_v52 = vld [vmem:[#allocation2 + $0x268] sm:$0xff]  ;;  %v338_v53 = vld [vmem:[#allocation2 + $0x258] sm:$0xff]  ;;  %v3883_v55 = vpack.c.bf16 %v331_v46, %v327_v45 }
  0x2f   :  { %3872 = vmatpush1.bf16.msra.mxu0 %v3871_v19  ;;  %v342_v54 = vld [vmem:[#allocation2 + $0x278] sm:$0xff]  ;;  %v4011_v56 = vpack.c.bf16 %v333_v50, %v329_v49  ;;  %v335_v57 = vld [vmem:[#allocation2 + $0x240] sm:$0xff]  ;;  %v3885_v59 = vpack.c.bf16 %v340_v52, %v336_v51  ;;  %v337_v61 = vld [vmem:[#allocation2 + $0x250] sm:$0xff] }
  0x30   :  { %4000 = vmatpush1.bf16.msra.mxu1 %v3999_v20  ;;  %3874 = vmatprep.subr.bf16.mxu0 %v3873_v23  ;;  %v339_v58 = vld [vmem:[#allocation2 + $0x260] sm:$0xff]  ;;  %v4013_v60 = vpack.c.bf16 %v342_v54, %v338_v53  ;;  %v341_v62 = vld [vmem:[#allocation2 + $0x270] sm:$0xff]  ;;  %v344_v63 = vld [vmem:[#allocation2 + $0x288] sm:$0xff] }
  0x31   :  { %4002 = vmatprep.subr.bf16.mxu1 %v4001_v24  ;;  %v348_v1 = vld [vmem:[#allocation2 + $0x2a8] sm:$0xff]  ;;  %v346_v2 = vld [vmem:[#allocation2 + $0x298] sm:$0xff]  ;;  %v3887_v4 = vpack.c.bf16 %v339_v58, %v335_v57  ;;  %v4015_v5 = vpack.c.bf16 %v341_v62, %v337_v61  ;;  %v343_v6 = vld [vmem:[#allocation2 + $0x280] sm:$0xff] }
  0x32   :  { %v350_v3 = vld [vmem:[#allocation2 + $0x2b8] sm:$0xff]  ;;  %v347_v7 = vld [vmem:[#allocation2 + $0x2a0] sm:$0xff]  ;;  %v3889_v8 = vpack.c.bf16 %v348_v1, %v344_v63  ;;  %v345_v10 = vld [vmem:[#allocation2 + $0x290] sm:$0xff] }
  0x33   :  { %3876 = vmatpush1.bf16.msra.mxu0 %v3875_v31  ;;  %v4017_v9 = vpack.c.bf16 %v350_v3, %v346_v2  ;;  %v349_v11 = vld [vmem:[#allocation2 + $0x2b0] sm:$0xff]  ;;  %v352_v12 = vld [vmem:[#allocation2 + $0x2c8] sm:$0xff]  ;;  %v354_v14 = vld [vmem:[#allocation2 + $0x2d8] sm:$0xff]  ;;  %v3891_v16 = vpack.c.bf16 %v347_v7, %v343_v6 }
  0x34   :  { %4004 = vmatpush1.bf16.msra.mxu1 %v4003_v32  ;;  %3878 = vmatprep.subr.bf16.mxu0 %v3877_v35  ;;  %v356_v13 = vld [vmem:[#allocation2 + $0x2e8] sm:$0xff]  ;;  %v358_v15 = vld [vmem:[#allocation2 + $0x2f8] sm:$0xff]  ;;  %v4019_v17 = vpack.c.bf16 %v349_v11, %v345_v10  ;;  %v351_v18 = vld [vmem:[#allocation2 + $0x2c0] sm:$0xff] }
  0x35   :  { %4006 = vmatprep.subr.bf16.mxu1 %v4005_v36  ;;  %v355_v19 = vld [vmem:[#allocation2 + $0x2e0] sm:$0xff]  ;;  %v3893_v20 = vpack.c.bf16 %v356_v13, %v352_v12  ;;  %v4021_v21 = vpack.c.bf16 %v358_v15, %v354_v14  ;;  %v353_v22 = vld [vmem:[#allocation2 + $0x2d0] sm:$0xff]  ;;  %v360_v24 = vld [vmem:[#allocation2 + $0x308] sm:$0xff] }
  0x36   :  { %v357_v23 = vld [vmem:[#allocation2 + $0x2f0] sm:$0xff]  ;;  %v364_v25 = vld [vmem:[#allocation2 + $0x328] sm:$0xff]  ;;  %v362_v26 = vld [vmem:[#allocation2 + $0x318] sm:$0xff]  ;;  %v3895_v28 = vpack.c.bf16 %v355_v19, %v351_v18 }
  0x37   :  { %3880 = vmatpush1.bf16.msra.mxu0 %v3879_v43  ;;  %v366_v27 = vld [vmem:[#allocation2 + $0x338] sm:$0xff]  ;;  %v4023_v29 = vpack.c.bf16 %v357_v23, %v353_v22  ;;  %v359_v30 = vld [vmem:[#allocation2 + $0x300] sm:$0xff]  ;;  %v3897_v32 = vpack.c.bf16 %v364_v25, %v360_v24  ;;  %v361_v34 = vld [vmem:[#allocation2 + $0x310] sm:$0xff] }
  0x38   :  { %4008 = vmatpush1.bf16.msra.mxu1 %v4007_v44  ;;  %3882 = vmatprep.subr.bf16.mxu0 %v3881_v47  ;;  %v363_v31 = vld [vmem:[#allocation2 + $0x320] sm:$0xff]  ;;  %v4025_v33 = vpack.c.bf16 %v366_v27, %v362_v26  ;;  %v365_v35 = vld [vmem:[#allocation2 + $0x330] sm:$0xff]  ;;  %v368_v36 = vld [vmem:[#allocation2 + $0x348] sm:$0xff] }
  0x39   :  { %4010 = vmatprep.subr.bf16.mxu1 %v4009_v48  ;;  %v372_v37 = vld [vmem:[#allocation2 + $0x368] sm:$0xff]  ;;  %v370_v38 = vld [vmem:[#allocation2 + $0x358] sm:$0xff]  ;;  %v3899_v40 = vpack.c.bf16 %v363_v31, %v359_v30  ;;  %v4027_v41 = vpack.c.bf16 %v365_v35, %v361_v34  ;;  %v367_v42 = vld [vmem:[#allocation2 + $0x340] sm:$0xff] }
  0x3a   :  { %v374_v39 = vld [vmem:[#allocation2 + $0x378] sm:$0xff]  ;;  %v371_v43 = vld [vmem:[#allocation2 + $0x360] sm:$0xff]  ;;  %v3901_v44 = vpack.c.bf16 %v372_v37, %v368_v36  ;;  %v369_v46 = vld [vmem:[#allocation2 + $0x350] sm:$0xff] }
  0x3b   :  { %3884 = vmatpush1.bf16.msra.mxu0 %v3883_v55  ;;  %v4029_v45 = vpack.c.bf16 %v374_v39, %v370_v38  ;;  %v373_v47 = vld [vmem:[#allocation2 + $0x370] sm:$0xff]  ;;  %v376_v48 = vld [vmem:[#allocation2 + $0x388] sm:$0xff]  ;;  %v378_v50 = vld [vmem:[#allocation2 + $0x398] sm:$0xff]  ;;  %v3903_v52 = vpack.c.bf16 %v371_v43, %v367_v42 }
  0x3c   :  { %4012 = vmatpush1.bf16.msra.mxu1 %v4011_v56  ;;  %3886 = vmatprep.subr.bf16.mxu0 %v3885_v59  ;;  %v380_v49 = vld [vmem:[#allocation2 + $0x3a8] sm:$0xff]  ;;  %v382_v51 = vld [vmem:[#allocation2 + $0x3b8] sm:$0xff]  ;;  %v4031_v53 = vpack.c.bf16 %v373_v47, %v369_v46  ;;  %v375_v54 = vld [vmem:[#allocation2 + $0x380] sm:$0xff] }
  0x3d   :  { %4014 = vmatprep.subr.bf16.mxu1 %v4013_v60  ;;  %v3905_v55 = vpack.c.bf16 %v380_v49, %v376_v48  ;;  %v4033_v56 = vpack.c.bf16 %v382_v51, %v378_v50  ;;  %v379_v57 = vld [vmem:[#allocation2 + $0x3a0] sm:$0xff]  ;;  %v377_v58 = vld [vmem:[#allocation2 + $0x390] sm:$0xff]  ;;  %v384_v62 = vld [vmem:[#allocation2 + $0x3c8] sm:$0xff] }
  0x3e   :  { %v381_v59 = vld [vmem:[#allocation2 + $0x3b0] sm:$0xff]  ;;  %v3907_v60 = vpack.c.bf16 %v379_v57, %v375_v54  ;;  %v388_v63 = vld [vmem:[#allocation2 + $0x3e8] sm:$0xff]  ;;  %v386_v1 = vld [vmem:[#allocation2 + $0x3d8] sm:$0xff] }
  0x3f   :  { %3888 = vmatpush1.bf16.msra.mxu0 %v3887_v4  ;;  %v4035_v61 = vpack.c.bf16 %v381_v59, %v377_v58  ;;  %v3909_v2 = vpack.c.bf16 %v388_v63, %v384_v62  ;;  %v390_v3 = vld [vmem:[#allocation2 + $0x3f8] sm:$0xff]  ;;  %v383_v4 = vld [vmem:[#allocation2 + $0x3c0] sm:$0xff]  ;;  %v392_v11 = vld [vmem:[#allocation2 + $0x408] sm:$0xff] }
  0x40   :  { %4016 = vmatpush1.bf16.msra.mxu1 %v4015_v5  ;;  %3890 = vmatprep.subr.bf16.mxu0 %v3889_v8  ;;  %v387_v5 = vld [vmem:[#allocation2 + $0x3e0] sm:$0xff]  ;;  %v4037_v6 = vpack.c.bf16 %v390_v3, %v386_v1  ;;  %v385_v8 = vld [vmem:[#allocation2 + $0x3d0] sm:$0xff]  ;;  %v396_v12 = vld [vmem:[#allocation2 + $0x428] sm:$0xff] }
  0x41   :  { %4018 = vmatprep.subr.bf16.mxu1 %v4017_v9  ;;  %v3911_v7 = vpack.c.bf16 %v387_v5, %v383_v4  ;;  %v389_v9 = vld [vmem:[#allocation2 + $0x3f0] sm:$0xff]  ;;  %v3913_v13 = vpack.c.bf16 %v396_v12, %v392_v11  ;;  %v394_v14 = vld [vmem:[#allocation2 + $0x418] sm:$0xff]  ;;  %v4596_v19 = vld [vmem:[%s7158_s3] sm:$0xff] }
  0x42   :  { %v4039_v10 = vpack.c.bf16 %v389_v9, %v385_v8  ;;  %v398_v15 = vld [vmem:[#allocation2 + $0x438] sm:$0xff]  ;;  %v391_v22 = vld [vmem:[#allocation2 + $0x400] sm:$0xff]  ;;  %v393_v24 = vld [vmem:[#allocation2 + $0x410] sm:$0xff] }
  0x43   :  { %3892 = vmatpush1.bf16.msra.mxu0 %v3891_v16  ;;  %v4041_v16 = vpack.c.bf16 %v398_v15, %v394_v14  ;;  %v395_v23 = vld [vmem:[#allocation2 + $0x420] sm:$0xff]  ;;  %v397_v25 = vld [vmem:[#allocation2 + $0x430] sm:$0xff]  ;;  %v402_v34 = vld [vmem:[#allocation2 + $0x458] sm:$0xff] }
  0x44   :  { %4020 = vmatpush1.bf16.msra.mxu1 %v4019_v17  ;;  %3894 = vmatprep.subr.bf16.mxu0 %v3893_v20  ;;  %v4579_v17 = vld [vmem:[%s7158_s3 + $0x8] sm:$0xff]  ;;  %v4608_v20 = vcombine.high %v4596_v19, %v4596_v19  ;;  %v406_v35 = vld [vmem:[#allocation2 + $0x478] sm:$0xff]  ;;  %v3915_v38 = vpack.c.bf16 %v395_v23, %v391_v22  ;;  %v4043_v39 = vpack.c.bf16 %v397_v25, %v393_v24  ;;  %v405_v46 = vld [vmem:[#allocation2 + $0x470] sm:$0xff] }
  0x45   :  { %4022 = vmatprep.subr.bf16.mxu1 %v4021_v21  ;;  %v4583_v18 = vcombine.high %v4579_v17, %v4579_v17  ;;  %v408_v47 = vld [vmem:[#allocation2 + $0x488] sm:$0xff]  ;;  %v4045_v50 = vpack.c.bf16 %v406_v35, %v402_v34  ;;  %v407_v59 = vld [vmem:[#allocation2 + $0x480] sm:$0xff]  ;;  %v409_v1 = vld [vmem:[#allocation2 + $0x490] sm:$0xff] }
  0x46   :  { %v412_v51 = vld [vmem:[#allocation2 + $0x4a8] sm:$0xff]  ;;  %v422_v8 = vld [vmem:[#allocation2 + $0x4f8] sm:$0xff]  ;;  %v415_v12 = vld [vmem:[#allocation2 + $0x4c0] sm:$0xff] }
  0x47   :  { %3896 = vmatpush1.bf16.msra.mxu0 %v3895_v28  ;;  %7373 = vst [vmem:[#allocation11_spill] sm:$0xff] %v4583_v18  ;;  %897 = vrot.lane.b32.xlu1 %v4583_v18, %s4464_s2  ;;  %v400_v28 = vld [vmem:[#allocation2 + $0x448] sm:$0xff]  ;;  %v3921_v62 = vpack.c.bf16 %v412_v51, %v408_v47  ;;  %v421_v22 = vld [vmem:[#allocation2 + $0x4f0] sm:$0xff]  ;;  %v427_v34 = vld [vmem:[#allocation2 + $0x520] sm:$0xff] }
  0x48   :  { %4024 = vmatpush1.bf16.msra.mxu1 %v4023_v29  ;;  %3898 = vmatprep.subr.bf16.mxu0 %v3897_v32  ;;  %v404_v29 = vld [vmem:[#allocation2 + $0x468] sm:$0xff] }
  0x49   :  { %4026 = vmatprep.subr.bf16.mxu1 %v4025_v33  ;;  %1045 = vrot.lane.b32.xlu0 %v4583_v18, %s4465_s29  ;;  %v416_v3 = vld [vmem:[#allocation2 + $0x4c8] sm:$0xff] }
  0x4a   :  { %v424_v23 = vld [vmem:[#allocation2 + $0x508] sm:$0xff] }
  0x4b   :  { %3900 = vmatpush1.bf16.msra.mxu0 %v3899_v40  ;;  %819 = vrot.lane.b32.xlu1 %v4583_v18, %s4466_s30  ;;  %v399_v40 = vld [vmem:[#allocation2 + $0x440] sm:$0xff]  ;;  %v428_v25 = vld [vmem:[#allocation2 + $0x528] sm:$0xff] }
  0x4c   :  { %4028 = vmatpush1.bf16.msra.mxu1 %v4027_v41  ;;  %3902 = vmatprep.subr.bf16.mxu0 %v3901_v44  ;;  %v403_v41 = vld [vmem:[#allocation2 + $0x460] sm:$0xff]  ;;  %v3917_v44 = vpack.c.bf16 %v404_v29, %v400_v28  ;;  %v3929_v35 = vpack.c.bf16 %v428_v25, %v424_v23  ;;  %v440_v51 = vld [vmem:[#allocation2 + $0x588] sm:$0xff] }
  0x4d   :  { %4030 = vmatprep.subr.bf16.mxu1 %v4029_v45  ;;  %971 = vrot.lane.b32.xlu0 %v4583_v18, %s4467_s14  ;;  %v401_v45 = vld [vmem:[#allocation2 + $0x450] sm:$0xff]  ;;  %v459_v23 = vld [vmem:[#allocation2 + $0x620] sm:$0xff] }
  0x4e   :  { %v4047_v58 = vpack.c.bf16 %v405_v46, %v401_v45  ;;  %v431_v45 = vld [vmem:[#allocation2 + $0x540] sm:$0xff] }
  0x4f   :  { %3904 = vmatpush1.bf16.msra.mxu0 %v3903_v52  ;;  %1127 = vrot.lane.b32.xlu1 %v4596_v19, %s4468_s17  ;;  %v410_v52 = vld [vmem:[#allocation2 + $0x498] sm:$0xff]  ;;  %v435_v46 = vld [vmem:[#allocation2 + $0x560] sm:$0xff] }
  0x50   :  { %4032 = vmatpush1.bf16.msra.mxu1 %v4031_v53  ;;  %3906 = vmatprep.subr.bf16.mxu0 %v3905_v55  ;;  %v414_v53 = vld [vmem:[#allocation2 + $0x4b8] sm:$0xff]  ;;  %v3919_v55 = vpack.c.bf16 %v403_v41, %v399_v40  ;;  %v436_v40 = vld [vmem:[#allocation2 + $0x568] sm:$0xff] }
  0x51   :  { %4034 = vmatprep.subr.bf16.mxu1 %v4033_v56  ;;  %1275 = vrot.lane.b32.xlu0 %v4596_v19, %s4469_s18  ;;  %v4049_v63 = vpack.c.bf16 %v414_v53, %v410_v52  ;;  %v434_v41 = vld [vmem:[#allocation2 + $0x558] sm:$0xff]  ;;  %v444_v52 = vld [vmem:[#allocation2 + $0x5a8] sm:$0xff] }
  0x52   :  { %v442_v53 = vld [vmem:[#allocation2 + $0x598] sm:$0xff] }
  0x53   :  { %3908 = vmatpush1.bf16.msra.mxu0 %v3907_v60  ;;  %1201 = vrot.lane.b32.xlu1 %v4596_v19, %s4470_s19  ;;  %v411_v60 = vld [vmem:[#allocation2 + $0x4a0] sm:$0xff] }
  0x54   :  { %4036 = vmatpush1.bf16.msra.mxu1 %v4035_v61  ;;  %3910 = vmatprep.subr.bf16.mxu0 %v3909_v2  ;;  %v413_v2 = vld [vmem:[#allocation2 + $0x4b0] sm:$0xff] }
  0x55   :  { %4038 = vmatprep.subr.bf16.mxu1 %v4037_v6  ;;  %908 = vrot.lane.b32.xlu0 %v4596_v19, %s4464_s2  ;;  %v420_v6 = vld [vmem:[#allocation2 + $0x4e8] sm:$0xff]  ;;  %v4051_v11 = vpack.c.bf16 %v413_v2, %v409_v1  ;;  %v450_v2 = vld [vmem:[#allocation2 + $0x5d8] sm:$0xff] }
  0x56   :  { %v3925_v15 = vpack.c.bf16 %v420_v6, %v416_v3  ;;  %v452_v1 = vld [vmem:[#allocation2 + $0x5e8] sm:$0xff]  ;;  %v454_v3 = vld [vmem:[#allocation2 + $0x5f8] sm:$0xff]  ;;  %v447_v6 = vld [vmem:[#allocation2 + $0x5c0] sm:$0xff] }
  0x57   :  { %3912 = vmatpush1.bf16.msra.mxu0 %v3911_v7  ;;  %910 = vrot.lane.b32.xlu1 %v4608_v20, %s4464_s2  ;;  %v418_v7 = vld [vmem:[#allocation2 + $0x4d8] sm:$0xff] }
  0x58   :  { %4040 = vmatpush1.bf16.msra.mxu1 %v4039_v10  ;;  %3914 = vmatprep.subr.bf16.mxu0 %v3913_v13  ;;  %v3923_v10 = vpack.c.bf16 %v411_v60, %v407_v59  ;;  %v419_v13 = vld [vmem:[#allocation2 + $0x4e0] sm:$0xff]  ;;  %v3937_v59 = vpack.c.bf16 %v444_v52, %v440_v51  ;;  %v473_v52 = vld [vmem:[#allocation2 + $0x690] sm:$0xff] }
  0x59   :  { %4042 = vmatprep.subr.bf16.mxu1 %v4041_v16  ;;  %1056 = vrot.lane.b32.xlu0 %v4596_v19, %s4465_s29  ;;  %v4053_v16 = vpack.c.bf16 %v422_v8, %v418_v7  ;;  %v451_v7 = vld [vmem:[#allocation2 + $0x5e0] sm:$0xff] }
  0x5b   :  { %1058 = vrot.lane.b32.xlu1 %v4608_v20, %s4465_s29 }
  0x5d   :  { %834 = vrot.lane.b32.xlu0 %v4596_v19, %s4466_s30 }
  0x5f   :  { %836 = vrot.lane.b32.xlu1 %v4608_v20, %s4466_s30 }
  0x61   :  { %982 = vrot.lane.b32.xlu0 %v4596_v19, %s4467_s14 }
  0x63   :  { %984 = vrot.lane.b32.xlu1 %v4608_v20, %s4467_s14 }
  0x65   :  { %1129 = vrot.lane.b32.xlu0 %v4608_v20, %s4468_s17 }
  0x67   :  { %1131 = vrot.lane.b32.xlu1 %v4579_v17, %s4468_s17 }
  0x69   :  { %1277 = vrot.lane.b32.xlu0 %v4608_v20, %s4469_s18 }
  0x6b   :  { %1279 = vrot.lane.b32.xlu1 %v4579_v17, %s4469_s18 }
  0x6d   :  { %1349 = vrot.lane.b32.xlu0 %v4596_v19, %s4471_s20 }
  0x6f   :  { %1203 = vrot.lane.b32.xlu1 %v4608_v20, %s4470_s19 }
  0x71   :  { %1205 = vrot.lane.b32.xlu0 %v4579_v17, %s4470_s19 }
  0x73   :  { %912 = vrot.lane.b32.xlu1 %v4579_v17, %s4464_s2 }
  0x75   :  { %1060 = vrot.lane.b32.xlu0 %v4579_v17, %s4465_s29 }
  0x96   :  { %v68_v21 = vpop.permute.xlu0 %67 }
  0xec   :  { %v153_v26 = vpop.f32.mrb[0].mxu0 }
  0xed   :  { %v224_v27 = vpop.f32.mrb[0].mxu1  ;;  %v154_v30 = vadd.f32 %v153_v26, %v68_v21  ;;  %v155_v32 = vpop.f32.mrb[1].mxu0  ;;  %v426_v26 = vld [vmem:[#allocation2 + $0x518] sm:$0xff] }
  0xee   :  { %v4642_v31 = vadd.f32 %v224_v27, %v68_v21  ;;  %v226_v33 = vpop.f32.mrb[1].mxu1  ;;  %v156_v36 = vadd.f32 %v155_v32, %v68_v21  ;;  %v430_v27 = vld [vmem:[#allocation2 + $0x538] sm:$0xff] }
  0xef   :  { %v227_v37 = vadd.f32 %v226_v33, %v68_v21  ;;  %v235_v42 = vsub.f32 %v154_v30, %v4596_v19  ;;  %v417_v21 = vld [vmem:[#allocation2 + $0x4d0] sm:$0xff]  ;;  %v423_v33 = vld [vmem:[#allocation2 + $0x500] sm:$0xff] }
  0xf0   :  { %v237_v43 = vsub.f32 %v4642_v31, %v4579_v17  ;;  %v236_v48 = vsub.f32 %v156_v36, %v4608_v20  ;;  %583 = vmatprep.mubr.f32.mxu0 %v156_v36  ;;  %725 = vmatprep.mubr.f32.mxu1 %v156_v36  ;;  %v4055_v32 = vpack.c.bf16 %v421_v22, %v417_v21  ;;  %v455_v22 = vld [vmem:[#allocation2 + $0x600] sm:$0xff] }
  0xf1   :  { %v238_v49 = vsub.f32 %v227_v37, %v4583_v18  ;;  %v239_v54 = vmul.f32 %v235_v42, %v235_v42  ;;  %584 = vmatmul.mubr.f32.vlgmr.msra.gmra.mrb[2].mxu0 %v154_v30  ;;  %726 = vmatmul.mubr.f32.vlgmr.msra.gmra.mrb[2].mxu1 %v154_v30  ;;  %v3927_v30 = vpack.c.bf16 %v419_v13, %v415_v12  ;;  %v438_v42 = vld [vmem:[#allocation2 + $0x578] sm:$0xff]  ;;  %v456_v12 = vld [vmem:[#allocation2 + $0x608] sm:$0xff] }
  0xf2   :  { %v241_v56 = vmul.f32 %v237_v43, %v237_v43  ;;  %v240_v57 = vmul.f32 %v236_v48, %v236_v48  ;;  %3916 = vmatpush1.bf16.msra.mxu0 %v3915_v38  ;;  %4044 = vmatpush1.bf16.msra.mxu1 %v4043_v39  ;;  %v4057_v36 = vpack.c.bf16 %v430_v27, %v426_v26  ;;  %v429_v38 = vld [vmem:[#allocation2 + $0x530] sm:$0xff]  ;;  %v432_v39 = vld [vmem:[#allocation2 + $0x548] sm:$0xff] }
  0xf3   :  { %v243_v61 = vsel %vm78_vm0, %v239_v54, 0.0  ;;  %654 = vmatprep.mubr.f32.mxu0 %v227_v37  ;;  %796 = vmatprep.mubr.f32.mxu1 %v227_v37  ;;  %v242_v5 = vmul.f32 %v238_v49, %v238_v49  ;;  %v425_v37 = vld [vmem:[#allocation2 + $0x510] sm:$0xff]  ;;  %v3931_v43 = vpack.c.bf16 %v427_v34, %v423_v33  ;;  %v3933_v47 = vpack.c.bf16 %v436_v40, %v432_v39  ;;  %v446_v54 = vld [vmem:[#allocation2 + $0x5b8] sm:$0xff]  ;;  %v460_v13 = vld [vmem:[#allocation2 + $0x628] sm:$0xff] }
  0xf4   :  { %v244_v4 = vsel %vm78_vm0, %v240_v57, 0.0  ;;  %3918 = vmatprep.subr.bf16.mxu0 %v3917_v44  ;;  %4046 = vmatprep.subr.bf16.mxu1 %v4045_v50  ;;  %v246_v14 = vsel %vm78_vm0, %v241_v56, 0.0  ;;  %v4059_v44 = vpack.c.bf16 %v429_v38, %v425_v37  ;;  %v4061_v48 = vpack.c.bf16 %v438_v42, %v434_v41  ;;  %v433_v49 = vld [vmem:[#allocation2 + $0x550] sm:$0xff]  ;;  %v439_v57 = vld [vmem:[#allocation2 + $0x580] sm:$0xff]  ;;  %v470_v33 = vld [vmem:[#allocation2 + $0x678] sm:$0xff] }
  0xf5   :  { %v245_v9 = vadd.f32 %v244_v4, %v243_v61  ;;  %v248_v28 = vsel %vm78_vm0, %v242_v5, 0.0  ;;  %v437_v50 = vld [vmem:[#allocation2 + $0x570] sm:$0xff]  ;;  %v4065_v60 = vpack.c.bf16 %v446_v54, %v442_v53  ;;  %v3947_v34 = vpack.c.bf16 %v459_v23, %v455_v22  ;;  %v467_v37 = vld [vmem:[#allocation2 + $0x660] sm:$0xff]  ;;  %v472_v42 = vld [vmem:[#allocation2 + $0x688] sm:$0xff] }
  0xf6   :  { %3920 = vmatpush1.bf16.msra.mxu0 %v3919_v55  ;;  %4048 = vmatpush1.bf16.msra.mxu1 %v4047_v58  ;;  %v3935_v55 = vpack.c.bf16 %v435_v46, %v431_v45  ;;  %v4063_v56 = vpack.c.bf16 %v437_v50, %v433_v49  ;;  %v443_v58 = vld [vmem:[#allocation2 + $0x5a0] sm:$0xff]  ;;  %v441_v61 = vld [vmem:[#allocation2 + $0x590] sm:$0xff]  ;;  %v478_v45 = vld [vmem:[#allocation2 + $0x6b8] sm:$0xff] }
  0xf7   :  { %3922 = vmatprep.subr.bf16.mxu0 %v3921_v62  ;;  %4050 = vmatprep.subr.bf16.mxu1 %v4049_v63  ;;  %v247_v24 = vadd.f32 %v246_v14, %v245_v9  ;;  %v445_v62 = vld [vmem:[#allocation2 + $0x5b0] sm:$0xff]  ;;  %v448_v63 = vld [vmem:[#allocation2 + $0x5c8] sm:$0xff]  ;;  %v3939_v4 = vpack.c.bf16 %v443_v58, %v439_v57  ;;  %v4069_v9 = vpack.c.bf16 %v454_v3, %v450_v2  ;;  %v458_v14 = vld [vmem:[#allocation2 + $0x618] sm:$0xff] }
  0xf8   :  { %v4067_v5 = vpack.c.bf16 %v445_v62, %v441_v61  ;;  %v3941_v8 = vpack.c.bf16 %v452_v1, %v448_v63  ;;  %v457_v26 = vld [vmem:[#allocation2 + $0x610] sm:$0xff]  ;;  %v475_v49 = vld [vmem:[#allocation2 + $0x6a0] sm:$0xff]  ;;  %v480_v54 = vld [vmem:[#allocation2 + $0x6c8] sm:$0xff] }
  0xf9   :  { %v4653_v29 = vadd.f32 %v248_v28, %v247_v24  ;;  %v3945_v24 = vpack.c.bf16 %v460_v13, %v456_v12  ;;  %v461_v27 = vld [vmem:[#allocation2 + $0x630] sm:$0xff]  ;;  %v464_v28 = vld [vmem:[#allocation2 + $0x648] sm:$0xff]  ;;  %v486_v57 = vld [vmem:[#allocation2 + $0x6f8] sm:$0xff] }
  0xfa   :  { %3924 = vmatpush1.bf16.msra.mxu0 %v3923_v10  ;;  %4052 = vmatpush1.bf16.msra.mxu1 %v4051_v11  ;;  %v449_v10 = vld [vmem:[#allocation2 + $0x5d0] sm:$0xff]  ;;  %v483_v61 = vld [vmem:[#allocation2 + $0x6e0] sm:$0xff]  ;;  %v488_v3 = vld [vmem:[#allocation2 + $0x708] sm:$0xff] }
  0xfb   :  { %7374 = vst [vmem:[#allocation12_spill] sm:$0xff] %v4653_v29  ;;  %3926 = vmatprep.subr.bf16.mxu0 %v3925_v15  ;;  %4054 = vmatprep.subr.bf16.mxu1 %v4053_v16  ;;  %v453_v11 = vld [vmem:[#allocation2 + $0x5f0] sm:$0xff]  ;;  %v462_v15 = vld [vmem:[#allocation2 + $0x638] sm:$0xff]  ;;  %v3943_v16 = vpack.c.bf16 %v451_v7, %v447_v6 }
  0xfc   :  { %v4071_v21 = vpack.c.bf16 %v453_v11, %v449_v10  ;;  %v4073_v25 = vpack.c.bf16 %v462_v15, %v458_v14  ;;  %v465_v40 = vld [vmem:[#allocation2 + $0x650] sm:$0xff]  ;;  %v494_v6 = vld [vmem:[#allocation2 + $0x738] sm:$0xff]  ;;  %v491_v10 = vld [vmem:[#allocation2 + $0x720] sm:$0xff] }
  0xfd   :  { %v469_v41 = vld [vmem:[#allocation2 + $0x670] sm:$0xff]  ;;  %v496_v15 = vld [vmem:[#allocation2 + $0x748] sm:$0xff]  ;;  %v502_v22 = vld [vmem:[#allocation2 + $0x778] sm:$0xff] }
  0xfe   :  { %3928 = vmatpush1.bf16.msra.mxu0 %v3927_v30  ;;  %4056 = vmatpush1.bf16.msra.mxu1 %v4055_v32  ;;  %v468_v30 = vld [vmem:[#allocation2 + $0x668] sm:$0xff]  ;;  %v466_v32 = vld [vmem:[#allocation2 + $0x658] sm:$0xff]  ;;  %v477_v53 = vld [vmem:[#allocation2 + $0x6b0] sm:$0xff] }
  0xff   :  { %3930 = vmatprep.subr.bf16.mxu0 %v3929_v35  ;;  %4058 = vmatprep.subr.bf16.mxu1 %v4057_v36  ;;  %v4075_v35 = vpack.c.bf16 %v461_v27, %v457_v26  ;;  %v463_v36 = vld [vmem:[#allocation2 + $0x640] sm:$0xff]  ;;  %v3949_v38 = vpack.c.bf16 %v468_v30, %v464_v28  ;;  %v4077_v39 = vpack.c.bf16 %v470_v33, %v466_v32  ;;  %v481_v1 = vld [vmem:[#allocation2 + $0x6d0] sm:$0xff]  ;;  %v504_v33 = vld [vmem:[#allocation2 + $0x788] sm:$0xff] }
 0x100   :  { %v3951_v46 = vpack.c.bf16 %v467_v37, %v463_v36  ;;  %v485_v2 = vld [vmem:[#allocation2 + $0x6f0] sm:$0xff]  ;;  %v499_v26 = vld [vmem:[#allocation2 + $0x760] sm:$0xff]  ;;  %v510_v36 = vld [vmem:[#allocation2 + $0x7b8] sm:$0xff] }
 0x101   :  { %v489_v13 = vld [vmem:[#allocation2 + $0x710] sm:$0xff] }
 0x102   :  { %3932 = vmatpush1.bf16.msra.mxu0 %v3931_v43  ;;  %4060 = vmatpush1.bf16.msra.mxu1 %v4059_v44  ;;  %v476_v43 = vld [vmem:[#allocation2 + $0x6a8] sm:$0xff]  ;;  %v474_v44 = vld [vmem:[#allocation2 + $0x698] sm:$0xff]  ;;  %v493_v14 = vld [vmem:[#allocation2 + $0x730] sm:$0xff] }
 0x103   :  { %3934 = vmatprep.subr.bf16.mxu0 %v3933_v47  ;;  %4062 = vmatprep.subr.bf16.mxu1 %v4061_v48  ;;  %v4079_v47 = vpack.c.bf16 %v469_v41, %v465_v40  ;;  %v471_v48 = vld [vmem:[#allocation2 + $0x680] sm:$0xff]  ;;  %v3953_v50 = vpack.c.bf16 %v476_v43, %v472_v42  ;;  %v4081_v51 = vpack.c.bf16 %v478_v45, %v474_v44  ;;  %v497_v30 = vld [vmem:[#allocation2 + $0x750] sm:$0xff]  ;;  %v512_v45 = vld [vmem:[#allocation2 + $0x7c8] sm:$0xff] }
 0x104   :  { %v3955_v58 = vpack.c.bf16 %v475_v49, %v471_v48  ;;  %v501_v32 = vld [vmem:[#allocation2 + $0x770] sm:$0xff]  ;;  %v507_v40 = vld [vmem:[#allocation2 + $0x7a0] sm:$0xff]  ;;  %v518_v48 = vld [vmem:[#allocation2 + $0x7f8] sm:$0xff] }
 0x105   :  { %v505_v43 = vld [vmem:[#allocation2 + $0x790] sm:$0xff] }
 0x106   :  { %3936 = vmatpush1.bf16.msra.mxu0 %v3935_v55  ;;  %4064 = vmatpush1.bf16.msra.mxu1 %v4063_v56  ;;  %v484_v55 = vld [vmem:[#allocation2 + $0x6e8] sm:$0xff]  ;;  %v482_v56 = vld [vmem:[#allocation2 + $0x6d8] sm:$0xff]  ;;  %v509_v44 = vld [vmem:[#allocation2 + $0x7b0] sm:$0xff] }
 0x107   :  { %3938 = vmatprep.subr.bf16.mxu0 %v3937_v59  ;;  %4066 = vmatprep.subr.bf16.mxu1 %v4065_v60  ;;  %v4083_v59 = vpack.c.bf16 %v477_v53, %v473_v52  ;;  %v479_v60 = vld [vmem:[#allocation2 + $0x6c0] sm:$0xff]  ;;  %v3957_v62 = vpack.c.bf16 %v484_v55, %v480_v54  ;;  %v4085_v63 = vpack.c.bf16 %v486_v57, %v482_v56  ;;  %v513_v55 = vld [vmem:[#allocation2 + $0x7d0] sm:$0xff] }
 0x108   :  { %v3959_v7 = vpack.c.bf16 %v483_v61, %v479_v60  ;;  %v515_v54 = vld [vmem:[#allocation2 + $0x7e0] sm:$0xff]  ;;  %v517_v56 = vld [vmem:[#allocation2 + $0x7f0] sm:$0xff] }
 0x10a   :  { %3940 = vmatpush1.bf16.msra.mxu0 %v3939_v4  ;;  %4068 = vmatpush1.bf16.msra.mxu1 %v4067_v5  ;;  %v492_v4 = vld [vmem:[#allocation2 + $0x728] sm:$0xff]  ;;  %v490_v5 = vld [vmem:[#allocation2 + $0x718] sm:$0xff] }
 0x10b   :  { %3942 = vmatprep.subr.bf16.mxu0 %v3941_v8  ;;  %4070 = vmatprep.subr.bf16.mxu1 %v4069_v9  ;;  %v4087_v8 = vpack.c.bf16 %v485_v2, %v481_v1  ;;  %v487_v9 = vld [vmem:[#allocation2 + $0x700] sm:$0xff]  ;;  %v3961_v11 = vpack.c.bf16 %v492_v4, %v488_v3  ;;  %v4089_v12 = vpack.c.bf16 %v494_v6, %v490_v5 }
 0x10c   :  { %v3963_v23 = vpack.c.bf16 %v491_v10, %v487_v9 }
 0x10e   :  { %3944 = vmatpush1.bf16.msra.mxu0 %v3943_v16  ;;  %4072 = vmatpush1.bf16.msra.mxu1 %v4071_v21  ;;  %v500_v16 = vld [vmem:[#allocation2 + $0x768] sm:$0xff]  ;;  %v498_v21 = vld [vmem:[#allocation2 + $0x758] sm:$0xff] }
 0x10f   :  { %3946 = vmatprep.subr.bf16.mxu0 %v3945_v24  ;;  %4074 = vmatprep.subr.bf16.mxu1 %v4073_v25  ;;  %v4091_v24 = vpack.c.bf16 %v493_v14, %v489_v13  ;;  %v495_v25 = vld [vmem:[#allocation2 + $0x740] sm:$0xff]  ;;  %v3965_v27 = vpack.c.bf16 %v500_v16, %v496_v15  ;;  %v4093_v28 = vpack.c.bf16 %v502_v22, %v498_v21 }
 0x110   :  { %v3967_v37 = vpack.c.bf16 %v499_v26, %v495_v25  ;;  %v857_v25 = vlaneseq }
 0x112   :  { %3948 = vmatpush1.bf16.msra.mxu0 %v3947_v34  ;;  %4076 = vmatpush1.bf16.msra.mxu1 %v4075_v35  ;;  %v508_v34 = vld [vmem:[#allocation2 + $0x7a8] sm:$0xff]  ;;  %v506_v35 = vld [vmem:[#allocation2 + $0x798] sm:$0xff] }
 0x113   :  { %3950 = vmatprep.subr.bf16.mxu0 %v3949_v38  ;;  %4078 = vmatprep.subr.bf16.mxu1 %v4077_v39  ;;  %v4095_v38 = vpack.c.bf16 %v501_v32, %v497_v30  ;;  %v503_v39 = vld [vmem:[#allocation2 + $0x780] sm:$0xff]  ;;  %v3969_v41 = vpack.c.bf16 %v508_v34, %v504_v33  ;;  %v4097_v42 = vpack.c.bf16 %v510_v36, %v506_v35  ;;  %v808_v33 = vld [vmem:[%s7160_s5 + $0x28] sm:$0xff] }
 0x114   :  { %v3971_v49 = vpack.c.bf16 %v507_v40, %v503_v39 }
 0x116   :  { %3952 = vmatpush1.bf16.msra.mxu0 %v3951_v46  ;;  %4080 = vmatpush1.bf16.msra.mxu1 %v4079_v47  ;;  %v516_v46 = vld [vmem:[#allocation2 + $0x7e8] sm:$0xff]  ;;  %v514_v47 = vld [vmem:[#allocation2 + $0x7d8] sm:$0xff] }
 0x117   :  { %3954 = vmatprep.subr.bf16.mxu0 %v3953_v50  ;;  %4082 = vmatprep.subr.bf16.mxu1 %v4081_v51  ;;  %v4099_v50 = vpack.c.bf16 %v509_v44, %v505_v43  ;;  %v511_v51 = vld [vmem:[#allocation2 + $0x7c0] sm:$0xff]  ;;  %v3973_v52 = vpack.c.bf16 %v516_v46, %v512_v45  ;;  %v4101_v53 = vpack.c.bf16 %v518_v48, %v514_v47 }
 0x118   :  { %v3975_v57 = vpack.c.bf16 %v515_v54, %v511_v51  ;;  %v4832_v47 = vld [vmem:[%s7160_s5 + $0x20] sm:$0xff] }
 0x11a   :  { %3956 = vmatpush1.bf16.msra.mxu0 %v3955_v58  ;;  %4084 = vmatpush1.bf16.msra.mxu1 %v4083_v59  ;;  %v4103_v58 = vpack.c.bf16 %v517_v56, %v513_v55 }
 0x11b   :  { %3958 = vmatprep.subr.bf16.mxu0 %v3957_v62  ;;  %4086 = vmatprep.subr.bf16.mxu1 %v4085_v63  ;;  %v4713_v63 = vpop.permute.xlu0 %1045 }
 0x11e   :  { %3960 = vmatpush1.bf16.msra.mxu0 %v3959_v7  ;;  %4088 = vmatpush1.bf16.msra.mxu1 %v4087_v8 }
 0x11f   :  { %3962 = vmatprep.subr.bf16.mxu0 %v3961_v11  ;;  %4090 = vmatprep.subr.bf16.mxu1 %v4089_v12  ;;  %v4725_v2 = vpop.permute.xlu0 %971  ;;  %v1544_v11 = vld [vmem:[%s7162_s7] sm:$0xff] }
 0x120   :  { %7380 = vst [vmem:[#allocation18_spill] sm:$0xff] %v4725_v2 }
 0x122   :  { %3964 = vmatpush1.bf16.msra.mxu0 %v3963_v23  ;;  %4092 = vmatpush1.bf16.msra.mxu1 %v4091_v24 }
 0x123   :  { %3966 = vmatprep.subr.bf16.mxu0 %v3965_v27  ;;  %4094 = vmatprep.subr.bf16.mxu1 %v4093_v28  ;;  %v4733_v4 = vpop.permute.xlu0 %1275  ;;  %v858_v28 = vshrl.u32 %v857_v25, 7 }
 0x125   :  { %v4799_v34 = vsub.s32 1, %v858_v28  ;;  %v4821_v43 = vsub.s32 2, %v858_v28  ;;  %v4823_v44 = vsub.s32 5, %v858_v28  ;;  %v4849_v54 = vsub.s32 7, %v858_v28 }
 0x126   :  { %3968 = vmatpush1.bf16.msra.mxu0 %v3967_v37  ;;  %4096 = vmatpush1.bf16.msra.mxu1 %v4095_v38  ;;  %v4805_v37 = vsub.s32 3, %v858_v28 }
 0x127   :  { %3970 = vmatprep.subr.bf16.mxu0 %v3969_v41  ;;  %4098 = vmatprep.subr.bf16.mxu1 %v4097_v42  ;;  %v4745_v6 = vpop.permute.xlu0 %908  ;;  %v4808_v38 = vrot.slane %v808_v33, %v4799_v34  ;;  %v4816_v41 = vsub.s32 0, %v858_v28  ;;  %v4861_v25 = vrot.slane %v808_v33, %v4823_v44 }
 0x128   :  { %v4814_v40 = vrot.slane %v808_v33, %v4805_v37 }
 0x129   :  { %7388 = vst [vmem:[#allocation26_spill] sm:$0xff] %v4808_v38  ;;  %7393 = vst [vmem:[#allocation31_spill] sm:$0xff] %v4861_v25 }
 0x12a   :  { %3972 = vmatpush1.bf16.msra.mxu0 %v3971_v49  ;;  %4100 = vmatpush1.bf16.msra.mxu1 %v4099_v50  ;;  %7389 = vst [vmem:[#allocation27_spill] sm:$0xff] %v4814_v40  ;;  %v4837_v50 = vrot.slane %v808_v33, %v4816_v41 }
 0x12b   :  { %3974 = vmatprep.subr.bf16.mxu0 %v3973_v52  ;;  %4102 = vmatprep.subr.bf16.mxu1 %v4101_v53  ;;  %v4753_v8 = vpop.permute.xlu0 %1056  ;;  %v4843_v52 = vrot.slane %v808_v33, %v4821_v43  ;;  %v4847_v53 = vrot.slane %v4832_v47, %v4823_v44 }
 0x12c   :  { %7390 = vst [vmem:[#allocation28_spill] sm:$0xff] %v4837_v50 }
 0x12d   :  { %7391 = vst [vmem:[#allocation29_spill] sm:$0xff] %v4843_v52  ;;  %7392 = vst [vmem:[#allocation30_spill] sm:$0xff] %v4847_v53 }
 0x12e   :  { %3976 = vmatpush1.bf16.msra.mxu0 %v3975_v57  ;;  %4104 = vmatpush1.bf16.msra.mxu1 %v4103_v58 }
 0x12f   :  { %v4765_v10 = vpop.permute.xlu0 %834 }
 0x131   :  { %655 = vmatmul.mubr.f32.vlgmr.msra.gmra.mrb[2].mxu0 %v4642_v31  ;;  %797 = vmatmul.mubr.f32.vlgmr.msra.gmra.mrb[2].mxu1 %v4642_v31  ;;  %v4711_v31 = vpop.permute.xlu1 %897 }
 0x132   :  { %1642 = vmatprep.mubr.f32.mxu0 %v7169_v0  ;;  %1713 = vmatprep.mubr.f32.mxu1 %v7169_v0 }
 0x135   :  { %v4723_v1 = vpop.permute.xlu1 %819 }
 0x136   :  { %7379 = vst [vmem:[#allocation17_spill] sm:$0xff] %v4723_v1 }
 0x139   :  { %v4731_v3 = vpop.permute.xlu1 %1127 }
 0x13d   :  { %v4743_v5 = vpop.permute.xlu1 %1201 }
 0x13e   :  { %7381 = vst [vmem:[#allocation19_spill] sm:$0xff] %v4743_v5 }
 0x141   :  { %v4751_v7 = vpop.permute.xlu1 %910 }
 0x142   :  { %v919_v39 = vsel %vm914_vm2, %v4745_v6, %v4751_v7 }
 0x143   :  { %v968_v48 = vmul.f32 %v4808_v38, %v919_v39  ;;  %v4866_v39 = vld [vmem:[%s7160_s5 + $0x30] sm:$0xff] }
 0x145   :  { %v4763_v9 = vpop.permute.xlu1 %1058 }
 0x146   :  { %v1067_v42 = vsel %vm1062_vm3, %v4753_v8, %v4763_v9 }
 0x147   :  { %v1116_v49 = vmul.f32 %v4814_v40, %v1067_v42  ;;  %v4871_v42 = vld [vmem:[%s7160_s5 + $0x38] sm:$0xff]  ;;  %v4877_v40 = vrot.slane %v808_v33, %v4849_v54 }
 0x149   :  { %v4774_v12 = vpop.permute.xlu1 %836  ;;  %v1452_v0 = vrot.slane %v1116_v49, 4  ;;  %7394 = vst [vmem:[#allocation32_spill] sm:$0xff] %v4877_v40 }
 0x14a   :  { %7382 = vst [vmem:[#allocation20_spill] sm:$0xff] %v4774_v12  ;;  %v845_v51 = vsel %vm840_vm4, %v4765_v10, %v4774_v12 }
 0x14b   :  { %v894_v29 = vmul.f32 %v4837_v50, %v845_v51  ;;  %v4893_v50 = vsub.s32 6, %v858_v28 }
 0x14d   :  { %v4778_v13 = vpop.permute.xlu1 %984 }
 0x14e   :  { %7383 = vst [vmem:[#allocation21_spill] sm:$0xff] %v4778_v13 }
 0x151   :  { %v4780_v15 = vpop.permute.xlu1 %1131 }
 0x152   :  { %7384 = vst [vmem:[#allocation22_spill] sm:$0xff] %v4780_v15 }
 0x155   :  { %v4782_v21 = vpop.permute.xlu1 %1279 }
 0x156   :  { %7385 = vst [vmem:[#allocation23_spill] sm:$0xff] %v4782_v21 }
 0x159   :  { %v4786_v23 = vpop.permute.xlu1 %1203 }
 0x15d   :  { %v913_v26 = vpop.permute.xlu1 %912 }
 0x204   :  { %v4659_v59 = vpop.f32.mrb[2].mxu0  ;;  %v4661_v60 = vpop.f32.mrb[2].mxu1 }
 0x205   :  { %7375 = vst [vmem:[#allocation13_spill] sm:$0xff] %v4659_v59  ;;  %7376 = vst [vmem:[#allocation14_spill] sm:$0xff] %v4661_v60  ;;  %v4663_v61 = vpop.f32.mrb[3].mxu1  ;;  %1048 = vrot.lane.b32.xlu1 %v4659_v59, %s4465_s29  ;;  %900 = vrot.lane.b32.xlu0 %v4659_v59, %s4464_s2  ;;  %v4669_v62 = vpop.f32.mrb[3].mxu0 }
 0x206   :  { %7377 = vst [vmem:[#allocation15_spill] sm:$0xff] %v4663_v61  ;;  %7378 = vst [vmem:[#allocation16_spill] sm:$0xff] %v4669_v62 }
 0x209   :  { %1052 = vrot.lane.b32.xlu1 %v4661_v60, %s4465_s29  ;;  %904 = vrot.lane.b32.xlu0 %v4661_v60, %s4464_s2 }
 0x20d   :  { %826 = vrot.lane.b32.xlu1 %v4659_v59, %s4466_s30  ;;  %830 = vrot.lane.b32.xlu0 %v4661_v60, %s4466_s30 }
 0x211   :  { %974 = vrot.lane.b32.xlu1 %v4659_v59, %s4467_s14  ;;  %1123 = vrot.lane.b32.xlu0 %v4661_v60, %s4468_s17 }
 0x215   :  { %978 = vrot.lane.b32.xlu1 %v4661_v60, %s4467_s14  ;;  %1271 = vrot.lane.b32.xlu0 %v4661_v60, %s4469_s18 }
 0x219   :  { %1119 = vrot.lane.b32.xlu1 %v4659_v59, %s4468_s17  ;;  %1267 = vrot.lane.b32.xlu0 %v4659_v59, %s4469_s18 }
 0x21d   :  { %1193 = vrot.lane.b32.xlu1 %v4659_v59, %s4470_s19  ;;  %1197 = vrot.lane.b32.xlu0 %v4661_v60, %s4470_s19 }
 0x221   :  { %1345 = vrot.lane.b32.xlu1 %v4661_v60, %s4471_s20  ;;  %1341 = vrot.lane.b32.xlu0 %v4659_v59, %s4471_s20 }
 0x225   :  { %1050 = vrot.lane.b32.xlu0 %v4669_v62, %s4465_s29  ;;  %902 = vrot.lane.b32.xlu1 %v4669_v62, %s4464_s2 }
 0x229   :  { %1054 = vrot.lane.b32.xlu0 %v4663_v61, %s4465_s29  ;;  %906 = vrot.lane.b32.xlu1 %v4663_v61, %s4464_s2 }
 0x22d   :  { %828 = vrot.lane.b32.xlu0 %v4669_v62, %s4466_s30  ;;  %832 = vrot.lane.b32.xlu1 %v4663_v61, %s4466_s30 }
 0x231   :  { %976 = vrot.lane.b32.xlu0 %v4669_v62, %s4467_s14  ;;  %1121 = vrot.lane.b32.xlu1 %v4669_v62, %s4468_s17 }
 0x235   :  { %980 = vrot.lane.b32.xlu0 %v4663_v61, %s4467_s14  ;;  %1269 = vrot.lane.b32.xlu1 %v4669_v62, %s4469_s18 }
 0x239   :  { %1125 = vrot.lane.b32.xlu0 %v4663_v61, %s4468_s17  ;;  %1273 = vrot.lane.b32.xlu1 %v4663_v61, %s4469_s18 }
 0x23d   :  { %1199 = vrot.lane.b32.xlu0 %v4663_v61, %s4470_s19  ;;  %1195 = vrot.lane.b32.xlu1 %v4669_v62, %s4470_s19 }
 0x241   :  { %1343 = vrot.lane.b32.xlu0 %v4669_v62, %s4471_s20  ;;  %838 = vrot.lane.b32.xlu1 %v4579_v17, %s4466_s30 }
 0x245   :  { %986 = vrot.lane.b32.xlu0 %v4579_v17, %s4467_s14  ;;  %1347 = vrot.lane.b32.xlu1 %v4663_v61, %s4471_s20 }
 0x249   :  { %1281 = vrot.lane.b32.xlu0 %v4583_v18, %s4469_s18  ;;  %1133 = vrot.lane.b32.xlu1 %v4583_v18, %s4468_s17 }
 0x24d   :  { %1353 = vrot.lane.b32.xlu0 %v4579_v17, %s4471_s20  ;;  %1351 = vrot.lane.b32.xlu1 %v4608_v20, %s4471_s20  ;;  %v4776_v17 = vpop.permute.xlu0 %982 }
 0x24e   :  { %v993_v57 = vsel %vm988_vm5, %v4776_v17, %v4778_v13 }
 0x24f   :  { %v1042_v38 = vmul.f32 %v4843_v52, %v993_v57  ;;  %v4897_v57 = vrot.slane %v4866_v39, %v4799_v34  ;;  %v920_v52 = vsel %vm914_vm2, %v4751_v7, %v913_v26 }
 0x251   :  { %1355 = vrot.lane.b32.xlu0 %v4583_v18, %s4471_s20  ;;  %1207 = vrot.lane.b32.xlu1 %v4583_v18, %s4470_s19  ;;  %v1130_v14 = vpop.permute.xlu0 %1129  ;;  %7396 = vst [vmem:[#allocation34_spill] sm:$0xff] %v4897_v57 }
 0x252   :  { %v1140_v58 = vsel %vm1135_vm6, %v4731_v3, %v1130_v14 }
 0x253   :  { %v1189_v18 = vmul.f32 %v4847_v53, %v1140_v58  ;;  %v4901_v58 = vrot.slane %v4871_v42, %v4799_v34 }
 0x255   :  { %1547 = vperm.xlu1 %4373, %v1544_v11   ;;  %v1278_v16 = vpop.permute.xlu0 %1277  ;;  %v1428_v11 = vrot.slane %v968_v48, 4  ;;  %v1141_v48 = vsel %vm1135_vm6, %v1130_v14, %v4780_v15  ;;  %7397 = vst [vmem:[#allocation35_spill] sm:$0xff] %v4901_v58  ;;  %v4914_v15 = vrot.slane %v808_v33, %v4893_v50  ;;  %v4934_v33 = vmul.f32 %v4897_v57, %v920_v52  ;;  %v4956_v57 = vld [vmem:[%s7160_s5] sm:$0xff] }
 0x256   :  { %v1289_v13 = vsel %vm1283_vm7, %v1278_v16, %v4782_v21  ;;  %v1288_v14 = vsel %vm1283_vm7, %v4733_v4, %v1278_v16  ;;  %v1190_v53 = vmul.f32 %v4861_v25, %v1141_v48  ;;  %v921_v21 = vsel %vm914_vm2, %v913_v26, %v4711_v31 }
 0x257   :  { %v4910_v16 = vrot.slane %v4866_v39, %v4805_v37  ;;  %v1338_v28 = vmul.f32 %v4877_v40, %v1289_v13  ;;  %7399 = vst [vmem:[#allocation37_spill] sm:$0xff] %v4914_v15  ;;  %v1475_v25 = vrot.slane %v1189_v18, 4  ;;  %v4931_v13 = vrot.slane %v4832_v47, %v4893_v50  ;;  %7402 = vst [vmem:[#allocation40_spill] sm:$0xff] %v4934_v33 }
 0x258   :  { %v4937_v18 = vmul.f32 %v4901_v58, %v921_v21  ;;  %v1214_v40 = vsel %vm1209_vm8, %v4743_v5, %v4786_v23 }
 0x259   :  { %v4784_v22 = vpop.permute.xlu0 %1349  ;;  %7398 = vst [vmem:[#allocation36_spill] sm:$0xff] %v4910_v16  ;;  %7401 = vst [vmem:[#allocation39_spill] sm:$0xff] %v4931_v13  ;;  %v1500_v52 = vrot.slane %v1338_v28, 4  ;;  %v4970_v28 = vmul.f32 %v4931_v13, %v1214_v40  ;;  %v4986_v40 = vrot.slane %v4956_v57, %v4805_v37  ;;  %v4995_v58 = vsel %vm78_vm0, %v4596_v19, %v1475_v25 }
 0x25a   :  { %7386 = vst [vmem:[#allocation24_spill] sm:$0xff] %v4784_v22  ;;  %v4883_v22 = vrot.slane %v4832_v47, %v4849_v54  ;;  %7403 = vst [vmem:[#allocation41_spill] sm:$0xff] %v4937_v18 }
 0x25b   :  { %7410 = vst [vmem:[#allocation48_spill] sm:$0xff] %v4970_v28  ;;  %7412 = vst [vmem:[#allocation50_spill] sm:$0xff] %v4986_v40 }
 0x25c   :  { %7395 = vst [vmem:[#allocation33_spill] sm:$0xff] %v4883_v22  ;;  %v4920_v7 = vmul.f32 %v4883_v22, %v1288_v14  ;;  %v1476_v14 = vrot.slane %v1190_v53, 4  ;;  %v4959_v53 = vsel %vm78_vm0, %v894_v29, %v1428_v11  ;;  %v805_v29 = vld [vmem:[%s7160_s5 + $0x10] sm:$0xff]  ;;  %v806_v11 = vld [vmem:[%s7160_s5 + $0x18] sm:$0xff]  ;;  %7413 = vst [vmem:[#allocation51_spill] sm:$0xff] %v4995_v58 }
 0x25d   :  { %v4788_v24 = vpop.permute.xlu0 %1205  ;;  %7406 = vst [vmem:[#allocation44_spill] sm:$0xff] %v4959_v53  ;;  %v5024_v58 = vrot.slane %v805_v29, %v4805_v37  ;;  %v5040_v28 = vrot.slane %v806_v11, %v4799_v34  ;;  %v5053_v53 = vrot.slane %v805_v29, %v4816_v41  ;;  %v5083_v12 = vrot.slane %v806_v11, %v4821_v43 }
 0x25e   :  { %7387 = vst [vmem:[#allocation25_spill] sm:$0xff] %v4788_v24  ;;  %7400 = vst [vmem:[#allocation38_spill] sm:$0xff] %v4920_v7  ;;  %v1215_v26 = vsel %vm1209_vm8, %v4786_v23, %v4788_v24  ;;  %v4962_v23 = vsel %vm78_vm0, %v1042_v38, %v1452_v0  ;;  %v804_v0 = vld [vmem:[%s7160_s5 + $0x8] sm:$0xff]  ;;  %v5007_v38 = vsel %vm78_vm0, %v4608_v20, %v1476_v14 }
 0x25f   :  { %v1264_v21 = vmul.f32 %v4914_v15, %v1215_v26  ;;  %7407 = vst [vmem:[#allocation45_spill] sm:$0xff] %v4962_v23  ;;  %v4999_v26 = vrot.slane %v4956_v57, %v4799_v34  ;;  %v5003_v15 = vrot.slane %v4956_v57, %v4816_v41  ;;  %7416 = vst [vmem:[#allocation54_spill] sm:$0xff] %v5007_v38 }
 0x260   :  { %7422 = vst [vmem:[#allocation60_spill] sm:$0xff] %v5024_v58  ;;  %v5027_v20 = vrot.slane %v804_v0, %v4799_v34  ;;  %v5030_v14 = vrot.slane %v805_v29, %v4799_v34  ;;  %7427 = vst [vmem:[#allocation65_spill] sm:$0xff] %v5040_v28  ;;  %v5050_v38 = vrot.slane %v804_v0, %v4816_v41 }
 0x261   :  { %v4790_v27 = vpop.permute.xlu0 %1060  ;;  %7414 = vst [vmem:[#allocation52_spill] sm:$0xff] %v4999_v26  ;;  %7415 = vst [vmem:[#allocation53_spill] sm:$0xff] %v5003_v15  ;;  %v5010_v13 = vsel %vm78_vm0, %v1264_v21, %v1500_v52  ;;  %v5033_v52 = vrot.slane %v806_v11, %v4805_v37  ;;  %v5037_v21 = vrot.slane %v4832_v47, %v4805_v37 }
 0x262   :  { %v1068_v48 = vsel %vm1062_vm3, %v4763_v9, %v4790_v27  ;;  %v4941_v9 = vrot.slane %v4871_v42, %v4805_v37  ;;  %v1069_v22 = vsel %vm1062_vm3, %v4790_v27, %v4713_v63  ;;  %7417 = vst [vmem:[#allocation55_spill] sm:$0xff] %v5010_v13  ;;  %7423 = vst [vmem:[#allocation61_spill] sm:$0xff] %v5027_v20 }
 0x263   :  { %v4950_v24 = vmul.f32 %v4910_v16, %v1068_v48  ;;  %7424 = vst [vmem:[#allocation62_spill] sm:$0xff] %v5030_v14  ;;  %7425 = vst [vmem:[#allocation63_spill] sm:$0xff] %v5033_v52  ;;  %v5047_v13 = vrot.slane %v4832_v47, %v4799_v34  ;;  %v5060_v23 = vrot.slane %v4832_v47, %v4816_v41 }
 0x264   :  { %7404 = vst [vmem:[#allocation42_spill] sm:$0xff] %v4941_v9  ;;  %v4975_v16 = vmul.f32 %v4941_v9, %v1069_v22  ;;  %v5014_v22 = vrot.slane %v4956_v57, %v4821_v43  ;;  %v5021_v9 = vrot.slane %v804_v0, %v4805_v37  ;;  %7426 = vst [vmem:[#allocation64_spill] sm:$0xff] %v5037_v21 }
 0x265   :  { %7405 = vst [vmem:[#allocation43_spill] sm:$0xff] %v4950_v24  ;;  %7428 = vst [vmem:[#allocation66_spill] sm:$0xff] %v5047_v13  ;;  %v5056_v37 = vrot.slane %v806_v11, %v4816_v41  ;;  %v5063_v33 = vrot.slane %v804_v0, %v4821_v43  ;;  %v5079_v61 = vrot.slane %v804_v0, %v4823_v44 }
 0x266   :  { %7411 = vst [vmem:[#allocation49_spill] sm:$0xff] %v4975_v16  ;;  %7418 = vst [vmem:[#allocation56_spill] sm:$0xff] %v5014_v22 }
 0x267   :  { %7421 = vst [vmem:[#allocation59_spill] sm:$0xff] %v5021_v9  ;;  %7429 = vst [vmem:[#allocation67_spill] sm:$0xff] %v5050_v38 }
 0x268   :  { %7430 = vst [vmem:[#allocation68_spill] sm:$0xff] %v5056_v37  ;;  %7431 = vst [vmem:[#allocation69_spill] sm:$0xff] %v5060_v23  ;;  %v5097_v23 = vrot.slane %v804_v0, %v4849_v54 }
 0x269   :  { %7433 = vst [vmem:[#allocation71_spill] sm:$0xff] %v5079_v61 }
 0x26a   :  { %7436 = vst [vmem:[#allocation74_spill] sm:$0xff] %v5097_v23 }
 0x277   :  { %v4792_v30 = vpop.permute.xlu1 %1048  ;;  %v4794_v32 = vpop.permute.xlu0 %900 }
 0x278   :  { %v1078_v7 = vsel %vm1062_vm3, %v4713_v63, %v4792_v30  ;;  %v5066_v63 = vrot.slane %v805_v29, %v4821_v43  ;;  %v930_v34 = vsel %vm914_vm2, %v4711_v31, %v4794_v32  ;;  %v5087_v31 = vrot.slane %v4832_v47, %v4821_v43 }
 0x279   :  { %v1111_v62 = vmul.f32 %v4986_v40, %v1078_v7  ;;  %v5100_v7 = vrot.slane %v805_v29, %v4823_v44  ;;  %v5103_v40 = vrot.slane %v806_v11, %v4823_v44  ;;  %v963_v47 = vmul.f32 %v4999_v26, %v930_v34 }
 0x27a   :  { %7434 = vst [vmem:[#allocation72_spill] sm:$0xff] %v5087_v31  ;;  %v5121_v34 = vrot.slane %v806_v11, %v4893_v50 }
 0x27b   :  { %v4801_v35 = vpop.permute.xlu1 %1052  ;;  %v4803_v36 = vpop.permute.xlu0 %904  ;;  %7437 = vst [vmem:[#allocation75_spill] sm:$0xff] %v5100_v7  ;;  %7438 = vst [vmem:[#allocation76_spill] sm:$0xff] %v5103_v40  ;;  %v5115_v7 = vrot.slane %v806_v11, %v4849_v54  ;;  %v5118_v40 = vrot.slane %v805_v29, %v4893_v50  ;;  %v5137_v11 = vrot.slane %v804_v0, %v4893_v50 }
 0x27c   :  { %7442 = vst [vmem:[#allocation80_spill] sm:$0xff] %v5121_v34 }
 0x27d   :  { %7440 = vst [vmem:[#allocation78_spill] sm:$0xff] %v5115_v7  ;;  %7441 = vst [vmem:[#allocation79_spill] sm:$0xff] %v5118_v40 }
 0x27e   :  { %7444 = vst [vmem:[#allocation82_spill] sm:$0xff] %v5137_v11 }
 0x27f   :  { %v4825_v45 = vpop.permute.xlu1 %826  ;;  %v4827_v46 = vpop.permute.xlu0 %830 }
 0x283   :  { %v4851_v55 = vpop.permute.xlu1 %974  ;;  %v4853_v56 = vpop.permute.xlu0 %1123 }
 0x284   :  { %v1004_v18 = vsel %vm988_vm5, %v4725_v2, %v4851_v55  ;;  %v5091_v2 = vrot.slane %v4956_v57, %v4849_v54 }
 0x285   :  { %v1037_v31 = vmul.f32 %v5014_v22, %v1004_v18  ;;  %v1447_v18 = vrot.slane %v1111_v62, 4  ;;  %v1423_v62 = vrot.slane %v963_v47, 4 }
 0x286   :  { %7435 = vst [vmem:[#allocation73_spill] sm:$0xff] %v5091_v2 }
 0x287   :  { %v4887_v49 = vpop.permute.xlu1 %978  ;;  %v4889_v51 = vpop.permute.xlu0 %1271 }
 0x28b   :  { %v4925_v60 = vpop.permute.xlu1 %1119  ;;  %v4927_v59 = vpop.permute.xlu0 %1267 }
 0x28f   :  { %v4965_v27 = vpop.permute.xlu1 %1193  ;;  %v4967_v48 = vpop.permute.xlu0 %1197 }
 0x290   :  { %7408 = vst [vmem:[#allocation46_spill] sm:$0xff] %v4965_v27  ;;  %7409 = vst [vmem:[#allocation47_spill] sm:$0xff] %v4967_v48  ;;  %v5112_v48 = vrot.slane %v805_v29, %v4849_v54  ;;  %v5134_v29 = vrot.slane %v4956_v57, %v4893_v50 }
 0x292   :  { %7439 = vst [vmem:[#allocation77_spill] sm:$0xff] %v5112_v48  ;;  %7443 = vst [vmem:[#allocation81_spill] sm:$0xff] %v5134_v29 }
 0x293   :  { %v5016_v19 = vpop.permute.xlu1 %1345  ;;  %v5018_v25 = vpop.permute.xlu0 %1341 }
 0x294   :  { %7419 = vst [vmem:[#allocation57_spill] sm:$0xff] %v5016_v19  ;;  %7420 = vst [vmem:[#allocation58_spill] sm:$0xff] %v5018_v25  ;;  %v5076_v25 = vrot.slane %v4956_v57, %v4823_v44  ;;  %v856_v19 = vsel %vm840_vm4, %v4723_v1, %v4825_v45 }
 0x296   :  { %7432 = vst [vmem:[#allocation70_spill] sm:$0xff] %v5076_v25 }
 0x297   :  { %v1051_v24 = vpop.permute.xlu0 %1050  ;;  %v903_v16 = vpop.permute.xlu1 %902 }
 0x298   :  { %v1063_v13 = vsel %vm1062_vm3, %v4792_v30, %v1051_v24  ;;  %v1064_v27 = vsel %vm1062_vm3, %v1051_v24, %v4801_v35  ;;  %v889_v30 = vmul.f32 %v5003_v15, %v856_v19  ;;  %v915_v24 = vsel %vm914_vm2, %v4794_v32, %v903_v16 }
 0x299   :  { %v916_v22 = vsel %vm914_vm2, %v903_v16, %v4803_v36  ;;  %v1112_v26 = vmul.f32 %v5021_v9, %v1063_v13  ;;  %v5130_v48 = vmul.f32 %v5024_v58, %v1064_v27  ;;  %v5140_v19 = vsel %vm78_vm0, %v1037_v31, %v1447_v18 }
 0x29a   :  { %v5144_v32 = vrot.slane %v4866_v39, %v4816_v41  ;;  %v5148_v16 = vrot.slane %v4871_v42, %v4816_v41  ;;  %v964_v13 = vmul.f32 %v5027_v20, %v915_v24  ;;  %v965_v57 = vmul.f32 %v5030_v14, %v916_v22 }
 0x29b   :  { %v1055_v1 = vpop.permute.xlu0 %1054  ;;  %v907_v5 = vpop.permute.xlu1 %906  ;;  %v5156_v31 = vrot.slane %v4866_v39, %v4821_v43  ;;  %v1511_v9 = vsel %vm78_vm0, %v889_v30, %v1423_v62  ;;  %v5163_v41 = vrot.slane %v4871_v42, %v4821_v43  ;;  %v5167_v22 = vrot.slane %v4866_v39, %v4849_v54 }
 0x29c   :  { %7445 = vst [vmem:[#allocation83_spill] sm:$0xff] %v5144_v32  ;;  %v1065_v27 = vsel %vm1062_vm3, %v4801_v35, %v1055_v1  ;;  %v917_v18 = vsel %vm914_vm2, %v4803_v36, %v907_v5  ;;  %v1448_v35 = vrot.slane %v1112_v26, 4  ;;  %v1449_v24 = vrot.slane %v5130_v48, 4 }
 0x29d   :  { %7446 = vst [vmem:[#allocation84_spill] sm:$0xff] %v5156_v31  ;;  %7447 = vst [vmem:[#allocation85_spill] sm:$0xff] %v5167_v22  ;;  %v4107_v15 = vpack.c.bf16 %v5140_v19, %v1511_v9  ;;  %v5173_v58 = vrot.slane %v4866_v39, %v4823_v44  ;;  %v1114_v36 = vmul.f32 %v5033_v52, %v1065_v27  ;;  %v1424_v26 = vrot.slane %v964_v13, 4 }
 0x29e   :  { %v1425_v14 = vrot.slane %v965_v57, 4  ;;  %v1066_v9 = vsel %vm1062_vm3, %v1055_v1, %v4753_v8  ;;  %v966_v48 = vmul.f32 %v5040_v28, %v917_v18 }
 0x29f   :  { %v829_v0 = vpop.permute.xlu0 %828  ;;  %v833_v47 = vpop.permute.xlu1 %832  ;;  %7448 = vst [vmem:[#allocation86_spill] sm:$0xff] %v5173_v58  ;;  %v5198_v18 = vmul.f32 %v5037_v21, %v1066_v9 }
 0x2a0   :  { %v841_v30 = vsel %vm840_vm4, %v4825_v45, %v829_v0  ;;  %v842_v43 = vsel %vm840_vm4, %v829_v0, %v4827_v46  ;;  %v843_v62 = vsel %vm840_vm4, %v4827_v46, %v833_v47  ;;  %v1426_v28 = vrot.slane %v966_v48, 4 }
 0x2a1   :  { %v890_v13 = vmul.f32 %v5050_v38, %v841_v30  ;;  %v891_v1 = vmul.f32 %v5053_v53, %v842_v43  ;;  %v892_v8 = vmul.f32 %v5056_v37, %v843_v62  ;;  %v844_v9 = vsel %vm840_vm4, %v833_v47, %v4765_v10 }
 0x2a3   :  { %v977_v19 = vpop.permute.xlu0 %976  ;;  %v1122_v20 = vpop.permute.xlu1 %1121 }
 0x2a4   :  { %v989_v27 = vsel %vm988_vm5, %v4851_v55, %v977_v19  ;;  %v990_v45 = vsel %vm988_vm5, %v977_v19, %v4887_v49  ;;  %v1136_v0 = vsel %vm1135_vm6, %v4925_v60, %v1122_v20  ;;  %v1137_v46 = vsel %vm1135_vm6, %v1122_v20, %v4853_v56 }
 0x2a5   :  { %v1038_v57 = vmul.f32 %v5063_v33, %v989_v27  ;;  %v1450_v55 = vrot.slane %v1114_v36, 4  ;;  %v918_v19 = vsel %vm914_vm2, %v907_v5, %v4745_v6  ;;  %v5203_v52 = vmul.f32 %v5076_v25, %v1136_v0 }
 0x2a6   :  { %v1039_v20 = vmul.f32 %v5066_v63, %v990_v45  ;;  %v5207_v30 = vmul.f32 %v5079_v61, %v1137_v46  ;;  %v1512_v45 = vsel %vm78_vm0, %v890_v13, %v1424_v26  ;;  %v1514_v0 = vsel %vm78_vm0, %v892_v8, %v1426_v28 }
 0x2a7   :  { %v981_v43 = vpop.permute.xlu0 %980  ;;  %v1270_v62 = vpop.permute.xlu1 %1269  ;;  %v1520_v27 = vsel %vm78_vm0, %v1038_v57, %v1448_v35  ;;  %v1513_v35 = vsel %vm78_vm0, %v891_v1, %v1425_v14  ;;  %v1471_v10 = vrot.slane %v5203_v52, 4 }
 0x2a8   :  { %v991_v36 = vsel %vm988_vm5, %v4887_v49, %v981_v43  ;;  %v1284_v5 = vsel %vm1283_vm7, %v4927_v59, %v1270_v62  ;;  %v1285_v6 = vsel %vm1283_vm7, %v1270_v62, %v4889_v51  ;;  %v4105_v46 = vpack.c.bf16 %v1520_v27, %v1512_v45 }
 0x2a9   :  { %v1040_v48 = vmul.f32 %v5083_v12, %v991_v36  ;;  %v1333_v47 = vmul.f32 %v5091_v2, %v1284_v5  ;;  %v1334_v49 = vmul.f32 %v5097_v23, %v1285_v6  ;;  %v1472_v57 = vrot.slane %v5207_v30, 4  ;;  %v7450_v30 = vld [vmem:[#allocation76_spill] sm:$0xff] }
 0x2aa   :  { %v992_v62 = vsel %vm988_vm5, %v981_v43, %v4776_v17  ;;  %v1521_v28 = vsel %vm78_vm0, %v1039_v20, %v1449_v24  ;;  %4106 = vmatprep.subr.bf16.mxu0 %v4105_v46  ;;  %v7449_v17 = vld [vmem:[#allocation75_spill] sm:$0xff] }
 0x2ab   :  { %v1126_v36 = vpop.permute.xlu0 %1125  ;;  %v1274_v21 = vpop.permute.xlu1 %1273  ;;  %v1522_v26 = vsel %vm78_vm0, %v1040_v48, %v1450_v55  ;;  %4108 = vmatpush1.bf16.msra.mxu0 %v4107_v15  ;;  %v7451_v55 = vld [vmem:[#allocation77_spill] sm:$0xff]  ;;  %v1495_v27 = vrot.slane %v1333_v47, 4  ;;  %v4115_v6 = vpack.c.bf16 %v1521_v28, %v1513_v35  ;;  %v1451_v28 = vrot.slane %v5198_v18, 4 }
 0x2ac   :  { %v1138_v14 = vsel %vm1135_vm6, %v4853_v56, %v1126_v36  ;;  %v1139_v52 = vsel %vm1135_vm6, %v1126_v36, %v4731_v3  ;;  %v1286_v13 = vsel %vm1283_vm7, %v4889_v51, %v1274_v21  ;;  %v1287_v1 = vsel %vm1283_vm7, %v1274_v21, %v4733_v4  ;;  %v7452_v4 = vld [vmem:[#allocation47_spill] sm:$0xff] }
 0x2ad   :  { %v1187_v8 = vmul.f32 %v7449_v17, %v1138_v14  ;;  %v1188_v43 = vmul.f32 %v7450_v30, %v1139_v52  ;;  %v1335_v24 = vmul.f32 %v7451_v55, %v1286_v13  ;;  %v1336_v20 = vmul.f32 %v5115_v7, %v1287_v1  ;;  %v7453_v14 = vld [vmem:[#allocation19_spill] sm:$0xff]  ;;  %v7454_v52 = vld [vmem:[#allocation46_spill] sm:$0xff] }
 0x2ae   :  { %v1496_v56 = vrot.slane %v1334_v49, 4  ;;  %v4113_v5 = vpack.c.bf16 %v1522_v26, %v1514_v0  ;;  %v7455_v1 = vld [vmem:[#allocation66_spill] sm:$0xff] }
 0x2af   :  { %v1473_v3 = vrot.slane %v1187_v8, 4  ;;  %v1474_v48 = vrot.slane %v1188_v43, 4  ;;  %v1497_v45 = vrot.slane %v1335_v24, 4  ;;  %v1498_v51 = vrot.slane %v1336_v20, 4  ;;  %v1200_v46 = vpop.permute.xlu0 %1199  ;;  %v1196_v36 = vpop.permute.xlu1 %1195  ;;  %v7456_v43 = vld [vmem:[#allocation69_spill] sm:$0xff]  ;;  %v7457_v20 = vld [vmem:[#allocation72_spill] sm:$0xff] }
 0x2b0   :  { %4114 = vmatprep.subr.bf16.mxu1 %v4113_v5  ;;  %v1212_v21 = vsel %vm1209_vm8, %v7452_v4, %v1200_v46  ;;  %v1213_v15 = vsel %vm1209_vm8, %v1200_v46, %v7453_v14  ;;  %v1210_v13 = vsel %vm1209_vm8, %v7454_v52, %v1196_v36  ;;  %v1211_v0 = vsel %vm1209_vm8, %v1196_v36, %v7452_v4  ;;  %v5261_v46 = vld [vmem:[%s7160_s5 + $0x48] ss:$0 sm:$0xff] }
 0x2b1   :  { %v1261_v35 = vmul.f32 %v5118_v40, %v1212_v21  ;;  %v1262_v47 = vmul.f32 %v5121_v34, %v1213_v15  ;;  %4116 = vmatpush1.bf16.msra.mxu1 %v4115_v6  ;;  %v1259_v49 = vmul.f32 %v5134_v29, %v1210_v13  ;;  %v1260_v26 = vmul.f32 %v5137_v11, %v1211_v0  ;;  %v7460_v15 = vld [vmem:[#allocation20_spill] sm:$0xff]  ;;  %v7461_v13 = vld [vmem:[#allocation17_spill] sm:$0xff]  ;;  %v7466_v29 = vld [vmem:[#allocation58_spill] sm:$0xff] }
 0x2b2   :  { %v967_v8 = vmul.f32 %v7455_v1, %v918_v19  ;;  %v893_v24 = vmul.f32 %v7456_v43, %v844_v9  ;;  %v1041_v5 = vmul.f32 %v7457_v20, %v992_v62  ;;  %7458 = vst [vmem:[#allocation47_spill] sm:$0xff] %v5261_v46  ;;  %v7459_v19 = vld [vmem:[#allocation57_spill] sm:$0xff]  ;;  %v7462_v20 = vld [vmem:[#allocation16_spill] sm:$0xff] }
 0x2b3   :  { %v1344_v36 = vpop.permute.xlu0 %1343  ;;  %v839_v4 = vpop.permute.xlu1 %838  ;;  %v1536_v6 = vsel %vm78_vm0, %v1260_v26, %v1496_v56  ;;  %v1538_v21 = vsel %vm78_vm0, %v1262_v47, %v1498_v51  ;;  %v1535_v14 = vsel %vm78_vm0, %v1259_v49, %v1495_v27  ;;  %v1537_v18 = vsel %vm78_vm0, %v1261_v35, %v1497_v45  ;;  %v7463_v26 = vld [vmem:[#allocation15_spill] sm:$0xff]  ;;  %v7464_v27 = vld [vmem:[#allocation13_spill] sm:$0xff]  ;;  %v7465_v35 = vld [vmem:[#allocation14_spill] sm:$0xff] }
 0x2b4   :  { %v1359_v9 = vsel %vm1357_vm9, %v1344_v36, %v7459_v19  ;;  %v846_v62 = vsel %vm840_vm4, %v7460_v15, %v839_v4  ;;  %v847_v0 = vsel %vm840_vm4, %v839_v4, %v7461_v13  ;;  %v1528_v1 = vsel %vm78_vm0, %v7462_v20, %v1472_v57 }
 0x2b5   :  { %v1408_v56 = vmul.f32 %v5261_v46, %v1359_v9  ;;  %v1530_v51 = vsel %vm78_vm0, %v7463_v26, %v1474_v48  ;;  %v1527_v45 = vsel %vm78_vm0, %v7464_v27, %v1471_v10  ;;  %v1529_v47 = vsel %vm78_vm0, %v7465_v35, %v1473_v3  ;;  %v5289_v48 = vld [vmem:[%s7160_s5 + $0x50] ss:$0 sm:$0xff]  ;;  %v5294_v10 = vld [vmem:[%s7160_s5 + $0x58] ss:$0 sm:$0xff] }
 0x2b6   :  { %v4109_v49 = vpack.c.bf16 %v1536_v6, %v1528_v1  ;;  %v4117_v43 = vpack.c.bf16 %v1538_v21, %v1530_v51  ;;  %v4111_v15 = vpack.c.bf16 %v1535_v14, %v1527_v45  ;;  %v4119_v2 = vpack.c.bf16 %v1537_v18, %v1529_v47  ;;  %v7467_v6 = vld [vmem:[#allocation49_spill] sm:$0xff]  ;;  %v5301_v21 = vld [vmem:[%s7160_s5 + $0x40] ss:$0 sm:$0xff]  ;;  %v7471_v51 = vld [vmem:[#allocation24_spill] sm:$0xff] }
 0x2b7   :  { %v1358_v4 = vsel %vm1357_vm9, %v7466_v29, %v1344_v36  ;;  %v895_v57 = vmul.f32 %v5144_v32, %v846_v62  ;;  %v896_v20 = vmul.f32 %v5148_v16, %v847_v0  ;;  %v987_v9 = vpop.permute.xlu0 %986  ;;  %v1348_v3 = vpop.permute.xlu1 %1347  ;;  %v1523_v1 = vsel %vm78_vm0, %v1041_v5, %v1451_v28  ;;  %7468 = vst [vmem:[#allocation19_spill] sm:$0xff] %v5301_v21  ;;  %v7469_v14 = vld [vmem:[#allocation21_spill] sm:$0xff]  ;;  %v7470_v62 = vld [vmem:[#allocation18_spill] sm:$0xff] }
 0x2b8   :  { %v1454_v36 = vrot.slane %v7467_v6, 4  ;;  %4110 = vmatprep.subr.bf16.mxu0 %v4109_v49  ;;  %4118 = vmatprep.subr.bf16.mxu1 %v4117_v43  ;;  %v994_v18 = vsel %vm988_vm5, %v7469_v14, %v987_v9  ;;  %v995_v13 = vsel %vm988_vm5, %v987_v9, %v7470_v62  ;;  %v1360_v0 = vsel %vm1357_vm9, %v7459_v19, %v1348_v3  ;;  %v7473_v9 = vld [vmem:[#allocation43_spill] sm:$0xff]  ;;  %v7510_v46 = vld [vmem:[#allocation61_spill] sm:$0xff] }
 0x2b9   :  { %v1427_v26 = vrot.slane %v967_v8, 4  ;;  %v1043_v28 = vmul.f32 %v5156_v31, %v994_v18  ;;  %v1044_v5 = vmul.f32 %v5163_v41, %v995_v13  ;;  %4112 = vmatpush1.bf16.msra.mxu0 %v4111_v15  ;;  %4120 = vmatpush1.bf16.msra.mxu1 %v4119_v2  ;;  %v1361_v27 = vsel %vm1357_vm9, %v1348_v3, %v7471_v51  ;;  %v5324_v2 = vld [vmem:[%s7161_s6] sm:$0xff]  ;;  %v7478_v13 = vld [vmem:[#allocation41_spill] sm:$0xff] }
 0x2ba   :  { %v1409_v43 = vmul.f32 %v5289_v48, %v1360_v0  ;;  %v1410_v45 = vmul.f32 %v5294_v10, %v1361_v27  ;;  %3813 = vmatprep.subr.msk.mxu0 %vm78_vm0, %v1408_v56  ;;  %v5318_v35 = vrot.slane %v4871_v42, %v4823_v44  ;;  %v1407_v8 = vmul.f32 %v5301_v21, %v1358_v4  ;;  %v7476_v4 = vld [vmem:[#allocation22_spill] sm:$0xff] }
 0x2bb   :  { %v1282_v19 = vpop.permute.xlu0 %1281  ;;  %v1134_v47 = vpop.permute.xlu1 %1133  ;;  %v1515_v49 = vsel %vm78_vm0, %v893_v24, %v1427_v26  ;;  %v1526_v15 = vsel %vm78_vm0, %v1044_v5, %v1454_v36  ;;  %v7474_v56 = vrot.slane %v7473_v9, 4  ;;  %v5333_v44 = vrot.slane %v4871_v42, %v4849_v54  ;;  %v7477_v24 = vld [vmem:[#allocation23_spill] sm:$0xff]  ;;  %v7480_v26 = vld [vmem:[#allocation40_spill] sm:$0xff]  ;;  %v7488_v9 = vld [vmem:[#allocation38_spill] sm:$0xff] }
 0x2bc   :  { %7472 = vst [vmem:[#allocation46_spill] sm:$0xff] %v5318_v35  ;;  %3816 = vmatprep.subr.msk.mxu1 %vm78_vm0, %v1410_v45  ;;  %v1142_v6 = vsel %vm1135_vm6, %v7476_v4, %v1134_v47  ;;  %v1152_v14 = vsel %vm1135_vm6, %v1134_v47, %v4925_v60  ;;  %v4123_v18 = vpack.c.bf16 %v1523_v1, %v1515_v49  ;;  %v7479_v54 = vrot.slane %v7478_v13, 4  ;;  %v7483_v45 = vld [vmem:[#allocation45_spill] sm:$0xff]  ;;  %v7487_v47 = vld [vmem:[#allocation55_spill] sm:$0xff]  ;;  %v7511_v21 = vld [vmem:[#allocation62_spill] sm:$0xff] }
 0x2bd   :  { %v1525_v3 = vsel %vm78_vm0, %v1043_v28, %v7474_v56  ;;  %7475 = vst [vmem:[#allocation57_spill] sm:$0xff] %v5333_v44  ;;  %v1290_v36 = vsel %vm1283_vm7, %v7477_v24, %v1282_v19  ;;  %v1300_v62 = vsel %vm1283_vm7, %v1282_v19, %v4927_v59  ;;  %3814 = vmatpush1.msk.msra.mxu0 %vm78_vm0, %v1407_v8  ;;  %v7481_v28 = vrot.slane %v7480_v26, 4  ;;  %v5358_v59 = vld [vmem:[%s7160_s5 + $0x68] ss:$0 sm:$0xff]  ;;  %v7484_v8 = vld [vmem:[#allocation44_spill] sm:$0xff] }
 0x2be   :  { %v1518_v0 = vsel %vm78_vm0, %v896_v20, %v7479_v54  ;;  %v1192_v27 = vmul.f32 %v5318_v35, %v1152_v14  ;;  %3815 = vmatmul.mubr.msk.f32.vlgmr.msra.gmra.mrb[4].mxu0 %vm1550_vm10, %v5324_v2  ;;  %3817 = vmatpush1.msk.msra.mxu1 %vm78_vm0, %v1409_v43  ;;  %7482 = vst [vmem:[#allocation20_spill] sm:$0xff] %v5358_v59  ;;  %v7489_v56 = vrot.slane %v7488_v9, 4  ;;  %v7493_v26 = vld [vmem:[#allocation51_spill] sm:$0xff] }
 0x2bf   :  { %v1517_v5 = vsel %vm78_vm0, %v895_v57, %v7481_v28  ;;  %v4129_v60 = vpack.c.bf16 %v1526_v15, %v1518_v0  ;;  %v1191_v20 = vmul.f32 %v5173_v58, %v1142_v6  ;;  %v7485_v19 = vpack.c.bf16 %v7483_v45, %v7484_v8  ;;  %3818 = vmatmul.mubr.msk.f32.vlgmr.msra.gmra.mrb[4].mxu1 %vm1550_vm10, %v5324_v2  ;;  %v7486_v57 = vld [vmem:[#allocation54_spill] sm:$0xff]  ;;  %v1354_v43 = vpop.permute.xlu0 %1353  ;;  %v1352_v15 = vpop.permute.xlu1 %1351  ;;  %v4378_v9 = vld [vmem:[%s7158_s3 + $0x8] sm:$0xff] }
 0x2c0   :  { %v4131_v1 = vpack.c.bf16 %v1525_v3, %v1517_v5  ;;  %v4125_v49 = vpack.c.bf16 %v7487_v47, %v7486_v57  ;;  %v7490_v3 = vld [vmem:[#allocation48_spill] sm:$0xff]  ;;  %v1363_v6 = vsel %vm1357_vm9, %v1352_v15, %v1354_v43  ;;  %v5375_v14 = vrot.slane %v4866_v39, %v4893_v50 }
 0x2c1   :  { %4122 = vmatprep.subr.bf16.mxu0 %v7485_v19  ;;  %v1539_v4 = vsel %vm78_vm0, %v7490_v3, %v7489_v56  ;;  %4130 = vmatprep.subr.bf16.mxu1 %v4129_v60  ;;  %v5379_v24 = vrot.slane %v4871_v42, %v4893_v50  ;;  %v1339_v13 = vmul.f32 %v5167_v22, %v1290_v36  ;;  %v7494_v5 = vmov 0.0   ;;  %v5390_v50 = vld [vmem:[%s7160_s5 + $0x60] ss:$0 sm:$0xff]  ;;  %v7496_v60 = vld [vmem:[#allocation25_spill] sm:$0xff] }
 0x2c2   :  { %4124 = vmatpush1.bf16.msra.mxu0 %v4123_v18  ;;  %7491 = vst [vmem:[#allocation17_spill] sm:$0xff] %v5375_v14  ;;  %v1340_v54 = vmul.f32 %v5333_v44, %v1300_v62  ;;  %4132 = vmatpush1.bf16.msra.mxu1 %v4131_v1  ;;  %v1412_v0 = vmul.f32 %v5358_v59, %v1363_v6  ;;  %v1478_v18 = vrot.slane %v1192_v27, 4  ;;  %v1477_v39 = vrot.slane %v1191_v20, 4 }
 0x2c3   :  { %7492 = vst [vmem:[#allocation16_spill] sm:$0xff] %v5379_v24  ;;  %4126 = vmatprep.subr.bf16.mxu0 %v4125_v49  ;;  %v4127_v28 = vpack.c.bf16 %v1539_v4, %v7493_v26  ;;  %1784 = vmatprep.mubr.f32.mxu0 %v7494_v5  ;;  %7495 = vst [vmem:[#allocation15_spill] sm:$0xff] %v5390_v50  ;;  %v1362_v42 = vsel %vm1357_vm9, %v7471_v51, %v1352_v15  ;;  %v1208_v36 = vpop.permute.xlu1 %1207  ;;  %v1356_v62 = vpop.permute.xlu0 %1355  ;;  %v1501_v45 = vrot.slane %v1339_v13, 4  ;;  %v7497_v51 = vld [vmem:[#allocation11_spill] sm:$0xff]  ;;  %v5407_v49 = vld [vmem:[%s7160_s5 + $0x78] ss:$0 sm:$0xff] }
 0x2c4   :  { %1855 = vmatprep.mubr.f32.mxu1 %v7494_v5  ;;  %v1216_v27 = vsel %vm1209_vm8, %v7496_v60, %v1208_v36  ;;  %v1226_v1 = vsel %vm1209_vm8, %v1208_v36, %v7454_v52  ;;  %v1502_v8 = vrot.slane %v1340_v54, 4  ;;  %v1411_v57 = vmul.f32 %v5390_v50, %v1362_v42  ;;  %7498 = vst [vmem:[#allocation13_spill] sm:$0xff] %v5407_v49  ;;  %v5420_v4 = vld [vmem:[%s7160_s5 + $0x70] ss:$0 sm:$0xff] }
 0x2c5   :  { %v1265_v20 = vmul.f32 %v5375_v14, %v1216_v27  ;;  %v1266_v19 = vmul.f32 %v5379_v24, %v1226_v1  ;;  %v1534_v47 = vsel %vm78_vm0, %v7497_v51, %v1478_v18  ;;  %v1374_v52 = vsel %vm1357_vm9, %v1356_v62, %v7466_v29  ;;  %7499 = vst [vmem:[#allocation14_spill] sm:$0xff] %v5420_v4 }
 0x2c6   :  { %4128 = vmatpush1.bf16.msra.mxu0 %v4127_v28  ;;  %v1533_v56 = vsel %vm78_vm0, %v4378_v9, %v1477_v39  ;;  %v1364_v6 = vsel %vm1357_vm9, %v1354_v43, %v1356_v62  ;;  %v1414_v54 = vmul.f32 %v5407_v49, %v1374_v52 }
 0x2c7   :  { %3819 = vmatprep.subr.msk.mxu0 %vm78_vm0, %v1412_v0  ;;  %v1542_v15 = vsel %vm78_vm0, %v1266_v19, %v1502_v8  ;;  %v1541_v3 = vsel %vm78_vm0, %v1265_v20, %v1501_v45  ;;  %v1413_v0 = vmul.f32 %v5420_v4, %v1364_v6 }
 0x2c8   :  { %v4133_v29 = vpack.c.bf16 %v1542_v15, %v1534_v47  ;;  %v4135_v13 = vpack.c.bf16 %v1541_v3, %v1533_v56 }
 0x2ca   :  { %3820 = vmatpush1.msk.msra.mxu0 %vm78_vm0, %v1411_v57  ;;  %4134 = vmatprep.subr.bf16.mxu1 %v4133_v29 }
 0x2cb   :  { %3821 = vmatmul.mubr.msk.f32.vlgmr.msra.gmra.mrb[6].mxu0 %vm1550_vm10, %v5324_v2  ;;  %4136 = vmatpush1.bf16.msra.mxu1 %v4135_v13 }
 0x2cc   :  { %2291 = vmatprep.mubr.f32.mxu0 %v7494_v5  ;;  %3822 = vmatprep.subr.msk.mxu1 %vm78_vm0, %v1414_v54 }
 0x2cf   :  { %3823 = vmatpush1.msk.msra.mxu1 %vm78_vm0, %v1413_v0 }
 0x2d0   :  { %3824 = vmatmul.mubr.msk.f32.vlgmr.msra.gmra.mrb[6].mxu1 %vm1550_vm10, %v5324_v2 }
 0x2d1   :  { %2368 = vmatprep.mubr.f32.mxu1 %v7494_v5 }
 0x2d4   :  { %v1548_v43 = vpop.permute.xlu1 %1547 }
 0x391   :  { %v1644_v18 = vpop.f32.mrb[4].mxu0 }
 0x392   :  { %v1646_v26 = vpop.f32.mrb[5].mxu0  ;;  %v1715_v28 = vpop.f32.mrb[4].mxu1  ;;  %v1645_v36 = vadd.f32 %v1644_v18, %v1548_v43 }
 0x393   :  { %v1716_v39 = vadd.f32 %v1715_v28, %v1548_v43  ;;  %v1717_v42 = vpop.f32.mrb[5].mxu1  ;;  %v1647_v19 = vadd.f32 %v1646_v26, %v1548_v43  ;;  %v2208_v26 = vld [vmem:[%s7164_s9] sm:$0xff]  ;;  %v2209_v28 = vld [vmem:[%s7164_s9 + $0x8] sm:$0xff] }
 0x394   :  { %v5440_v60 = vmax.f32 %v1645_v36, 0.0  ;;  %v1718_v8 = vadd.f32 %v1717_v42, %v1548_v43 }
 0x395   :  { %v5434_v62 = vmax.f32 %v1716_v39, 0.0  ;;  %v5468_v57 = vmax.f32 %v1647_v19, 0.0 }
 0x396   :  { %v5458_v20 = vmax.f32 %v1718_v8, 0.0 }
 0x397   :  { %2087 = vrot.lane.b32.xlu1 %v5434_v62, %s4470_s19  ;;  %1885 = vrot.lane.b32.xlu0 %v5434_v62, %s4466_s30 }
 0x398   :  { %7500 = vst [vmem:[#allocation58_spill] sm:$0xff] %v5458_v20 }
 0x39b   :  { %1926 = vrot.lane.b32.xlu0 %v5434_v62, %s4464_s2  ;;  %1881 = vrot.lane.b32.xlu1 %v5440_v60, %s4466_s30 }
 0x39e   :  { %v1786_v2 = vpop.f32.mrb[6].mxu0 }
 0x39f   :  { %v1788_v27 = vpop.f32.mrb[7].mxu0  ;;  %1967 = vrot.lane.b32.xlu0 %v5434_v62, %s4467_s14  ;;  %2169 = vrot.lane.b32.xlu1 %v5434_v62, %s4471_s20  ;;  %v1787_v51 = vadd.f32 %v1786_v2, %v1548_v43 }
 0x3a0   :  { %v1789_v56 = vadd.f32 %v1788_v27, %v1548_v43 }
 0x3a1   :  { %v5502_v47 = vmax.f32 %v1787_v51, 0.0 }
 0x3a2   :  { %v5528_v6 = vmax.f32 %v1789_v56, 0.0 }
 0x3a3   :  { %2008 = vrot.lane.b32.xlu0 %v5434_v62, %s4465_s29  ;;  %2004 = vrot.lane.b32.xlu1 %v5440_v60, %s4465_s29  ;;  %v1857_v1 = vpop.f32.mrb[6].mxu1  ;;  %7501 = vst [vmem:[#allocation49_spill] sm:$0xff] %v5502_v47 }
 0x3a4   :  { %v1859_v45 = vpop.f32.mrb[7].mxu1  ;;  %v1858_v52 = vadd.f32 %v1857_v1, %v1548_v43  ;;  %7503 = vst [vmem:[#allocation18_spill] sm:$0xff] %v5528_v6 }
 0x3a5   :  { %v1860_v9 = vadd.f32 %v1859_v45, %v1548_v43 }
 0x3a6   :  { %v5508_v15 = vmax.f32 %v1858_v52, 0.0 }
 0x3a7   :  { %2046 = vrot.lane.b32.xlu0 %v5434_v62, %s4468_s17  ;;  %2042 = vrot.lane.b32.xlu1 %v5440_v60, %s4468_s17  ;;  %v5522_v3 = vmax.f32 %v1860_v9, 0.0  ;;  %v7506_v9 = vld [vmem:[#allocation65_spill] sm:$0xff] }
 0x3a9   :  { %7502 = vst [vmem:[#allocation21_spill] sm:$0xff] %v5522_v3 }
 0x3ab   :  { %2128 = vrot.lane.b32.xlu0 %v5434_v62, %s4469_s18  ;;  %1887 = vrot.lane.b32.xlu1 %v5458_v20, %s4466_s30 }
 0x3af   :  { %1922 = vrot.lane.b32.xlu0 %v5440_v60, %s4464_s2  ;;  %1928 = vrot.lane.b32.xlu1 %v5458_v20, %s4464_s2 }
 0x3b3   :  { %1963 = vrot.lane.b32.xlu0 %v5440_v60, %s4467_s14  ;;  %1924 = vrot.lane.b32.xlu1 %v5468_v57, %s4464_s2 }
 0x3b7   :  { %2083 = vrot.lane.b32.xlu0 %v5440_v60, %s4470_s19  ;;  %1969 = vrot.lane.b32.xlu1 %v5458_v20, %s4467_s14 }
 0x3bb   :  { %2124 = vrot.lane.b32.xlu0 %v5440_v60, %s4469_s18  ;;  %2010 = vrot.lane.b32.xlu1 %v5458_v20, %s4465_s29 }
 0x3bf   :  { %1883 = vrot.lane.b32.xlu0 %v5468_v57, %s4466_s30  ;;  %2006 = vrot.lane.b32.xlu1 %v5468_v57, %s4465_s29 }
 0x3c3   :  { %1965 = vrot.lane.b32.xlu0 %v5468_v57, %s4467_s14  ;;  %2089 = vrot.lane.b32.xlu1 %v5458_v20, %s4470_s19 }
 0x3c7   :  { %2048 = vrot.lane.b32.xlu0 %v5458_v20, %s4468_s17  ;;  %2130 = vrot.lane.b32.xlu1 %v5458_v20, %s4469_s18 }
 0x3cb   :  { %2044 = vrot.lane.b32.xlu0 %v5468_v57, %s4468_s17  ;;  %2171 = vrot.lane.b32.xlu1 %v5458_v20, %s4471_s20 }
 0x3cf   :  { %2085 = vrot.lane.b32.xlu0 %v5468_v57, %s4470_s19  ;;  %2126 = vrot.lane.b32.xlu1 %v5468_v57, %s4469_s18 }
 0x3d3   :  { %2091 = vrot.lane.b32.xlu0 %v5502_v47, %s4470_s19  ;;  %2050 = vrot.lane.b32.xlu1 %v5502_v47, %s4468_s17 }
 0x3d7   :  { %2132 = vrot.lane.b32.xlu0 %v5502_v47, %s4469_s18  ;;  %1975 = vrot.lane.b32.xlu1 %v5508_v15, %s4467_s14 }
 0x3db   :  { %1893 = vrot.lane.b32.xlu0 %v5508_v15, %s4466_s30  ;;  %2016 = vrot.lane.b32.xlu1 %v5508_v15, %s4465_s29 }
 0x3df   :  { %1934 = vrot.lane.b32.xlu0 %v5508_v15, %s4464_s2  ;;  %2054 = vrot.lane.b32.xlu1 %v5508_v15, %s4468_s17 }
 0x3e3   :  { %2173 = vrot.lane.b32.xlu0 %v5502_v47, %s4471_s20  ;;  %1871 = vrot.lane.b32.xlu1 %v5522_v3, %s4466_s30 }
 0x3e7   :  { %1932 = vrot.lane.b32.xlu0 %v5528_v6, %s4464_s2  ;;  %1919 = vrot.lane.b32.xlu1 %v5522_v3, %s4464_s2 }
 0x3eb   :  { %1960 = vrot.lane.b32.xlu0 %v5522_v3, %s4467_s14  ;;  %1891 = vrot.lane.b32.xlu1 %v5528_v6, %s4466_s30 }
 0x3ef   :  { %2001 = vrot.lane.b32.xlu0 %v5522_v3, %s4465_s29  ;;  %2014 = vrot.lane.b32.xlu1 %v5528_v6, %s4465_s29 }
 0x3f3   :  { %1973 = vrot.lane.b32.xlu0 %v5528_v6, %s4467_s14  ;;  %2136 = vrot.lane.b32.xlu1 %v5508_v15, %s4469_s18 }
 0x3f7   :  { %2056 = vrot.lane.b32.xlu0 %v5522_v3, %s4468_s17  ;;  %2097 = vrot.lane.b32.xlu1 %v5522_v3, %s4470_s19 }
 0x3fb   :  { %2095 = vrot.lane.b32.xlu0 %v5508_v15, %s4470_s19  ;;  %2138 = vrot.lane.b32.xlu1 %v5522_v3, %s4469_s18 }
 0x3ff   :  { %2167 = vrot.lane.b32.xlu0 %v5468_v57, %s4471_s20  ;;  %2165 = vrot.lane.b32.xlu1 %v5440_v60, %s4471_s20 }
 0x403   :  { %2179 = vrot.lane.b32.xlu0 %v5522_v3, %s4471_s20  ;;  %2177 = vrot.lane.b32.xlu1 %v5508_v15, %s4471_s20 }
 0x407   :  { %1889 = vrot.lane.b32.xlu0 %v5502_v47, %s4466_s30  ;;  %1930 = vrot.lane.b32.xlu1 %v5502_v47, %s4464_s2 }
 0x409   :  { %v5566_v29 = vpop.permute.xlu1 %2087  ;;  %v1886_v13 = vpop.permute.xlu0 %1885 }
 0x40b   :  { %1971 = vrot.lane.b32.xlu0 %v5502_v47, %s4467_s14  ;;  %2012 = vrot.lane.b32.xlu1 %v5502_v47, %s4465_s29 }
 0x40d   :  { %v1927_v54 = vpop.permute.xlu0 %1926  ;;  %v5572_v0 = vpop.permute.xlu1 %1881 }
 0x40f   :  { %2052 = vrot.lane.b32.xlu0 %v5528_v6, %s4468_s17  ;;  %2093 = vrot.lane.b32.xlu1 %v5528_v6, %s4470_s19 }
 0x411   :  { %v1968_v43 = vpop.permute.xlu0 %1967  ;;  %v5578_v18 = vpop.permute.xlu1 %2169 }
 0x413   :  { %2134 = vrot.lane.b32.xlu0 %v5528_v6, %s4469_s18  ;;  %2175 = vrot.lane.b32.xlu1 %v5528_v6, %s4471_s20 }
 0x415   :  { %v2009_v39 = vpop.permute.xlu0 %2008  ;;  %v5590_v42 = vpop.permute.xlu1 %2004 }
 0x417   :  { %2212 = vperm.xlu0 %4372, %v2208_v26   ;;  %2217 = vperm.xlu1 %4373, %v2209_v28  }
 0x419   :  { %v5592_v36 = vpop.permute.xlu0 %2046  ;;  %v5594_v2 = vpop.permute.xlu1 %2042 }
 0x41d   :  { %v5596_v27 = vpop.permute.xlu0 %2128  ;;  %v5598_v1 = vpop.permute.xlu1 %1887 }
 0x41e   :  { %7504 = vst [vmem:[#allocation24_spill] sm:$0xff] %v5598_v1  ;;  %v1897_v45 = vsel %vm840_vm4, %v1886_v13, %v5598_v1 }
 0x41f   :  { %v1914_v52 = vmul.f32 %v1897_v45, %v5056_v37 }
 0x421   :  { %v5602_v8 = vpop.permute.xlu0 %1922  ;;  %v5604_v19 = vpop.permute.xlu1 %1928 }
 0x422   :  { %7505 = vst [vmem:[#allocation43_spill] sm:$0xff] %v5604_v19  ;;  %v1938_v51 = vsel %vm914_vm2, %v1927_v54, %v5604_v19 }
 0x423   :  { %v1955_v56 = vmul.f32 %v1938_v51, %v7506_v9  ;;  %v7509_v9 = vld [vmem:[#allocation63_spill] sm:$0xff] }
 0x425   :  { %v5610_v26 = vpop.permute.xlu0 %1963  ;;  %v1925_v28 = vpop.permute.xlu1 %1924  ;;  %v4153_v50 = vpack.c.bf16 %v1955_v56, %v1914_v52 }
 0x426   :  { %v1936_v45 = vsel %vm914_vm2, %v5602_v8, %v1925_v28  ;;  %v1937_v51 = vsel %vm914_vm2, %v1925_v28, %v1927_v54 }
 0x427   :  { %4154 = vmatprep.subr.bf16.mxu1 %v4153_v50  ;;  %v1954_v44 = vmul.f32 %v1937_v51, %v7511_v21 }
 0x429   :  { %v5612_v59 = vpop.permute.xlu0 %2083  ;;  %v5614_v6 = vpop.permute.xlu1 %1969 }
 0x42a   :  { %7507 = vst [vmem:[#allocation22_spill] sm:$0xff] %v5614_v6  ;;  %v1979_v52 = vsel %vm988_vm5, %v1968_v43, %v5614_v6 }
 0x42b   :  { %v1996_v28 = vmul.f32 %v1979_v52, %v5083_v12 }
 0x42d   :  { %v5616_v47 = vpop.permute.xlu0 %2124  ;;  %v5618_v1 = vpop.permute.xlu1 %2010 }
 0x42e   :  { %7508 = vst [vmem:[#allocation23_spill] sm:$0xff] %v5618_v1  ;;  %v2020_v19 = vsel %vm1062_vm3, %v2009_v39, %v5618_v1  ;;  %v1953_v1 = vmul.f32 %v1936_v45, %v7510_v46 }
 0x42f   :  { %v2037_v37 = vmul.f32 %v2020_v19, %v7509_v9 }
 0x431   :  { %v1884_v50 = vpop.permute.xlu0 %1883  ;;  %v5627_v56 = vpop.permute.xlu1 %2006 }
 0x432   :  { %v1895_v49 = vsel %vm840_vm4, %v5572_v0, %v1884_v50  ;;  %v1896_v4 = vsel %vm840_vm4, %v1884_v50, %v1886_v13  ;;  %v2019_v6 = vsel %vm1062_vm3, %v5627_v56, %v2009_v39  ;;  %v4157_v13 = vpack.c.bf16 %v2037_v37, %v1996_v28  ;;  %v7512_v50 = vld [vmem:[#allocation60_spill] sm:$0xff] }
 0x433   :  { %v1912_v22 = vmul.f32 %v1895_v49, %v5050_v38  ;;  %v1913_v54 = vmul.f32 %v1896_v4, %v5053_v53  ;;  %v2036_v45 = vmul.f32 %v2019_v6, %v7512_v50 }
 0x435   :  { %v4155_v14 = vpack.c.bf16 %v1954_v44, %v1913_v54  ;;  %v1966_v19 = vpop.permute.xlu0 %1965  ;;  %v2090_v9 = vpop.permute.xlu1 %2089  ;;  %v4137_v24 = vpack.c.bf16 %v1953_v1, %v1912_v22 }
 0x436   :  { %v1978_v3 = vsel %vm988_vm5, %v1966_v19, %v1968_v43  ;;  %v2101_v28 = vsel %vm1209_vm8, %v5566_v29, %v2090_v9 }
 0x437   :  { %v1995_v51 = vmul.f32 %v1978_v3, %v5066_v63  ;;  %4138 = vmatprep.subr.bf16.mxu0 %v4137_v24  ;;  %4156 = vmatpush1.bf16.msra.mxu1 %v4155_v14 }
 0x438   :  { %4158 = vmatprep.subr.bf16.mxu1 %v4157_v13 }
 0x439   :  { %v4159_v49 = vpack.c.bf16 %v2036_v45, %v1995_v51  ;;  %v2049_v4 = vpop.permute.xlu0 %2048  ;;  %v2131_v52 = vpop.permute.xlu1 %2130 }
 0x43a   :  { %v2060_v37 = vsel %vm1135_vm6, %v5592_v36, %v2049_v4  ;;  %v2142_v43 = vsel %vm1283_vm7, %v5596_v27, %v2131_v52 }
 0x43b   :  { %4160 = vmatpush1.bf16.msra.mxu1 %v4159_v49  ;;  %v2077_v14 = vmul.f32 %v2060_v37, %v7449_v17 }
 0x43d   :  { %v5643_v46 = vpop.permute.xlu0 %2044  ;;  %v2172_v44 = vpop.permute.xlu1 %2171  ;;  %v4163_v49 = vpack.c.bf16 %v2077_v14, %v5434_v62 }
 0x441   :  { %v5645_v39 = vpop.permute.xlu0 %2085  ;;  %v5647_v22 = vpop.permute.xlu1 %2126 }
 0x445   :  { %v5651_v6 = vpop.permute.xlu0 %2091  ;;  %v5653_v3 = vpop.permute.xlu1 %2050 }
 0x446   :  { %v2061_v24 = vsel %vm1135_vm6, %v2049_v4, %v5653_v3  ;;  %v2102_v54 = vsel %vm1209_vm8, %v2090_v9, %v5651_v6  ;;  %v2159_v4 = vmul.f32 %v2142_v43, %v7451_v55  ;;  %v2118_v9 = vmul.f32 %v2101_v28, %v5118_v40  ;;  %v7515_v55 = vld [vmem:[#allocation35_spill] sm:$0xff] }
 0x447   :  { %v2078_v1 = vmul.f32 %v2061_v24, %v7450_v30  ;;  %v2119_v24 = vmul.f32 %v2102_v54, %v5121_v34 }
 0x449   :  { %v5665_v13 = vpop.permute.xlu0 %2132  ;;  %v5667_v45 = vpop.permute.xlu1 %1975  ;;  %v4161_v51 = vpack.c.bf16 %v2078_v1, %v5458_v20  ;;  %v4167_v1 = vpack.c.bf16 %v2159_v4, %v2118_v9 }
 0x44a   :  { %v2143_v37 = vsel %vm1283_vm7, %v2131_v52, %v5665_v13  ;;  %v2183_v52 = vsel %vm1357_vm9, %v5578_v18, %v2172_v44 }
 0x44b   :  { %v2160_v30 = vmul.f32 %v2143_v37, %v5115_v7  ;;  %4162 = vmatprep.subr.bf16.mxu1 %v4161_v51  ;;  %v1977_v51 = vsel %vm988_vm5, %v5610_v26, %v1966_v19 }
 0x44c   :  { %4164 = vmatpush1.bf16.msra.mxu1 %v4163_v49 }
 0x44d   :  { %v1894_v17 = vpop.permute.xlu0 %1893  ;;  %v5677_v38 = vpop.permute.xlu1 %2016  ;;  %v4165_v50 = vpack.c.bf16 %v2160_v30, %v2119_v24  ;;  %v5697_v24 = vld [vmem:[%s7163_s8] sm:$0xff] }
 0x44f   :  { %4166 = vmatprep.subr.bf16.mxu1 %v4165_v50  ;;  %v2200_v50 = vmul.f32 %v5289_v48, %v2183_v52  ;;  %v1994_v48 = vmul.f32 %v1977_v51, %v5063_v33 }
 0x450   :  { %4168 = vmatpush1.bf16.msra.mxu1 %v4167_v1  ;;  %v7513_v1 = vld [vmem:[#allocation53_spill] sm:$0xff] }
 0x451   :  { %v1935_v14 = vpop.permute.xlu0 %1934  ;;  %v5679_v43 = vpop.permute.xlu1 %2054 }
 0x455   :  { %v5683_v54 = vpop.permute.xlu0 %2173  ;;  %v1872_v37 = vpop.permute.xlu1 %1871 }
 0x456   :  { %v2184_v28 = vsel %vm1357_vm9, %v2172_v44, %v5683_v54  ;;  %v1901_v49 = vsel %vm840_vm4, %v1894_v17, %v1872_v37  ;;  %v1910_v4 = vsel %vm840_vm4, %v1872_v37, %v5572_v0  ;;  %v2018_v44 = vsel %vm1062_vm3, %v5590_v42, %v5627_v56 }
 0x457   :  { %v2201_v30 = vmul.f32 %v5294_v10, %v2184_v28  ;;  %v1911_v52 = vmul.f32 %v1910_v4, %v7513_v1  ;;  %v1918_v37 = vmul.f32 %v1901_v49, %v5148_v16  ;;  %v7514_v28 = vld [vmem:[#allocation52_spill] sm:$0xff] }
 0x459   :  { %v5702_v19 = vpop.permute.xlu0 %1932  ;;  %2320 = vmatprep.subr.mxu1 %v2201_v30  ;;  %v1920_v10 = vpop.permute.xlu1 %1919  ;;  %v7516_v30 = vld [vmem:[#allocation59_spill] sm:$0xff] }
 0x45a   :  { %v1942_v9 = vsel %vm914_vm2, %v1935_v14, %v1920_v10  ;;  %v1951_v0 = vsel %vm914_vm2, %v1920_v10, %v5602_v8  ;;  %2321 = vmatpush1.msra.mxu1 %v2200_v50  ;;  %v2035_v34 = vmul.f32 %v2018_v44, %v7516_v30  ;;  %v1941_v51 = vsel %vm914_vm2, %v5702_v19, %v1935_v14  ;;  %v5721_v8 = vld [vmem:[%s7163_s8 + $0x8] sm:$0xff] }
 0x45b   :  { %v1952_v7 = vmul.f32 %v1951_v0, %v7514_v28  ;;  %v1959_v56 = vmul.f32 %v1942_v9, %v7515_v55  ;;  %3827 = vmatmul.mubr.msk.f32.vlgmr.msra.gmra.mrb[8].mxu1 %vm2220_vm11, %v5697_v24  ;;  %v2059_v9 = vsel %vm1135_vm6, %v5643_v46, %v5592_v36  ;;  %v7517_v0 = vld [vmem:[#allocation34_spill] sm:$0xff] }
 0x45c   :  { %2374 = vmatprep.mubr.f32.mxu1 %v7494_v5  ;;  %v4141_v14 = vpack.c.bf16 %v2035_v34, %v1994_v48  ;;  %v1958_v40 = vmul.f32 %v1941_v51, %v7517_v0  ;;  %v2058_v34 = vsel %vm1135_vm6, %v5594_v2, %v5643_v46 }
 0x45d   :  { %v4139_v50 = vpack.c.bf16 %v1952_v7, %v1911_v52  ;;  %v1961_v49 = vpop.permute.xlu0 %1960  ;;  %v5723_v4 = vpop.permute.xlu1 %1891  ;;  %v4185_v10 = vpack.c.bf16 %v1959_v56, %v1918_v37  ;;  %v2100_v56 = vsel %vm1209_vm8, %v5645_v39, %v5566_v29  ;;  %v2075_v29 = vmul.f32 %v2058_v34, %v5076_v25 }
 0x45e   :  { %v1900_v44 = vsel %vm840_vm4, %v5723_v4, %v1894_v17  ;;  %v1983_v7 = vsel %vm988_vm5, %v5667_v45, %v1961_v49  ;;  %v1992_v52 = vsel %vm988_vm5, %v1961_v49, %v5610_v26  ;;  %v2076_v17 = vmul.f32 %v2059_v9, %v5079_v61  ;;  %v7519_v49 = vld [vmem:[#allocation50_spill] sm:$0xff] }
 0x45f   :  { %v1917_v20 = vmul.f32 %v1900_v44, %v5144_v32  ;;  %4140 = vmatpush1.bf16.msra.mxu0 %v4139_v50  ;;  %3828 = vmatmul.mubr.msk.f32.gmra.mrb[10].mxu1 %vm2220_vm11, %v5721_v8  ;;  %v2141_v26 = vsel %vm1283_vm7, %v5647_v22, %v5596_v27  ;;  %v2000_v50 = vmul.f32 %v1983_v7, %v5163_v41  ;;  %v7520_v9 = vld [vmem:[#allocation42_spill] sm:$0xff] }
 0x460   :  { %4186 = vmatprep.subr.bf16.mxu1 %v4185_v10  ;;  %4142 = vmatprep.subr.bf16.mxu0 %v4141_v14  ;;  %v2099_v14 = vsel %vm1209_vm8, %v5612_v59, %v5645_v39  ;;  %v2140_v34 = vsel %vm1283_vm7, %v5616_v47, %v5647_v22 }
 0x461   :  { %v4187_v36 = vpack.c.bf16 %v1958_v40, %v1917_v20  ;;  %v2002_v48 = vpop.permute.xlu0 %2001  ;;  %v5742_v37 = vpop.permute.xlu1 %2014  ;;  %2522 = vmatprep.mubr.f32.mxu1 %v7494_v5  ;;  %v7518_v40 = vld [vmem:[#allocation56_spill] sm:$0xff] }
 0x462   :  { %v2024_v51 = vsel %vm1062_vm3, %v5677_v38, %v2002_v48  ;;  %v2033_v46 = vsel %vm1062_vm3, %v2002_v48, %v5590_v42  ;;  %v1993_v20 = vmul.f32 %v1992_v52, %v7518_v40  ;;  %v2023_v27 = vsel %vm1062_vm3, %v5742_v37, %v5677_v38 }
 0x463   :  { %v2034_v10 = vmul.f32 %v2033_v46, %v7519_v49  ;;  %v2041_v44 = vmul.f32 %v2024_v51, %v7520_v9  ;;  %4188 = vmatpush1.bf16.msra.mxu1 %v4187_v36  ;;  %v4145_v46 = vpack.c.bf16 %v2076_v17, %v5468_v57  ;;  %v2117_v36 = vmul.f32 %v2100_v56, %v5137_v11  ;;  %v7521_v51 = vld [vmem:[#allocation36_spill] sm:$0xff]  ;;  %v7522_v56 = vld [vmem:[#allocation81_spill] sm:$0xff] }
 0x464   :  { %v2158_v38 = vmul.f32 %v2141_v26, %v5097_v23  ;;  %v4147_v17 = vpack.c.bf16 %v2075_v29, %v5440_v60 }
 0x465   :  { %v4143_v42 = vpack.c.bf16 %v2034_v10, %v1993_v20  ;;  %v5766_v48 = vpop.permute.xlu0 %1973  ;;  %v5768_v52 = vpop.permute.xlu1 %2136  ;;  %v4189_v7 = vpack.c.bf16 %v2041_v44, %v2000_v50  ;;  %v2040_v20 = vmul.f32 %v2023_v27, %v7521_v51  ;;  %v2116_v50 = vmul.f32 %v2099_v14, %v7522_v56  ;;  %v7523_v44 = vld [vmem:[#allocation73_spill] sm:$0xff] }
 0x466   :  { %v1982_v39 = vsel %vm988_vm5, %v5766_v48, %v5667_v45  ;;  %v2157_v0 = vmul.f32 %v2140_v34, %v7523_v44  ;;  %v4149_v27 = vpack.c.bf16 %v2158_v38, %v2117_v36  ;;  %v7526_v38 = vld [vmem:[#allocation17_spill] sm:$0xff] }
 0x467   :  { %v1999_v10 = vmul.f32 %v1982_v39, %v5156_v31  ;;  %4144 = vmatpush1.bf16.msra.mxu0 %v4143_v42  ;;  %4190 = vmatprep.subr.bf16.mxu1 %v4189_v7 }
 0x468   :  { %4146 = vmatprep.subr.bf16.mxu0 %v4145_v46  ;;  %v4151_v14 = vpack.c.bf16 %v2157_v0, %v2116_v50 }
 0x469   :  { %v4191_v22 = vpack.c.bf16 %v2040_v20, %v1999_v10  ;;  %v2057_v32 = vpop.permute.xlu0 %2056  ;;  %v2098_v26 = vpop.permute.xlu1 %2097  ;;  %v7524_v20 = vld [vmem:[#allocation21_spill] sm:$0xff] }
 0x46a   :  { %v2064_v23 = vsel %vm1135_vm6, %v5679_v43, %v2057_v32  ;;  %v2074_v45 = vsel %vm1135_vm6, %v2057_v32, %v5594_v2  ;;  %v2115_v29 = vsel %vm1209_vm8, %v2098_v26, %v5612_v59  ;;  %v7525_v32 = vld [vmem:[#allocation16_spill] sm:$0xff] }
 0x46b   :  { %v2081_v42 = vmul.f32 %v2064_v23, %v5173_v58  ;;  %v2082_v7 = vmul.f32 %v2074_v45, %v5318_v35  ;;  %4148 = vmatpush1.bf16.msra.mxu0 %v4147_v17  ;;  %4192 = vmatpush1.bf16.msra.mxu1 %v4191_v22  ;;  %v2123_v2 = vmul.f32 %v2115_v29, %v7525_v32  ;;  %v7527_v17 = vld [vmem:[#allocation85_spill] sm:$0xff]  ;;  %v7529_v35 = vld [vmem:[#allocation19_spill] sm:$0xff] }
 0x46c   :  { %4150 = vmatprep.subr.bf16.mxu0 %v4149_v27  ;;  %v7528_v22 = vld [vmem:[#allocation57_spill] sm:$0xff] }
 0x46d   :  { %v4195_v46 = vpack.c.bf16 %v2081_v42, %v5508_v15  ;;  %v5793_v34 = vpop.permute.xlu0 %2095  ;;  %v2139_v39 = vpop.permute.xlu1 %2138  ;;  %v4193_v10 = vpack.c.bf16 %v2082_v7, %v7524_v20 }
 0x46e   :  { %v2105_v23 = vsel %vm1209_vm8, %v5793_v34, %v2098_v26  ;;  %v2146_v36 = vsel %vm1283_vm7, %v5768_v52, %v2139_v39  ;;  %v2156_v59 = vsel %vm1283_vm7, %v2139_v39, %v5616_v47  ;;  %v7530_v39 = vld [vmem:[#allocation47_spill] sm:$0xff] }
 0x46f   :  { %v2122_v0 = vmul.f32 %v2105_v23, %v7526_v38  ;;  %v2163_v50 = vmul.f32 %v2146_v36, %v7527_v17  ;;  %v2164_v45 = vmul.f32 %v2156_v59, %v7528_v22  ;;  %4152 = vmatpush1.bf16.msra.mxu0 %v4151_v14  ;;  %4194 = vmatprep.subr.bf16.mxu1 %v4193_v10  ;;  %v7544_v22 = vld [vmem:[#allocation27_spill] sm:$0xff] }
 0x470   :  { %4196 = vmatpush1.bf16.msra.mxu1 %v4195_v46 }
 0x471   :  { %v4199_v27 = vpack.c.bf16 %v2163_v50, %v2122_v0  ;;  %v2168_v42 = vpop.permute.xlu0 %2167  ;;  %v2166_v7 = vpop.permute.xlu1 %2165  ;;  %v4197_v29 = vpack.c.bf16 %v2164_v45, %v2123_v2  ;;  %v7531_v2 = vld [vmem:[#allocation14_spill] sm:$0xff]  ;;  %v7533_v50 = vld [vmem:[#allocation24_spill] sm:$0xff] }
 0x472   :  { %v2182_v26 = vsel %vm1357_vm9, %v2168_v42, %v5578_v18  ;;  %v2181_v32 = vsel %vm1357_vm9, %v2166_v7, %v2168_v42  ;;  %v7534_v42 = vld [vmem:[#allocation43_spill] sm:$0xff] }
 0x473   :  { %v2198_v47 = vmul.f32 %v7529_v35, %v2181_v32  ;;  %4198 = vmatprep.subr.bf16.mxu1 %v4197_v29  ;;  %v2199_v23 = vmul.f32 %v7530_v39, %v2182_v26  ;;  %v7532_v35 = vld [vmem:[#allocation13_spill] sm:$0xff]  ;;  %v7536_v39 = vld [vmem:[#allocation28_spill] sm:$0xff] }
 0x474   :  { %4200 = vmatpush1.bf16.msra.mxu1 %v4199_v27  ;;  %v7535_v26 = vld [vmem:[#allocation69_spill] sm:$0xff] }
 0x475   :  { %v2180_v36 = vpop.permute.xlu0 %2179  ;;  %2243 = vmatprep.subr.mxu0 %v2199_v23  ;;  %v5811_v14 = vpop.permute.xlu1 %2177 }
 0x476   :  { %v2197_v46 = vsel %vm1357_vm9, %v2180_v36, %v2166_v7  ;;  %v2187_v10 = vsel %vm1357_vm9, %v5811_v14, %v2180_v36  ;;  %2244 = vmatpush1.msra.mxu0 %v2198_v47  ;;  %v7537_v36 = vld [vmem:[#allocation66_spill] sm:$0xff] }
 0x477   :  { %v2204_v18 = vmul.f32 %v7531_v2, %v2187_v10  ;;  %3825 = vmatmul.mubr.msk.f32.vlgmr.msra.gmra.mrb[8].mxu0 %vm2220_vm11, %v5697_v24  ;;  %v2205_v32 = vmul.f32 %v7532_v35, %v2197_v46  ;;  %v7538_v10 = vld [vmem:[#allocation26_spill] sm:$0xff] }
 0x478   :  { %2297 = vmatprep.mubr.f32.mxu0 %v7494_v5 }
 0x479   :  { %v1890_v59 = vpop.permute.xlu0 %1889  ;;  %2474 = vmatprep.subr.mxu1 %v2205_v32  ;;  %v1931_v0 = vpop.permute.xlu1 %1930  ;;  %v7539_v32 = vld [vmem:[#allocation22_spill] sm:$0xff] }
 0x47a   :  { %v1898_v45 = vsel %vm840_vm4, %v7533_v50, %v1890_v59  ;;  %v1899_v27 = vsel %vm840_vm4, %v1890_v59, %v5723_v4  ;;  %v1939_v7 = vsel %vm914_vm2, %v7534_v42, %v1931_v0  ;;  %v1940_v29 = vsel %vm914_vm2, %v1931_v0, %v5702_v19  ;;  %2475 = vmatpush1.msra.mxu1 %v2204_v18  ;;  %v7540_v50 = vld [vmem:[#allocation23_spill] sm:$0xff]  ;;  %v7541_v42 = vld [vmem:[#allocation72_spill] sm:$0xff] }
 0x47b   :  { %v1915_v47 = vmul.f32 %v1898_v45, %v7535_v26  ;;  %v1916_v23 = vmul.f32 %v1899_v27, %v7536_v39  ;;  %v1956_v46 = vmul.f32 %v1939_v7, %v7537_v36  ;;  %v1957_v2 = vmul.f32 %v1940_v29, %v7538_v10  ;;  %3826 = vmatmul.mubr.msk.f32.gmra.mrb[10].mxu0 %vm2220_vm11, %v5721_v8  ;;  %v7542_v29 = vld [vmem:[#allocation29_spill] sm:$0xff] }
 0x47c   :  { %3831 = vmatmul.mubr.msk.f32.vlgmr.msra.gmra.mrb[12].mxu1 %vm2220_vm11, %v5697_v24  ;;  %2445 = vmatprep.mubr.f32.mxu0 %v7494_v5 }
 0x47d   :  { %v4171_v4 = vpack.c.bf16 %v1956_v46, %v1915_v47  ;;  %v1972_v35 = vpop.permute.xlu0 %1971  ;;  %v2013_v19 = vpop.permute.xlu1 %2012  ;;  %2528 = vmatprep.mubr.f32.mxu1 %v7494_v5  ;;  %v4169_v18 = vpack.c.bf16 %v1957_v2, %v1916_v23  ;;  %v7543_v46 = vld [vmem:[#allocation64_spill] sm:$0xff] }
 0x47e   :  { %v1980_v59 = vsel %vm988_vm5, %v7539_v32, %v1972_v35  ;;  %v1981_v0 = vsel %vm988_vm5, %v1972_v35, %v5766_v48  ;;  %v2021_v45 = vsel %vm1062_vm3, %v7540_v50, %v2013_v19  ;;  %v2022_v27 = vsel %vm1062_vm3, %v2013_v19, %v5742_v37  ;;  %v7546_v50 = vld [vmem:[#allocation31_spill] sm:$0xff] }
 0x47f   :  { %v1997_v7 = vmul.f32 %v1980_v59, %v7541_v42  ;;  %v1998_v47 = vmul.f32 %v1981_v0, %v7542_v29  ;;  %v2038_v17 = vmul.f32 %v2021_v45, %v7543_v46  ;;  %v2039_v23 = vmul.f32 %v2022_v27, %v7544_v22  ;;  %4170 = vmatprep.subr.bf16.mxu0 %v4169_v18  ;;  %v7545_v59 = vld [vmem:[#allocation30_spill] sm:$0xff] }
 0x480   :  { %3832 = vmatmul.mubr.msk.f32.gmra.mrb[14].mxu1 %vm2220_vm11, %v5721_v8  ;;  %4172 = vmatpush1.bf16.msra.mxu0 %v4171_v4  ;;  %v7547_v4 = vld [vmem:[#allocation49_spill] sm:$0xff] }
 0x481   :  { %v4175_v48 = vpack.c.bf16 %v2038_v17, %v1997_v7  ;;  %v2053_v2 = vpop.permute.xlu0 %2052  ;;  %v2094_v35 = vpop.permute.xlu1 %2093  ;;  %v4173_v32 = vpack.c.bf16 %v2039_v23, %v1998_v47 }
 0x482   :  { %v2062_v37 = vsel %vm1135_vm6, %v5653_v3, %v2053_v2  ;;  %v2063_v19 = vsel %vm1135_vm6, %v2053_v2, %v5679_v43  ;;  %v2103_v18 = vsel %vm1209_vm8, %v5651_v6, %v2094_v35  ;;  %v2104_v17 = vsel %vm1209_vm8, %v2094_v35, %v5793_v34  ;;  %v7548_v3 = vld [vmem:[#allocation18_spill] sm:$0xff]  ;;  %v7552_v34 = vld [vmem:[#allocation32_spill] sm:$0xff] }
 0x483   :  { %v2079_v0 = vmul.f32 %v2062_v37, %v7545_v59  ;;  %v2080_v45 = vmul.f32 %v2063_v19, %v7546_v50  ;;  %4174 = vmatprep.subr.bf16.mxu0 %v4173_v32  ;;  %v7549_v32 = vld [vmem:[#allocation39_spill] sm:$0xff]  ;;  %v7550_v19 = vld [vmem:[#allocation37_spill] sm:$0xff] }
 0x484   :  { %4176 = vmatpush1.bf16.msra.mxu0 %v4175_v48  ;;  %v2120_v37 = vmul.f32 %v2103_v18, %v7549_v32  ;;  %v2121_v6 = vmul.f32 %v2104_v17, %v7550_v19  ;;  %v7551_v50 = vld [vmem:[#allocation33_spill] sm:$0xff]  ;;  %v7554_v18 = vld [vmem:[#allocation15_spill] sm:$0xff] }
 0x485   :  { %v4179_v27 = vpack.c.bf16 %v2079_v0, %v7547_v4  ;;  %v2135_v7 = vpop.permute.xlu0 %2134  ;;  %v2176_v47 = vpop.permute.xlu1 %2175  ;;  %v4177_v23 = vpack.c.bf16 %v2080_v45, %v7548_v3 }
 0x486   :  { %v2144_v43 = vsel %vm1283_vm7, %v5665_v13, %v2135_v7  ;;  %v2145_v2 = vsel %vm1283_vm7, %v2135_v7, %v5768_v52  ;;  %v2186_v35 = vsel %vm1357_vm9, %v2176_v47, %v5811_v14  ;;  %v2185_v13 = vsel %vm1357_vm9, %v5683_v54, %v2176_v47  ;;  %v7553_v52 = vld [vmem:[#allocation20_spill] sm:$0xff] }
 0x487   :  { %v2161_v59 = vmul.f32 %v2144_v43, %v7551_v50  ;;  %v2162_v48 = vmul.f32 %v2145_v2, %v7552_v34  ;;  %4178 = vmatprep.subr.bf16.mxu0 %v4177_v23  ;;  %v2203_v7 = vmul.f32 %v7553_v52, %v2186_v35  ;;  %v2202_v17 = vmul.f32 %v7554_v18, %v2185_v13 }
 0x488   :  { %4180 = vmatpush1.bf16.msra.mxu0 %v4179_v27 }
 0x489   :  { %v4183_v0 = vpack.c.bf16 %v2161_v59, %v2120_v37  ;;  %v4181_v45 = vpack.c.bf16 %v2162_v48, %v2121_v6 }
 0x48b   :  { %4182 = vmatprep.subr.bf16.mxu0 %v4181_v45 }
 0x48c   :  { %4184 = vmatpush1.bf16.msra.mxu0 %v4183_v0 }
 0x48d   :  { %2397 = vmatprep.subr.mxu0 %v2203_v7 }
 0x490   :  { %2398 = vmatpush1.msra.mxu0 %v2202_v17 }
 0x491   :  { %3829 = vmatmul.mubr.msk.f32.vlgmr.msra.gmra.mrb[12].mxu0 %vm2220_vm11, %v5697_v24 }
 0x492   :  { %2451 = vmatprep.mubr.f32.mxu0 %v7494_v5 }
 0x495   :  { %3830 = vmatmul.mubr.msk.f32.gmra.mrb[14].mxu0 %vm2220_vm11, %v5721_v8 }
 0x496   :  { %v2213_v14 = vpop.permute.xlu0 %2212  ;;  %v5886_v23 = vpop.permute.xlu1 %2217 }
 0x52e   :  { %v2370_v59 = vpop.f32.mrb[8].mxu1 }
 0x52f   :  { %v2371_v27 = vadd.f32 %v2370_v59, %v2213_v14  ;;  %v2372_v54 = vpop.f32.mrb[9].mxu1 }
 0x530   :  { %v2373_v43 = vadd.f32 %v2372_v54, %v2213_v14 }
 0x531   :  { %v5884_v47 = vmax.f32 %v2371_v27, 0.0 }
 0x532   :  { %v2376_v2 = vpop.f32.mrb[10].mxu1  ;;  %v5896_v8 = vmax.f32 %v2373_v43, 0.0 }
 0x533   :  { %v2377_v37 = vadd.f32 %v2376_v2, %v5886_v23  ;;  %v2378_v6 = vpop.f32.mrb[11].mxu1  ;;  %2899 = vrot.lane.b32.xlu1 %v5884_v47, %s4468_s17  ;;  %2577 = vrot.lane.b32.xlu0 %v5884_v47, %s4466_s30 }
 0x534   :  { %v2379_v5 = vadd.f32 %v2378_v6, %v5886_v23 }
 0x535   :  { %v5894_v24 = vmax.f32 %v2377_v37, 0.0 }
 0x536   :  { %v5898_v48 = vmax.f32 %v2379_v5, 0.0 }
 0x537   :  { %2981 = vrot.lane.b32.xlu1 %v5884_v47, %s4470_s19  ;;  %2659 = vrot.lane.b32.xlu0 %v5884_v47, %s4464_s2 }
 0x53b   :  { %3063 = vrot.lane.b32.xlu1 %v5884_v47, %s4469_s18  ;;  %2741 = vrot.lane.b32.xlu0 %v5884_v47, %s4467_s14 }
 0x53f   :  { %3145 = vrot.lane.b32.xlu1 %v5884_v47, %s4471_s20  ;;  %2823 = vrot.lane.b32.xlu0 %v5884_v47, %s4465_s29 }
 0x543   :  { %2579 = vrot.lane.b32.xlu1 %v5896_v8, %s4466_s30  ;;  %2901 = vrot.lane.b32.xlu0 %v5896_v8, %s4468_s17 }
 0x547   :  { %2661 = vrot.lane.b32.xlu1 %v5896_v8, %s4464_s2  ;;  %2983 = vrot.lane.b32.xlu0 %v5896_v8, %s4470_s19 }
 0x54a   :  { %v2293_v45 = vpop.f32.mrb[8].mxu0 }
 0x54b   :  { %2743 = vrot.lane.b32.xlu1 %v5896_v8, %s4467_s14  ;;  %3065 = vrot.lane.b32.xlu0 %v5896_v8, %s4469_s18  ;;  %v2295_v13 = vpop.f32.mrb[9].mxu0  ;;  %v2294_v43 = vadd.f32 %v2293_v45, %v2213_v14 }
 0x54c   :  { %v2296_v2 = vadd.f32 %v2295_v13, %v2213_v14 }
 0x54d   :  { %v5954_v50 = vmax.f32 %v2294_v43, 0.0 }
 0x54e   :  { %v2299_v52 = vpop.f32.mrb[10].mxu0  ;;  %v5963_v45 = vmax.f32 %v2296_v2, 0.0 }
 0x54f   :  { %v2524_v7 = vpop.f32.mrb[12].mxu1  ;;  %2825 = vrot.lane.b32.xlu1 %v5896_v8, %s4465_s29  ;;  %3147 = vrot.lane.b32.xlu0 %v5896_v8, %s4471_s20  ;;  %v2301_v18 = vpop.f32.mrb[11].mxu0  ;;  %7556 = vst [vmem:[#allocation40_spill] sm:$0xff] %v5954_v50  ;;  %v2300_v19 = vadd.f32 %v2299_v52, %v5886_v23 }
 0x550   :  { %v2526_v17 = vpop.f32.mrb[13].mxu1  ;;  %v2525_v54 = vadd.f32 %v2524_v7, %v2213_v14  ;;  %7558 = vst [vmem:[#allocation44_spill] sm:$0xff] %v5963_v45 }
 0x551   :  { %v2527_v37 = vadd.f32 %v2526_v17, %v2213_v14 }
 0x552   :  { %v5952_v0 = vmax.f32 %v2525_v54, 0.0 }
 0x553   :  { %v2530_v59 = vpop.f32.mrb[14].mxu1  ;;  %2915 = vrot.lane.b32.xlu1 %v5894_v24, %s4468_s17  ;;  %2591 = vrot.lane.b32.xlu0 %v5894_v24, %s4466_s30  ;;  %v5965_v13 = vmax.f32 %v2527_v37, 0.0  ;;  %v5979_v37 = vmax.f32 %v2300_v19, 0.0 }
 0x554   :  { %v2532_v27 = vpop.f32.mrb[15].mxu1  ;;  %7555 = vst [vmem:[#allocation41_spill] sm:$0xff] %v5952_v0 }
 0x555   :  { %7560 = vst [vmem:[#allocation55_spill] sm:$0xff] %v5979_v37 }
 0x557   :  { %2997 = vrot.lane.b32.xlu1 %v5894_v24, %s4470_s19  ;;  %2673 = vrot.lane.b32.xlu0 %v5894_v24, %s4464_s2 }
 0x55b   :  { %3079 = vrot.lane.b32.xlu1 %v5894_v24, %s4469_s18  ;;  %2755 = vrot.lane.b32.xlu0 %v5894_v24, %s4467_s14 }
 0x55f   :  { %3161 = vrot.lane.b32.xlu1 %v5894_v24, %s4471_s20  ;;  %2837 = vrot.lane.b32.xlu0 %v5894_v24, %s4465_s29 }
 0x563   :  { %2593 = vrot.lane.b32.xlu1 %v5898_v48, %s4466_s30  ;;  %2917 = vrot.lane.b32.xlu0 %v5898_v48, %s4468_s17 }
 0x564   :  { %v2447_v6 = vpop.f32.mrb[12].mxu0 }
 0x565   :  { %v2448_v5 = vadd.f32 %v2447_v6, %v2213_v14  ;;  %v2449_v35 = vpop.f32.mrb[13].mxu0  ;;  %v2531_v6 = vadd.f32 %v2530_v59, %v5886_v23  ;;  %v2533_v59 = vadd.f32 %v2532_v27, %v5886_v23 }
 0x566   :  { %v2450_v34 = vadd.f32 %v2449_v35, %v2213_v14  ;;  %v2302_v14 = vadd.f32 %v2301_v18, %v5886_v23 }
 0x567   :  { %v5957_v7 = vmax.f32 %v2448_v5, 0.0  ;;  %2675 = vrot.lane.b32.xlu1 %v5898_v48, %s4464_s2  ;;  %2999 = vrot.lane.b32.xlu0 %v5898_v48, %s4470_s19  ;;  %v5994_v19 = vmax.f32 %v2531_v6, 0.0 }
 0x568   :  { %v5967_v17 = vmax.f32 %v2450_v34, 0.0  ;;  %v2453_v54 = vpop.f32.mrb[14].mxu0  ;;  %v3678_v34 = vsub.f32 %v5884_v47, %v5952_v0  ;;  %v5992_v58 = vmax.f32 %v2302_v14, 0.0 }
 0x569   :  { %7557 = vst [vmem:[#allocation45_spill] sm:$0xff] %v5957_v7  ;;  %v2454_v35 = vadd.f32 %v2453_v54, %v5886_v23  ;;  %v2455_v52 = vpop.f32.mrb[15].mxu0  ;;  %v3676_v43 = vsub.f32 %v5954_v50, %v5957_v7  ;;  %7564 = vst [vmem:[#allocation25_spill] sm:$0xff] %v5994_v19  ;;  %v3682_v6 = vsub.f32 %v5894_v24, %v5994_v19 }
 0x56a   :  { %7559 = vst [vmem:[#allocation54_spill] sm:$0xff] %v5967_v17  ;;  %v2456_v5 = vadd.f32 %v2455_v52, %v5886_v23  ;;  %v3677_v2 = vsub.f32 %v5963_v45, %v5967_v17  ;;  %v3679_v52 = vsub.f32 %v5896_v8, %v5965_v13  ;;  %7563 = vst [vmem:[#allocation51_spill] sm:$0xff] %v5992_v58  ;;  %v3686_v51 = vand.u32 2147483647, %v3678_v34 }
 0x56b   :  { %v5981_v32 = vmax.f32 %v2454_v35, 0.0  ;;  %2757 = vrot.lane.b32.xlu1 %v5898_v48, %s4467_s14  ;;  %3081 = vrot.lane.b32.xlu0 %v5898_v48, %s4469_s18  ;;  %v3684_v18 = vand.u32 2147483647, %v3676_v43  ;;  %v6002_v23 = vmax.f32 %v2533_v59, 0.0  ;;  %v3690_v59 = vand.u32 2147483647, %v3682_v6 }
 0x56c   :  { %v5988_v54 = vmax.f32 %v2456_v5, 0.0  ;;  %v3685_v38 = vand.u32 2147483647, %v3677_v2  ;;  %v3687_v14 = vand.u32 2147483647, %v3679_v52 }
 0x56d   :  { %7561 = vst [vmem:[#allocation38_spill] sm:$0xff] %v5981_v32  ;;  %v3680_v35 = vsub.f32 %v5979_v37, %v5981_v32 }
 0x56e   :  { %7562 = vst [vmem:[#allocation48_spill] sm:$0xff] %v5988_v54  ;;  %v3692_v46 = vadd.f32 %v3685_v38, %v3684_v18  ;;  %v3681_v27 = vsub.f32 %v5992_v58, %v5988_v54  ;;  %v3683_v38 = vsub.f32 %v5898_v48, %v6002_v23 }
 0x56f   :  { %2839 = vrot.lane.b32.xlu1 %v5898_v48, %s4465_s29  ;;  %3163 = vrot.lane.b32.xlu0 %v5898_v48, %s4471_s20  ;;  %v3688_v5 = vand.u32 2147483647, %v3680_v35 }
 0x570   :  { %v3693_v43 = vadd.f32 %v3692_v46, %v3686_v51  ;;  %v3689_v34 = vand.u32 2147483647, %v3681_v27  ;;  %v3691_v51 = vand.u32 2147483647, %v3683_v38 }
 0x572   :  { %v3694_v2 = vadd.f32 %v3693_v43, %v3687_v14 }
 0x573   :  { %2575 = vrot.lane.b32.xlu1 %v5963_v45, %s4466_s30  ;;  %2573 = vrot.lane.b32.xlu0 %v5954_v50, %s4466_s30 }
 0x574   :  { %v3695_v18 = vadd.f32 %v3694_v2, %v3688_v5 }
 0x576   :  { %v3696_v22 = vadd.f32 %v3695_v18, %v3689_v34 }
 0x577   :  { %2657 = vrot.lane.b32.xlu1 %v5963_v45, %s4464_s2  ;;  %2655 = vrot.lane.b32.xlu0 %v5954_v50, %s4464_s2 }
 0x578   :  { %v3697_v46 = vadd.f32 %v3696_v22, %v3690_v59 }
 0x57a   :  { %v6018_v52 = vadd.f32 %v3697_v46, %v3691_v51 }
 0x57b   :  { %2739 = vrot.lane.b32.xlu1 %v5963_v45, %s4467_s14  ;;  %2737 = vrot.lane.b32.xlu0 %v5954_v50, %s4467_s14 }
 0x57c   :  { %7565 = vst [vmem:[#allocation11_spill] sm:$0xff] %v6018_v52 }
 0x57f   :  { %2821 = vrot.lane.b32.xlu1 %v5963_v45, %s4465_s29  ;;  %2819 = vrot.lane.b32.xlu0 %v5954_v50, %s4465_s29 }
 0x583   :  { %2895 = vrot.lane.b32.xlu0 %v5954_v50, %s4468_s17  ;;  %2911 = vrot.lane.b32.xlu1 %v5979_v37, %s4468_s17 }
 0x587   :  { %2977 = vrot.lane.b32.xlu0 %v5954_v50, %s4470_s19  ;;  %2993 = vrot.lane.b32.xlu1 %v5979_v37, %s4470_s19 }
 0x58b   :  { %3059 = vrot.lane.b32.xlu0 %v5954_v50, %s4469_s18  ;;  %3075 = vrot.lane.b32.xlu1 %v5979_v37, %s4469_s18 }
 0x58f   :  { %3141 = vrot.lane.b32.xlu0 %v5954_v50, %s4471_s20  ;;  %3157 = vrot.lane.b32.xlu1 %v5979_v37, %s4471_s20 }
 0x593   :  { %2897 = vrot.lane.b32.xlu0 %v5963_v45, %s4468_s17  ;;  %2589 = vrot.lane.b32.xlu1 %v5992_v58, %s4466_s30 }
 0x597   :  { %2979 = vrot.lane.b32.xlu0 %v5963_v45, %s4470_s19  ;;  %2671 = vrot.lane.b32.xlu1 %v5992_v58, %s4464_s2 }
 0x59b   :  { %3061 = vrot.lane.b32.xlu0 %v5963_v45, %s4469_s18  ;;  %2753 = vrot.lane.b32.xlu1 %v5992_v58, %s4467_s14 }
 0x59f   :  { %3143 = vrot.lane.b32.xlu0 %v5963_v45, %s4471_s20  ;;  %2835 = vrot.lane.b32.xlu1 %v5992_v58, %s4465_s29 }
 0x5a3   :  { %2907 = vrot.lane.b32.xlu1 %v5952_v0, %s4468_s17  ;;  %2587 = vrot.lane.b32.xlu0 %v5979_v37, %s4466_s30 }
 0x5a5   :  { %v6064_v22 = vpop.permute.xlu0 %2577  ;;  %v6066_v35 = vpop.permute.xlu1 %2899 }
 0x5a6   :  { %7566 = vst [vmem:[#allocation62_spill] sm:$0xff] %v6066_v35 }
 0x5a7   :  { %2989 = vrot.lane.b32.xlu1 %v5952_v0, %s4470_s19  ;;  %2669 = vrot.lane.b32.xlu0 %v5979_v37, %s4464_s2 }
 0x5a9   :  { %v6072_v27 = vpop.permute.xlu0 %2659  ;;  %v6074_v14 = vpop.permute.xlu1 %2981 }
 0x5aa   :  { %7567 = vst [vmem:[#allocation53_spill] sm:$0xff] %v6074_v14 }
 0x5ab   :  { %2599 = vrot.lane.b32.xlu1 %v5994_v19, %s4466_s30  ;;  %2751 = vrot.lane.b32.xlu0 %v5979_v37, %s4467_s14 }
 0x5ad   :  { %v6080_v43 = vpop.permute.xlu0 %2741  ;;  %v6082_v6 = vpop.permute.xlu1 %3063 }
 0x5ae   :  { %7568 = vst [vmem:[#allocation52_spill] sm:$0xff] %v6082_v6  ;;  %v7583_v6 = vld [vmem:[#allocation68_spill] sm:$0xff] }
 0x5af   :  { %2681 = vrot.lane.b32.xlu1 %v5994_v19, %s4464_s2  ;;  %2833 = vrot.lane.b32.xlu0 %v5979_v37, %s4465_s29 }
 0x5b1   :  { %v6088_v5 = vpop.permute.xlu0 %2823  ;;  %v6090_v2 = vpop.permute.xlu1 %3145 }
 0x5b2   :  { %7569 = vst [vmem:[#allocation35_spill] sm:$0xff] %v6090_v2 }
 0x5b3   :  { %2763 = vrot.lane.b32.xlu1 %v5994_v19, %s4467_s14  ;;  %2913 = vrot.lane.b32.xlu0 %v5992_v58, %s4468_s17 }
 0x5b5   :  { %v6096_v38 = vpop.permute.xlu0 %2901  ;;  %v6098_v34 = vpop.permute.xlu1 %2579 }
 0x5b6   :  { %7570 = vst [vmem:[#allocation59_spill] sm:$0xff] %v6096_v38  ;;  %7571 = vst [vmem:[#allocation56_spill] sm:$0xff] %v6098_v34  ;;  %v2603_v38 = vsel %vm840_vm4, %v6064_v22, %v6098_v34 }
 0x5b7   :  { %2845 = vrot.lane.b32.xlu1 %v5994_v19, %s4465_s29  ;;  %2995 = vrot.lane.b32.xlu0 %v5992_v58, %s4470_s19 }
 0x5b9   :  { %v6104_v18 = vpop.permute.xlu0 %2983  ;;  %v6106_v59 = vpop.permute.xlu1 %2661 }
 0x5ba   :  { %7572 = vst [vmem:[#allocation50_spill] sm:$0xff] %v6104_v18  ;;  %7573 = vst [vmem:[#allocation21_spill] sm:$0xff] %v6106_v59 }
 0x5bb   :  { %2923 = vrot.lane.b32.xlu1 %v5994_v19, %s4468_s17  ;;  %3077 = vrot.lane.b32.xlu0 %v5992_v58, %s4469_s18 }
 0x5bd   :  { %v6112_v51 = vpop.permute.xlu0 %3065  ;;  %v6114_v46 = vpop.permute.xlu1 %2743 }
 0x5be   :  { %7574 = vst [vmem:[#allocation19_spill] sm:$0xff] %v6112_v51  ;;  %7575 = vst [vmem:[#allocation47_spill] sm:$0xff] %v6114_v46 }
 0x5bf   :  { %3005 = vrot.lane.b32.xlu1 %v5994_v19, %s4470_s19  ;;  %3159 = vrot.lane.b32.xlu0 %v5992_v58, %s4471_s20 }
 0x5c1   :  { %v6120_v42 = vpop.permute.xlu0 %3147  ;;  %v6122_v31 = vpop.permute.xlu1 %2825 }
 0x5c2   :  { %7576 = vst [vmem:[#allocation14_spill] sm:$0xff] %v6120_v42  ;;  %7577 = vst [vmem:[#allocation13_spill] sm:$0xff] %v6122_v31 }
 0x5c3   :  { %2555 = vrot.lane.b32.xlu1 %v6002_v23, %s4466_s30  ;;  %2585 = vrot.lane.b32.xlu0 %v5952_v0, %s4466_s30 }
 0x5c5   :  { %v6128_v29 = vpop.permute.xlu0 %2591  ;;  %v6130_v10 = vpop.permute.xlu1 %2915 }
 0x5c7   :  { %2651 = vrot.lane.b32.xlu1 %v6002_v23, %s4464_s2  ;;  %2667 = vrot.lane.b32.xlu0 %v5952_v0, %s4464_s2 }
 0x5c9   :  { %v6136_v36 = vpop.permute.xlu0 %2673  ;;  %v6138_v26 = vpop.permute.xlu1 %2997 }
 0x5ca   :  { %7578 = vst [vmem:[#allocation24_spill] sm:$0xff] %v6138_v26 }
 0x5cb   :  { %2733 = vrot.lane.b32.xlu1 %v6002_v23, %s4467_s14  ;;  %2749 = vrot.lane.b32.xlu0 %v5952_v0, %s4467_s14 }
 0x5cd   :  { %v6144_v39 = vpop.permute.xlu0 %2755  ;;  %v6146_v42 = vpop.permute.xlu1 %3079 }
 0x5ce   :  { %7579 = vst [vmem:[#allocation43_spill] sm:$0xff] %v6146_v42 }
 0x5cf   :  { %2815 = vrot.lane.b32.xlu1 %v6002_v23, %s4465_s29  ;;  %2831 = vrot.lane.b32.xlu0 %v5952_v0, %s4465_s29 }
 0x5d1   :  { %v6152_v51 = vpop.permute.xlu0 %2837  ;;  %v6154_v18 = vpop.permute.xlu1 %3161 }
 0x5d2   :  { %7580 = vst [vmem:[#allocation22_spill] sm:$0xff] %v6154_v18  ;;  %v2636_v18 = vmul.f32 %v2603_v38, %v7583_v6 }
 0x5d3   :  { %2925 = vrot.lane.b32.xlu1 %v6002_v23, %s4468_s17  ;;  %2553 = vrot.lane.b32.xlu0 %v5965_v13, %s4466_s30 }
 0x5d5   :  { %v6163_v44 = vpop.permute.xlu0 %2917  ;;  %v6165_v2 = vpop.permute.xlu1 %2593 }
 0x5d6   :  { %7581 = vst [vmem:[#allocation23_spill] sm:$0xff] %v6163_v44  ;;  %7582 = vst [vmem:[#allocation49_spill] sm:$0xff] %v6165_v2  ;;  %v2610_v56 = vsel %vm840_vm4, %v6128_v29, %v6165_v2 }
 0x5d7   :  { %v2644_v42 = vmul.f32 %v2610_v56, %v7583_v6  ;;  %3007 = vrot.lane.b32.xlu1 %v6002_v23, %s4470_s19  ;;  %2649 = vrot.lane.b32.xlu0 %v5965_v13, %s4464_s2 }
 0x5d9   :  { %v6176_v52 = vpop.permute.xlu0 %2999  ;;  %v6178_v34 = vpop.permute.xlu1 %2675  ;;  %v4237_v44 = vpack.c.bf16 %v2644_v42, %v2636_v18 }
 0x5da   :  { %7584 = vst [vmem:[#allocation18_spill] sm:$0xff] %v6176_v52  ;;  %7585 = vst [vmem:[#allocation20_spill] sm:$0xff] %v6178_v34 }
 0x5db   :  { %2903 = vrot.lane.b32.xlu1 %v5957_v7, %s4468_s17  ;;  %2731 = vrot.lane.b32.xlu0 %v5965_v13, %s4467_s14 }
 0x5dc   :  { %4238 = vmatprep.subr.bf16.mxu1 %v4237_v44 }
 0x5dd   :  { %v6184_v38 = vpop.permute.xlu0 %3081  ;;  %v6186_v56 = vpop.permute.xlu1 %2757 }
 0x5de   :  { %7586 = vst [vmem:[#allocation15_spill] sm:$0xff] %v6184_v38  ;;  %7587 = vst [vmem:[#allocation68_spill] sm:$0xff] %v6186_v56  ;;  %v6219_v38 = vld [vmem:[%s7165_s10 + $0x8] sm:$0xff] }
 0x5df   :  { %2985 = vrot.lane.b32.xlu1 %v5957_v7, %s4470_s19  ;;  %2813 = vrot.lane.b32.xlu0 %v5965_v13, %s4465_s29  ;;  %7590 = vst [vmem:[#allocation89_spill] sm:$0xff] %v6219_v38 }
 0x5e0   :  { %3833 = vmatprep.mubr.msk.f32.mxu0 %vm914_vm2, %v6219_v38  ;;  %3837 = vmatprep.mubr.msk.f32.mxu1 %vm914_vm2, %v6219_v38 }
 0x5e1   :  { %v6192_v6 = vpop.permute.xlu0 %3163  ;;  %v6194_v42 = vpop.permute.xlu1 %2839 }
 0x5e2   :  { %7588 = vst [vmem:[#allocation87_spill] sm:$0xff] %v6192_v6  ;;  %7589 = vst [vmem:[#allocation88_spill] sm:$0xff] %v6194_v42 }
 0x5e3   :  { %3067 = vrot.lane.b32.xlu1 %v5957_v7, %s4469_s18  ;;  %2909 = vrot.lane.b32.xlu0 %v5965_v13, %s4468_s17 }
 0x5e5   :  { %v6200_v44 = vpop.permute.xlu0 %2573  ;;  %v6202_v18 = vpop.permute.xlu1 %2575 }
 0x5e7   :  { %3149 = vrot.lane.b32.xlu1 %v5957_v7, %s4471_s20  ;;  %2991 = vrot.lane.b32.xlu0 %v5965_v13, %s4470_s19 }
 0x5e9   :  { %v6208_v2 = vpop.permute.xlu0 %2655  ;;  %v6210_v6 = vpop.permute.xlu1 %2657 }
 0x5eb   :  { %2583 = vrot.lane.b32.xlu1 %v5967_v17, %s4466_s30  ;;  %2581 = vrot.lane.b32.xlu0 %v5957_v7, %s4466_s30 }
 0x5ed   :  { %v6225_v52 = vpop.permute.xlu0 %2737  ;;  %v6227_v11 = vpop.permute.xlu1 %2739 }
 0x5ef   :  { %2665 = vrot.lane.b32.xlu1 %v5967_v17, %s4464_s2  ;;  %2663 = vrot.lane.b32.xlu0 %v5957_v7, %s4464_s2 }
 0x5f1   :  { %v6233_v37 = vpop.permute.xlu0 %2819  ;;  %v6235_v50 = vpop.permute.xlu1 %2821 }
 0x5f3   :  { %2747 = vrot.lane.b32.xlu1 %v5967_v17, %s4467_s14  ;;  %2745 = vrot.lane.b32.xlu0 %v5957_v7, %s4467_s14 }
 0x5f5   :  { %v6241_v38 = vpop.permute.xlu0 %2895  ;;  %v6243_v25 = vpop.permute.xlu1 %2911 }
 0x5f6   :  { %7591 = vst [vmem:[#allocation90_spill] sm:$0xff] %v6241_v38  ;;  %7592 = vst [vmem:[#allocation91_spill] sm:$0xff] %v6243_v25  ;;  %v2774_v25 = vsel %vm988_vm5, %v6144_v39, %v6186_v56  ;;  %v2767_v56 = vsel %vm988_vm5, %v6080_v43, %v6114_v46  ;;  %v7610_v46 = vld [vmem:[#allocation61_spill] sm:$0xff] }
 0x5f7   :  { %2827 = vrot.lane.b32.xlu0 %v5957_v7, %s4465_s29  ;;  %2829 = vrot.lane.b32.xlu1 %v5967_v17, %s4465_s29 }
 0x5f9   :  { %v6249_v14 = vpop.permute.xlu0 %2977  ;;  %v6251_v26 = vpop.permute.xlu1 %2993 }
 0x5fa   :  { %7593 = vst [vmem:[#allocation92_spill] sm:$0xff] %v6249_v14  ;;  %7594 = vst [vmem:[#allocation93_spill] sm:$0xff] %v6251_v26  ;;  %v2692_v26 = vsel %vm914_vm2, %v6136_v36, %v6178_v34 }
 0x5fb   :  { %2905 = vrot.lane.b32.xlu0 %v5967_v17, %s4468_s17  ;;  %2919 = vrot.lane.b32.xlu1 %v5981_v32, %s4468_s17 }
 0x5fd   :  { %v6257_v58 = vpop.permute.xlu0 %3059  ;;  %v6259_v38 = vpop.permute.xlu1 %3075 }
 0x5fe   :  { %7595 = vst [vmem:[#allocation94_spill] sm:$0xff] %v6257_v58  ;;  %7596 = vst [vmem:[#allocation95_spill] sm:$0xff] %v6259_v38  ;;  %v2602_v58 = vsel %vm840_vm4, %v6202_v18, %v6064_v22 }
 0x5ff   :  { %2987 = vrot.lane.b32.xlu0 %v5967_v17, %s4470_s19  ;;  %3001 = vrot.lane.b32.xlu1 %v5981_v32, %s4470_s19  ;;  %v2635_v35 = vmul.f32 %v2602_v58, %v5053_v53 }
 0x601   :  { %v6265_v7 = vpop.permute.xlu0 %3141  ;;  %v6267_v14 = vpop.permute.xlu1 %3157 }
 0x602   :  { %7597 = vst [vmem:[#allocation96_spill] sm:$0xff] %v6265_v7  ;;  %7598 = vst [vmem:[#allocation97_spill] sm:$0xff] %v6267_v14  ;;  %v2685_v7 = vsel %vm914_vm2, %v6072_v27, %v6106_v59  ;;  %v7600_v14 = vld [vmem:[#allocation65_spill] sm:$0xff] }
 0x603   :  { %3069 = vrot.lane.b32.xlu0 %v5967_v17, %s4469_s18  ;;  %3083 = vrot.lane.b32.xlu1 %v5981_v32, %s4469_s18  ;;  %v2726_v61 = vmul.f32 %v2692_v26, %v7600_v14  ;;  %v2684_v26 = vsel %vm914_vm2, %v6210_v6, %v6072_v27 }
 0x604   :  { %v2717_v9 = vmul.f32 %v2684_v26, %v7511_v21 }
 0x605   :  { %v6279_v38 = vpop.permute.xlu0 %2897  ;;  %v2590_v45 = vpop.permute.xlu1 %2589 }
 0x606   :  { %7599 = vst [vmem:[#allocation98_spill] sm:$0xff] %v6279_v38  ;;  %v2609_v34 = vsel %vm840_vm4, %v2590_v45, %v6128_v29  ;;  %v2718_v29 = vmul.f32 %v2685_v7, %v7600_v14 }
 0x607   :  { %v2643_v22 = vmul.f32 %v2609_v34, %v5053_v53  ;;  %2595 = vrot.lane.b32.xlu0 %v5981_v32, %s4466_s30  ;;  %3165 = vrot.lane.b32.xlu1 %v5981_v32, %s4471_s20  ;;  %v2808_v34 = vmul.f32 %v2774_v25, %v5083_v12  ;;  %v2856_v25 = vsel %vm1062_vm3, %v6152_v51, %v6194_v42 }
 0x608   :  { %v4241_v7 = vpack.c.bf16 %v2726_v61, %v2718_v29  ;;  %v2849_v61 = vsel %vm1062_vm3, %v6088_v5, %v6122_v31  ;;  %v2683_v31 = vsel %vm914_vm2, %v6208_v2, %v6210_v6  ;;  %v3655_v42 = vsub.f32 %v5440_v60, %v7547_v4 }
 0x609   :  { %v4239_v59 = vpack.c.bf16 %v2643_v22, %v2635_v35  ;;  %v6303_v58 = vpop.permute.xlu0 %2979  ;;  %v6305_v53 = vpop.permute.xlu1 %2671  ;;  %v2800_v35 = vmul.f32 %v2767_v56, %v5083_v12  ;;  %v7601_v22 = vld [vmem:[#allocation63_spill] sm:$0xff] }
 0x60a   :  { %v2691_v38 = vsel %vm914_vm2, %v6305_v53, %v6136_v36  ;;  %v2766_v36 = vsel %vm988_vm5, %v6227_v11, %v6080_v43  ;;  %v2890_v26 = vmul.f32 %v2856_v25, %v7601_v22 }
 0x60b   :  { %v2725_v27 = vmul.f32 %v2691_v38, %v7511_v21  ;;  %2677 = vrot.lane.b32.xlu0 %v5981_v32, %s4464_s2  ;;  %2597 = vrot.lane.b32.xlu1 %v5988_v54, %s4466_s30  ;;  %v4245_v56 = vpack.c.bf16 %v2808_v34, %v2800_v35  ;;  %v2799_v43 = vmul.f32 %v2766_v36, %v5066_v63 }
 0x60c   :  { %4240 = vmatpush1.bf16.msra.mxu1 %v4239_v59  ;;  %v2848_v59 = vsel %vm1062_vm3, %v6235_v50, %v6088_v5  ;;  %v2601_v36 = vsel %vm840_vm4, %v6200_v44, %v6202_v18  ;;  %v7605_v18 = vpack.c.bf16 %v5898_v48, %v5896_v8 }
 0x60d   :  { %v4243_v14 = vpack.c.bf16 %v2725_v27, %v2717_v9  ;;  %4242 = vmatprep.subr.bf16.mxu1 %v4241_v7  ;;  %v6324_v21 = vpop.permute.xlu0 %3061  ;;  %v6326_v38 = vpop.permute.xlu1 %2753  ;;  %v7602_v7 = vld [vmem:[#allocation60_spill] sm:$0xff] }
 0x60e   :  { %v2773_v12 = vsel %vm988_vm5, %v6326_v38, %v6144_v39  ;;  %v2882_v39 = vmul.f32 %v2849_v61, %v7601_v22  ;;  %v2881_v35 = vmul.f32 %v2848_v59, %v7602_v7  ;;  %v7607_v59 = vpack.c.bf16 %v5894_v24, %v5884_v47 }
 0x60f   :  { %v2807_v9 = vmul.f32 %v2773_v12, %v5066_v63  ;;  %2759 = vrot.lane.b32.xlu0 %v5981_v32, %s4467_s14  ;;  %2679 = vrot.lane.b32.xlu1 %v5988_v54, %s4464_s2 }
 0x610   :  { %4244 = vmatpush1.bf16.msra.mxu1 %v4243_v14  ;;  %v4249_v5 = vpack.c.bf16 %v2890_v26, %v2882_v39 }
 0x611   :  { %v4247_v29 = vpack.c.bf16 %v2807_v9, %v2799_v43  ;;  %4246 = vmatprep.subr.bf16.mxu1 %v4245_v56  ;;  %v6345_v34 = vpop.permute.xlu0 %3143  ;;  %v6347_v27 = vpop.permute.xlu1 %2835  ;;  %v7604_v56 = vld [vmem:[#allocation67_spill] sm:$0xff] }
 0x612   :  { %v2855_v63 = vsel %vm1062_vm3, %v6347_v27, %v6152_v51  ;;  %v2634_v22 = vmul.f32 %v2601_v36, %v7604_v56  ;;  %v3232_v36 = vld [vmem:[%s7166_s11 + $0x8] sm:$0xff] }
 0x613   :  { %v2889_v25 = vmul.f32 %v2855_v63, %v7602_v7  ;;  %2841 = vrot.lane.b32.xlu0 %v5981_v32, %s4465_s29  ;;  %2761 = vrot.lane.b32.xlu1 %v5988_v54, %s4467_s14 }
 0x614   :  { %4248 = vmatpush1.bf16.msra.mxu1 %v4247_v29 }
 0x615   :  { %v4251_v14 = vpack.c.bf16 %v2889_v25, %v2881_v35  ;;  %4250 = vmatprep.subr.bf16.mxu1 %v4249_v5  ;;  %v2588_v61 = vpop.permute.xlu0 %2587  ;;  %v6361_v51 = vpop.permute.xlu1 %2907  ;;  %v3231_v5 = vld [vmem:[%s7166_s11] sm:$0xff] }
 0x616   :  { %7603 = vst [vmem:[#allocation65_spill] sm:$0xff] %v6361_v51  ;;  %v2608_v12 = vsel %vm840_vm4, %v2588_v61, %v2590_v45 }
 0x617   :  { %v2642_v43 = vmul.f32 %v2608_v12, %v7604_v56  ;;  %3073 = vrot.lane.b32.xlu0 %v5965_v13, %s4469_s18  ;;  %2843 = vrot.lane.b32.xlu1 %v5988_v54, %s4465_s29  ;;  %v3233_v56 = vld [vmem:[%s7166_s11 + $0x10] sm:$0xff] }
 0x618   :  { %4252 = vmatpush1.bf16.msra.mxu1 %v4251_v14 }
 0x619   :  { %4254 = vmatprep.subr.bf16.mxu1 %v7605_v18  ;;  %v6373_v26 = vpop.permute.xlu0 %2669  ;;  %v6375_v9 = vpop.permute.xlu1 %2989  ;;  %v4201_v45 = vpack.c.bf16 %v2642_v43, %v2634_v22  ;;  %v3234_v22 = vld [vmem:[%s7166_s11 + $0x18] sm:$0xff] }
 0x61a   :  { %7606 = vst [vmem:[#allocation63_spill] sm:$0xff] %v6375_v9 }
 0x61b   :  { %3151 = vrot.lane.b32.xlu0 %v5967_v17, %s4471_s20  ;;  %3071 = vrot.lane.b32.xlu1 %v5952_v0, %s4469_s18  ;;  %v2690_v17 = vsel %vm914_vm2, %v6373_v26, %v6305_v53 }
 0x61c   :  { %4202 = vmatprep.subr.bf16.mxu0 %v4201_v45  ;;  %4256 = vmatpush1.bf16.msra.mxu1 %v7607_v59  ;;  %v2724_v51 = vmul.f32 %v2690_v17, %v7610_v46 }
 0x61d   :  { %v6384_v39 = vpop.permute.xlu0 %2751  ;;  %v6386_v8 = vpop.permute.xlu1 %2599 }
 0x61e   :  { %v2772_v53 = vsel %vm988_vm5, %v6384_v39, %v6326_v38  ;;  %v3656_v38 = vsub.f32 %v5468_v57, %v7548_v3 }
 0x61f   :  { %2921 = vrot.lane.b32.xlu0 %v5988_v54, %s4468_s17  ;;  %3087 = vrot.lane.b32.xlu1 %v5994_v19, %s4469_s18 }
 0x621   :  { %v6392_v48 = vpop.permute.xlu0 %2833  ;;  %v6394_v29 = vpop.permute.xlu1 %2681 }
 0x623   :  { %3003 = vrot.lane.b32.xlu0 %v5988_v54, %s4470_s19  ;;  %3089 = vrot.lane.b32.xlu1 %v6002_v23, %s4469_s18 }
 0x625   :  { %v6400_v47 = vpop.permute.xlu0 %2913  ;;  %v6402_v24 = vpop.permute.xlu1 %2763 }
 0x627   :  { %3085 = vrot.lane.b32.xlu0 %v5988_v54, %s4469_s18  ;;  %3153 = vrot.lane.b32.xlu1 %v5952_v0, %s4471_s20 }
 0x629   :  { %v6408_v63 = vpop.permute.xlu0 %2995  ;;  %v6410_v7 = vpop.permute.xlu1 %2845 }
 0x62b   :  { %3167 = vrot.lane.b32.xlu0 %v5988_v54, %s4471_s20  ;;  %3169 = vrot.lane.b32.xlu1 %v5994_v19, %s4471_s20  ;;  %v2716_v19 = vmul.f32 %v2683_v31, %v7610_v46 }
 0x62d   :  { %v6416_v35 = vpop.permute.xlu0 %3077  ;;  %v6418_v25 = vpop.permute.xlu1 %2923 }
 0x62e   :  { %7608 = vst [vmem:[#allocation60_spill] sm:$0xff] %v6418_v25 }
 0x62f   :  { %3155 = vrot.lane.b32.xlu0 %v5965_v13, %s4471_s20  ;;  %3171 = vrot.lane.b32.xlu1 %v6002_v23, %s4471_s20 }
 0x631   :  { %v6430_v14 = vpop.permute.xlu0 %3159  ;;  %v6432_v12 = vpop.permute.xlu1 %3005 }
 0x632   :  { %7609 = vst [vmem:[#allocation67_spill] sm:$0xff] %v6432_v12 }
 0x633   :  { %3237 = vperm.xlu0 %4372, %v3231_v5   ;;  %3242 = vperm.xlu1 %4373, %v3232_v36  }
 0x635   :  { %v6440_v43 = vpop.permute.xlu0 %2585  ;;  %v2556_v18 = vpop.permute.xlu1 %2555 }
 0x637   :  { %3247 = vperm.xlu0 %4372, %v3233_v56   ;;  %3252 = vperm.xlu1 %4373, %v3234_v22   ;;  %v2614_v56 = vsel %vm840_vm4, %v6386_v8, %v2556_v18  ;;  %v2632_v22 = vsel %vm840_vm4, %v2556_v18, %v2588_v61 }
 0x638   :  { %v2641_v18 = vmul.f32 %v2632_v22, %v7513_v1  ;;  %v6472_v60 = vmul.f32 %v2614_v56, %v5148_v16 }
 0x639   :  { %v6442_v45 = vpop.permute.xlu0 %2667  ;;  %v2652_v59 = vpop.permute.xlu1 %2651 }
 0x63a   :  { %v2696_v31 = vsel %vm914_vm2, %v6394_v29, %v2652_v59  ;;  %v2714_v46 = vsel %vm914_vm2, %v2652_v59, %v6373_v26  ;;  %v2854_v26 = vsel %vm1062_vm3, %v6392_v48, %v6347_v27 }
 0x63b   :  { %v2723_v3 = vmul.f32 %v2714_v46, %v7514_v28  ;;  %v2888_v46 = vmul.f32 %v2854_v26, %v7516_v30 }
 0x63d   :  { %v6444_v9 = vpop.permute.xlu0 %2749  ;;  %v2734_v5 = vpop.permute.xlu1 %2733 }
 0x63e   :  { %v2778_v27 = vsel %vm988_vm5, %v6402_v24, %v2734_v5 }
 0x641   :  { %v6446_v36 = vpop.permute.xlu0 %2831  ;;  %v2816_v54 = vpop.permute.xlu1 %2815 }
 0x645   :  { %v2554_v12 = vpop.permute.xlu0 %2553  ;;  %v6460_v25 = vpop.permute.xlu1 %2925 }
 0x646   :  { %v2607_v6 = vsel %vm840_vm4, %v6440_v43, %v2554_v12  ;;  %v2631_v61 = vsel %vm840_vm4, %v2554_v12, %v6200_v44  ;;  %v3659_v44 = vand.u32 2147483647, %v3655_v42  ;;  %v2765_v12 = vsel %vm988_vm5, %v6225_v52, %v6227_v11 }
 0x647   :  { %v2633_v4 = vmul.f32 %v2631_v61, %v7513_v1  ;;  %v6476_v17 = vmul.f32 %v2607_v6, %v5148_v16  ;;  %v4205_v16 = vpack.c.bf16 %v2724_v51, %v2716_v19  ;;  %v2806_v61 = vmul.f32 %v2772_v53, %v5063_v33  ;;  %v7644_v6 = vld [vmem:[#allocation35_spill] sm:$0xff] }
 0x648   :  { %v6501_v42 = vmul.f32 %v2696_v31, %v7515_v55  ;;  %v2798_v59 = vmul.f32 %v2765_v12, %v5063_v33  ;;  %v2796_v53 = vsel %vm988_vm5, %v2734_v5, %v6384_v39  ;;  %v6528_v12 = vmul.f32 %v2778_v27, %v5163_v41 }
 0x649   :  { %v4203_v56 = vpack.c.bf16 %v2641_v18, %v2633_v4  ;;  %v2650_v22 = vpop.permute.xlu0 %2649  ;;  %v6487_v1 = vpop.permute.xlu1 %3007  ;;  %v2847_v18 = vsel %vm1062_vm3, %v6233_v37, %v6235_v50  ;;  %v2805_v50 = vmul.f32 %v2796_v53, %v7518_v40 }
 0x64a   :  { %v2689_v57 = vsel %vm914_vm2, %v6442_v45, %v2650_v22  ;;  %v2713_v11 = vsel %vm914_vm2, %v2650_v22, %v6208_v2  ;;  %v3660_v2 = vand.u32 2147483647, %v3656_v38  ;;  %v4209_v38 = vpack.c.bf16 %v2806_v61, %v2798_v59  ;;  %v7614_v59 = vld [vmem:[#allocation42_spill] sm:$0xff] }
 0x64b   :  { %v2715_v19 = vmul.f32 %v2713_v11, %v7514_v28  ;;  %v6505_v51 = vmul.f32 %v2689_v57, %v7515_v55  ;;  %4204 = vmatpush1.bf16.msra.mxu0 %v4203_v56  ;;  %v3657_v55 = vsub.f32 %v5434_v62, %v5508_v15  ;;  %v2880_v15 = vmul.f32 %v2847_v18, %v7516_v30  ;;  %v7617_v18 = vld [vmem:[#allocation62_spill] sm:$0xff] }
 0x64c   :  { %4206 = vmatprep.subr.bf16.mxu0 %v4205_v16  ;;  %v2860_v22 = vsel %vm1062_vm3, %v6410_v7, %v2816_v54  ;;  %v7612_v16 = vld [vmem:[#allocation58_spill] sm:$0xff]  ;;  %v2935_v30 = vsel %vm1135_vm6, %v6400_v47, %v6130_v10 }
 0x64d   :  { %v4207_v4 = vpack.c.bf16 %v2723_v3, %v2715_v19  ;;  %v2732_v28 = vpop.permute.xlu0 %2731  ;;  %v6515_v31 = vpop.permute.xlu1 %2903  ;;  %v3658_v61 = vsub.f32 %v7612_v16, %v7524_v20  ;;  %v4213_v20 = vpack.c.bf16 %v2888_v46, %v2880_v15  ;;  %v6554_v27 = vmul.f32 %v2860_v22, %v7614_v59  ;;  %v7622_v15 = vld [vmem:[#allocation12_spill] sm:$0xff] }
 0x64e   :  { %7611 = vst [vmem:[#allocation61_spill] sm:$0xff] %v6515_v31  ;;  %v2771_v39 = vsel %vm988_vm5, %v6444_v9, %v2732_v28  ;;  %v2795_v5 = vsel %vm988_vm5, %v2732_v28, %v6225_v52  ;;  %v2878_v52 = vsel %vm1062_vm3, %v2816_v54, %v6392_v48  ;;  %v7623_v22 = vld [vmem:[#allocation44_spill] sm:$0xff] }
 0x64f   :  { %v2797_v56 = vmul.f32 %v2795_v5, %v7518_v40  ;;  %v6532_v62 = vmul.f32 %v2771_v39, %v5163_v41  ;;  %4208 = vmatpush1.bf16.msra.mxu0 %v4207_v4  ;;  %v3661_v40 = vand.u32 2147483647, %v3657_v55  ;;  %v3663_v41 = vadd.f32 %v3660_v2, %v3659_v44  ;;  %7615 = vst [vmem:[#allocation42_spill] sm:$0xff] %v6554_v27  ;;  %v7618_v4 = vld [vmem:[#allocation98_spill] sm:$0xff] }
 0x650   :  { %4210 = vmatprep.subr.bf16.mxu0 %v4209_v38  ;;  %v2887_v19 = vmul.f32 %v2878_v52, %v7519_v49  ;;  %v3662_v2 = vand.u32 2147483647, %v3658_v61  ;;  %v2928_v28 = vsel %vm1135_vm6, %v7618_v4, %v7617_v18  ;;  %v7624_v52 = vld [vmem:[#allocation51_spill] sm:$0xff]  ;;  %v7625_v61 = vld [vmem:[#allocation24_spill] sm:$0xff] }
 0x651   :  { %v4211_v26 = vpack.c.bf16 %v2805_v50, %v2797_v56  ;;  %v2814_v57 = vpop.permute.xlu0 %2813  ;;  %v6541_v11 = vpop.permute.xlu1 %2985  ;;  %v3664_v39 = vadd.f32 %v3663_v41, %v3661_v40  ;;  %v7621_v50 = vld [vmem:[#allocation71_spill] sm:$0xff]  ;;  %v4217_v16 = vpack.c.bf16 %v7624_v52, %v7623_v22  ;;  %v7633_v22 = vld [vmem:[#allocation93_spill] sm:$0xff] }
 0x652   :  { %7613 = vst [vmem:[#allocation58_spill] sm:$0xff] %v6541_v11  ;;  %v2853_v54 = vsel %vm1062_vm3, %v6446_v36, %v2814_v57  ;;  %v2877_v48 = vsel %vm1062_vm3, %v2814_v57, %v6233_v37  ;;  %v2970_v56 = vmul.f32 %v2935_v30, %v7621_v50  ;;  %v7626_v57 = vld [vmem:[#allocation90_spill] sm:$0xff]  ;;  %v2962_v41 = vmul.f32 %v2928_v28, %v7621_v50  ;;  %v7635_v52 = vld [vmem:[#allocation11_spill] sm:$0xff] }
 0x653   :  { %v2879_v44 = vmul.f32 %v2877_v48, %v7519_v49  ;;  %v6558_v53 = vmul.f32 %v2853_v54, %v7614_v59  ;;  %4212 = vmatpush1.bf16.msra.mxu0 %v4211_v26  ;;  %v7620_v49 = vld [vmem:[#allocation91_spill] sm:$0xff]  ;;  %v3017_v26 = vsel %vm1209_vm8, %v6408_v63, %v7625_v61  ;;  %v2927_v40 = vsel %vm1135_vm6, %v7626_v57, %v7618_v4  ;;  %v7628_v54 = vld [vmem:[#allocation70_spill] sm:$0xff]  ;;  %v7631_v59 = vld [vmem:[#allocation40_spill] sm:$0xff] }
 0x654   :  { %4214 = vmatprep.subr.bf16.mxu0 %v4213_v20  ;;  %v2934_v38 = vsel %vm1135_vm6, %v7620_v49, %v6400_v47  ;;  %v7627_v47 = vld [vmem:[#allocation53_spill] sm:$0xff]  ;;  %v3016_v4 = vsel %vm1209_vm8, %v7633_v22, %v6408_v63  ;;  %v7634_v28 = vld [vmem:[#allocation82_spill] sm:$0xff]  ;;  %v2961_v5 = vmul.f32 %v2927_v40, %v7628_v54  ;;  %v7638_v63 = vld [vmem:[#allocation52_spill] sm:$0xff] }
 0x655   :  { %7616 = vst [vmem:[#allocation99_spill] sm:$0xff] %v6558_v53  ;;  %v4215_v55 = vpack.c.bf16 %v2887_v19, %v2879_v44  ;;  %v6563_v37 = vpop.permute.xlu0 %2909  ;;  %v6565_v46 = vpop.permute.xlu1 %3067  ;;  %v3010_v30 = vsel %vm1209_vm8, %v6303_v58, %v7627_v47  ;;  %v2969_v48 = vmul.f32 %v2934_v38, %v7628_v54  ;;  %v7632_v44 = vld [vmem:[#allocation55_spill] sm:$0xff]  ;;  %v3052_v50 = vmul.f32 %v3017_v26, %v7634_v28 }
 0x656   :  { %7619 = vst [vmem:[#allocation62_spill] sm:$0xff] %v6565_v46  ;;  %250 = vadd.xlane.f32.xlu0 %v7622_v15  ;;  %v3665_v15 = vadd.f32 %v3664_v39, %v3662_v2  ;;  %v7636_v38 = vld [vmem:[#allocation43_spill] sm:$0xff]  ;;  %v3044_v39 = vmul.f32 %v3010_v30, %v7634_v28  ;;  %v3092_v26 = vsel %vm1283_vm7, %v6324_v21, %v7638_v63  ;;  %v7642_v28 = vld [vmem:[#allocation22_spill] sm:$0xff] }
 0x657   :  { %4216 = vmatpush1.bf16.msra.mxu0 %v4215_v55  ;;  %v4219_v55 = vpack.c.bf16 %v7632_v44, %v7631_v59  ;;  %v3099_v3 = vsel %vm1283_vm7, %v6416_v35, %v7636_v38  ;;  %v7637_v59 = vld [vmem:[#allocation92_spill] sm:$0xff] }
 0x658   :  { %4218 = vmatprep.subr.bf16.mxu0 %v4217_v16  ;;  %v4221_v16 = vpack.c.bf16 %v2970_v56, %v2962_v41  ;;  %v3009_v2 = vsel %vm1209_vm8, %v7637_v59, %v6303_v58  ;;  %v4223_v56 = vpack.c.bf16 %v2969_v48, %v2961_v5  ;;  %v7639_v41 = vld [vmem:[#allocation81_spill] sm:$0xff]  ;;  %v4225_v33 = vpack.c.bf16 %v3052_v50, %v3044_v39  ;;  %v7643_v5 = vld [vmem:[#allocation94_spill] sm:$0xff] }
 0x659   :  { %v6587_v20 = vpop.permute.xlu0 %2991  ;;  %v6589_v19 = vpop.permute.xlu1 %3149  ;;  %v3051_v40 = vmul.f32 %v3016_v4, %v7639_v41  ;;  %v3043_v30 = vmul.f32 %v3009_v2, %v7639_v41  ;;  %v3091_v48 = vsel %vm1283_vm7, %v7643_v5, %v6324_v21  ;;  %v7645_v50 = vld [vmem:[#allocation73_spill] sm:$0xff]  ;;  %v4379_v21 = vld [vmem:[%s7160_s5 + $0x48] ss:$0 sm:$0xff] }
 0x65a   :  { %7629 = vst [vmem:[#allocation98_spill] sm:$0xff] %v6587_v20  ;;  %7630 = vst [vmem:[#allocation91_spill] sm:$0xff] %v6589_v19  ;;  %3699 = vadd.xlane.f32.xlu0 %v7635_v52  ;;  %v7641_v52 = vld [vmem:[#allocation74_spill] sm:$0xff]  ;;  %v7661_v20 = vld [vmem:[#allocation87_spill] sm:$0xff] }
 0x65b   :  { %4220 = vmatpush1.bf16.msra.mxu0 %v4219_v55  ;;  %3666 = vadd.xlane.f32.xlu1 %v3665_v15  ;;  %v7640_v55 = vld [vmem:[#allocation95_spill] sm:$0xff]  ;;  %v3134_v58 = vmul.f32 %v3099_v3, %v7641_v52  ;;  %v3126_v4 = vmul.f32 %v3092_v26, %v7641_v52  ;;  %v4227_v3 = vpack.c.bf16 %v3051_v40, %v3043_v30  ;;  %v7647_v40 = vld [vmem:[#allocation96_spill] sm:$0xff] }
 0x65c   :  { %4222 = vmatprep.subr.bf16.mxu0 %v4221_v16  ;;  %v3098_v15 = vsel %vm1283_vm7, %v7640_v55, %v6416_v35  ;;  %v3181_v16 = vsel %vm1357_vm9, %v6430_v14, %v7642_v28  ;;  %v3174_v35 = vsel %vm1357_vm9, %v6345_v34, %v7644_v6  ;;  %v3125_v52 = vmul.f32 %v3091_v48, %v7645_v50 }
 0x65d   :  { %v6610_v54 = vpop.permute.xlu0 %2581  ;;  %v6612_v44 = vpop.permute.xlu1 %2583  ;;  %v3133_v39 = vmul.f32 %v3098_v15, %v7645_v50  ;;  %v4229_v26 = vpack.c.bf16 %v3134_v58, %v3126_v4  ;;  %v3173_v15 = vsel %vm1357_vm9, %v7647_v40, %v6345_v34  ;;  %v3208_v30 = vmul.f32 %v4379_v21, %v3174_v35  ;;  %v7648_v35 = vld [vmem:[#allocation23_spill] sm:$0xff] }
 0x65e   :  { %v7649_v50 = vld [vmem:[#allocation59_spill] sm:$0xff] }
 0x65f   :  { %4224 = vmatpush1.bf16.msra.mxu0 %v4223_v56  ;;  %v7646_v56 = vld [vmem:[#allocation97_spill] sm:$0xff]  ;;  %v4231_v5 = vpack.c.bf16 %v3133_v39, %v3125_v52  ;;  %v2930_v39 = vsel %vm1135_vm6, %v7649_v50, %v6515_v31  ;;  %v7660_v31 = vld [vmem:[#allocation15_spill] sm:$0xff] }
 0x660   :  { %4226 = vmatprep.subr.bf16.mxu0 %v4225_v33  ;;  %v3180_v55 = vsel %vm1357_vm9, %v7646_v56, %v6430_v14  ;;  %v3216_v33 = vmul.f32 %v4379_v21, %v3181_v16  ;;  %v4380_v14 = vld [vmem:[%s7160_s5 + $0x40] ss:$0 sm:$0xff] }
 0x661   :  { %v6630_v2 = vpop.permute.xlu0 %2663  ;;  %v6632_v41 = vpop.permute.xlu1 %2665  ;;  %v3215_v56 = vmul.f32 %v4380_v14, %v3180_v55  ;;  %v3207_v16 = vmul.f32 %v4380_v14, %v3173_v15  ;;  %v6661_v55 = vld [vmem:[%s7165_s10] sm:$0xff]  ;;  %v7654_v14 = vld [vmem:[#allocation76_spill] sm:$0xff] }
 0x662   :  { %v4233_v58 = vpack.c.bf16 %v3216_v33, %v3208_v30  ;;  %v7653_v15 = vld [vmem:[#allocation18_spill] sm:$0xff] }
 0x663   :  { %4228 = vmatpush1.bf16.msra.mxu0 %v4227_v3  ;;  %v4235_v48 = vpack.c.bf16 %v3215_v56, %v3207_v16  ;;  %v2936_v3 = vsel %vm1135_vm6, %v6130_v10, %v7648_v35  ;;  %v6672_v56 = vld [vmem:[%s7165_s10 + $0x18] sm:$0xff]  ;;  %v7650_v10 = vld [vmem:[#allocation75_spill] sm:$0xff]  ;;  %v3018_v30 = vsel %vm1209_vm8, %v7625_v61, %v7653_v15 }
 0x664   :  { %4230 = vmatprep.subr.bf16.mxu0 %v4229_v26  ;;  %v2971_v21 = vmul.f32 %v2936_v3, %v7650_v10  ;;  %v6702_v61 = vld [vmem:[%s7165_s10 + $0x28] sm:$0xff] }
 0x665   :  { %v6647_v53 = vpop.permute.xlu0 %2745  ;;  %v6649_v27 = vpop.permute.xlu1 %2747 }
 0x667   :  { %4232 = vmatpush1.bf16.msra.mxu0 %v4231_v5  ;;  %v2929_v5 = vsel %vm1135_vm6, %v7617_v18, %v7649_v50 }
 0x668   :  { %4234 = vmatprep.subr.bf16.mxu0 %v4233_v58  ;;  %v2963_v18 = vmul.f32 %v2929_v5, %v7650_v10  ;;  %v2964_v58 = vmul.f32 %v2930_v39, %v7654_v14  ;;  %v7656_v5 = vld [vmem:[#allocation19_spill] sm:$0xff] }
 0x669   :  { %v6651_v4 = vpop.permute.xlu0 %2827  ;;  %v6653_v34 = vpop.permute.xlu1 %2829  ;;  %v3093_v39 = vsel %vm1283_vm7, %v7638_v63, %v7656_v5 }
 0x66a   :  { %v4259_v10 = vpack.c.bf16 %v2971_v21, %v2963_v18  ;;  %v7662_v21 = vld [vmem:[#allocation14_spill] sm:$0xff] }
 0x66b   :  { %4236 = vmatpush1.bf16.msra.mxu0 %v4235_v48  ;;  %v6694_v48 = vld [vmem:[%s7165_s10 + $0x10] sm:$0xff]  ;;  %v3175_v18 = vsel %vm1357_vm9, %v7644_v6, %v7662_v21  ;;  %v6744_v6 = vld [vmem:[%s7165_s10 + $0x38] sm:$0xff] }
 0x66d   :  { %v6675_v33 = vpop.permute.xlu0 %2905  ;;  %v6677_v26 = vpop.permute.xlu1 %2919 }
 0x66e   :  { %7651 = vst [vmem:[#allocation71_spill] sm:$0xff] %v6675_v33  ;;  %7652 = vst [vmem:[#allocation12_spill] sm:$0xff] %v6677_v26  ;;  %v2937_v52 = vsel %vm1135_vm6, %v7648_v35, %v6677_v26  ;;  %3332 = vmatmul.mubr.f32.vlgmr.msra.gmra.mrb[16].mxu0 %v6661_v55  ;;  %v7655_v35 = vld [vmem:[#allocation50_spill] sm:$0xff]  ;;  %v7659_v26 = vld [vmem:[#allocation79_spill] sm:$0xff]  ;;  %v3100_v33 = vsel %vm1283_vm7, %v7636_v38, %v7660_v31 }
 0x66f   :  { %v2972_v16 = vmul.f32 %v2937_v52, %v7654_v14  ;;  %3834 = vmatprep.mubr.msk.f32.mxu0 %vm914_vm2, %v6672_v56  ;;  %v3012_v3 = vsel %vm1209_vm8, %v7655_v35, %v6541_v11  ;;  %v3011_v50 = vsel %vm1209_vm8, %v7627_v47, %v7655_v35  ;;  %v3053_v11 = vmul.f32 %v3018_v30, %v7659_v26  ;;  %v6735_v38 = vld [vmem:[%s7165_s10 + $0x20] sm:$0xff] }
 0x670   :  { %v3182_v47 = vsel %vm1357_vm9, %v7642_v28, %v7661_v20  ;;  %v3045_v28 = vmul.f32 %v3011_v50, %v7659_v26 }
 0x671   :  { %v6710_v52 = vpop.permute.xlu0 %2987  ;;  %v6712_v14 = vpop.permute.xlu1 %3001  ;;  %v4257_v40 = vpack.c.bf16 %v2972_v16, %v2964_v58  ;;  %v7663_v58 = vld [vmem:[#allocation80_spill] sm:$0xff] }
 0x672   :  { %7657 = vst [vmem:[#allocation44_spill] sm:$0xff] %v6710_v52  ;;  %7658 = vst [vmem:[#allocation51_spill] sm:$0xff] %v6712_v14  ;;  %v3019_v63 = vsel %vm1209_vm8, %v7653_v15, %v6712_v14  ;;  %3338 = vmatmul.mubr.f32.gmra.mrb[18].mxu0 %v6694_v48  ;;  %v3046_v30 = vmul.f32 %v3012_v3, %v7663_v58  ;;  %v3094_v15 = vsel %vm1283_vm7, %v7656_v5, %v6565_v46  ;;  %v4381_v3 = vld [vmem:[%s7160_s5 + $0x50] ss:$0 sm:$0xff] }
 0x673   :  { %v3054_v16 = vmul.f32 %v3019_v63, %v7663_v58  ;;  %4258 = vmatprep.subr.bf16.mxu1 %v4257_v40  ;;  %3835 = vmatprep.mubr.msk.f32.mxu0 %vm914_vm2, %v6702_v61  ;;  %v7664_v40 = vld [vmem:[#allocation77_spill] sm:$0xff]  ;;  %v3217_v63 = vmul.f32 %v4381_v3, %v3182_v47  ;;  %v4263_v14 = vpack.c.bf16 %v3053_v11, %v3045_v28  ;;  %v7670_v28 = vld [vmem:[#allocation60_spill] sm:$0xff] }
 0x674   :  { %4260 = vmatpush1.bf16.msra.mxu1 %v4259_v10  ;;  %v3135_v35 = vmul.f32 %v3100_v33, %v7664_v40  ;;  %v3127_v5 = vmul.f32 %v3093_v39, %v7664_v40  ;;  %v3209_v10 = vmul.f32 %v4381_v3, %v3175_v18  ;;  %v7667_v33 = vld [vmem:[#allocation78_spill] sm:$0xff]  ;;  %v3176_v47 = vsel %vm1357_vm9, %v7662_v21, %v6589_v19  ;;  %v6769_v11 = vld [vmem:[%s7165_s10 + $0x30] sm:$0xff] }
 0x675   :  { %v6750_v58 = vpop.permute.xlu0 %3069  ;;  %v6752_v26 = vpop.permute.xlu1 %3083  ;;  %v4261_v50 = vpack.c.bf16 %v3054_v16, %v3046_v30  ;;  %v3128_v52 = vmul.f32 %v3094_v15, %v7667_v33  ;;  %v6780_v15 = vsel %vm1135_vm6, %v7670_v28, %v6460_v25  ;;  %v7681_v21 = vld [vmem:[#allocation20_spill] sm:$0xff] }
 0x676   :  { %7665 = vst [vmem:[#allocation24_spill] sm:$0xff] %v6750_v58  ;;  %7666 = vst [vmem:[#allocation90_spill] sm:$0xff] %v6752_v26  ;;  %v3101_v46 = vsel %vm1283_vm7, %v7660_v31, %v6752_v26  ;;  %3344 = vmatmul.mubr.f32.gmra.mrb[20].mxu0 %v6735_v38  ;;  %v4271_v16 = vpack.c.bf16 %v3217_v63, %v3209_v10  ;;  %v7674_v10 = vld [vmem:[#allocation89_spill] sm:$0xff]  ;;  %v7676_v31 = vld [vmem:[#allocation56_spill] sm:$0xff] }
 0x677   :  { %v3136_v58 = vmul.f32 %v3101_v46, %v7667_v33  ;;  %4262 = vmatprep.subr.bf16.mxu1 %v4261_v50  ;;  %3836 = vmatprep.mubr.msk.f32.mxu0 %vm914_vm2, %v6744_v6  ;;  %v4267_v46 = vpack.c.bf16 %v3135_v35, %v3127_v5  ;;  %v6787_v50 = vsel %vm1135_vm6, %v6460_v25, %v7620_v49  ;;  %v7672_v33 = vld [vmem:[#allocation67_spill] sm:$0xff]  ;;  %v4382_v35 = vld [vmem:[%s7160_s5 + $0x58] ss:$0 sm:$0xff] }
 0x678   :  { %4264 = vmatpush1.bf16.msra.mxu1 %v4263_v14  ;;  %v6792_v30 = vsel %vm1209_vm8, %v7672_v33, %v6487_v1  ;;  %v3210_v63 = vmul.f32 %v4382_v35, %v3176_v47  ;;  %v2605_v25 = vsel %vm840_vm4, %v6610_v54, %v6612_v44  ;;  %v7673_v49 = vld [vmem:[#allocation49_spill] sm:$0xff] }
 0x679   :  { %v2596_v40 = vpop.permute.xlu0 %2595  ;;  %v6782_v3 = vpop.permute.xlu1 %3165  ;;  %v4265_v14 = vpack.c.bf16 %v3136_v58, %v3128_v52  ;;  %v7675_v47 = vld [vmem:[#allocation65_spill] sm:$0xff] }
 0x67a   :  { %7671 = vst [vmem:[#allocation53_spill] sm:$0xff] %v6782_v3  ;;  %v3183_v5 = vsel %vm1357_vm9, %v7661_v20, %v6782_v3  ;;  %3350 = vmatmul.mubr.f32.gmra.mrb[22].mxu0 %v6769_v11  ;;  %v2611_v52 = vsel %vm840_vm4, %v7673_v49, %v2596_v40  ;;  %v6811_v18 = vsel %vm1135_vm6, %v7675_v47, %v6563_v37  ;;  %v7679_v33 = vld [vmem:[#allocation69_spill] sm:$0xff] }
 0x67b   :  { %v3218_v58 = vmul.f32 %v4382_v35, %v3183_v5  ;;  %4266 = vmatprep.subr.bf16.mxu1 %v4265_v14  ;;  %3841 = vmatprep.mubr.msk.f32.mxu0 %vm914_vm2, %v7674_v10  ;;  %v6816_v20 = vsel %vm1135_vm6, %v6563_v37, %v7626_v57  ;;  %v2604_v3 = vsel %vm840_vm4, %v7676_v31, %v6610_v54  ;;  %v7677_v35 = vld [vmem:[#allocation21_spill] sm:$0xff]  ;;  %v7678_v31 = vld [vmem:[#allocation28_spill] sm:$0xff] }
 0x67c   :  { %v2606_v14 = vsel %vm840_vm4, %v6612_v44, %v6440_v43  ;;  %4268 = vmatpush1.bf16.msra.mxu1 %v4267_v46  ;;  %v2686_v5 = vsel %vm914_vm2, %v7677_v35, %v6630_v2  ;;  %v2687_v49 = vsel %vm914_vm2, %v6630_v2, %v6632_v41  ;;  %v2688_v37 = vsel %vm914_vm2, %v6632_v41, %v6442_v45  ;;  %v7680_v35 = vld [vmem:[#allocation83_spill] sm:$0xff] }
 0x67d   :  { %v2678_v57 = vpop.permute.xlu0 %2677  ;;  %v2598_v19 = vpop.permute.xlu1 %2597  ;;  %v4269_v54 = vpack.c.bf16 %v3218_v58, %v3210_v63  ;;  %v2638_v26 = vmul.f32 %v2605_v25, %v7678_v31  ;;  %v2645_v43 = vmul.f32 %v2611_v52, %v7679_v33  ;;  %v2639_v0 = vmul.f32 %v2606_v14, %v7680_v35  ;;  %v7682_v63 = vld [vmem:[#allocation66_spill] sm:$0xff] }
 0x67e   :  { %v2612_v44 = vsel %vm840_vm4, %v2596_v40, %v2598_v19  ;;  %v2613_v46 = vsel %vm840_vm4, %v2598_v19, %v6386_v8  ;;  %v2693_v2 = vsel %vm914_vm2, %v7681_v21, %v2678_v57  ;;  %v2637_v41 = vmul.f32 %v2604_v3, %v7679_v33  ;;  %v7683_v52 = vld [vmem:[#allocation26_spill] sm:$0xff] }
 0x67f   :  { %v2646_v39 = vmul.f32 %v2612_v44, %v7678_v31  ;;  %v2647_v45 = vmul.f32 %v2613_v46, %v7680_v35  ;;  %4270 = vmatprep.subr.bf16.mxu1 %v4269_v54  ;;  %v2719_v25 = vmul.f32 %v2686_v5, %v7682_v63  ;;  %v2720_v58 = vmul.f32 %v2687_v49, %v7683_v52  ;;  %v7684_v40 = vld [vmem:[#allocation34_spill] sm:$0xff]  ;;  %v7686_v31 = vld [vmem:[#allocation68_spill] sm:$0xff] }
 0x680   :  { %v2721_v32 = vmul.f32 %v2688_v37, %v7684_v40  ;;  %4272 = vmatpush1.bf16.msra.mxu1 %v4271_v16  ;;  %v2769_v8 = vsel %vm988_vm5, %v6647_v53, %v6649_v27  ;;  %v2770_v19 = vsel %vm988_vm5, %v6649_v27, %v6444_v9  ;;  %v7685_v3 = vpack.c.bf16 %v6472_v60, %v6476_v17  ;;  %v7687_v60 = vld [vmem:[#allocation47_spill] sm:$0xff]  ;;  %v7688_v27 = vld [vmem:[#allocation29_spill] sm:$0xff] }
 0x681   :  { %v4311_v21 = vpack.c.bf16 %v2647_v45, %v2639_v0  ;;  %v2760_v14 = vpop.permute.xlu0 %2759  ;;  %v2680_v33 = vpop.permute.xlu1 %2679  ;;  %v4273_v5 = vpack.c.bf16 %v2646_v39, %v2638_v26  ;;  %v4275_v49 = vpack.c.bf16 %v2645_v43, %v2637_v41  ;;  %v2727_v37 = vmul.f32 %v2693_v2, %v7682_v63  ;;  %v7689_v39 = vld [vmem:[#allocation84_spill] sm:$0xff] }
 0x682   :  { %4310 = vmatprep.subr.bf16.mxu1 %v7685_v3  ;;  %v2694_v16 = vsel %vm914_vm2, %v2678_v57, %v2680_v33  ;;  %v2695_v54 = vsel %vm914_vm2, %v2680_v33, %v6394_v29  ;;  %v2775_v44 = vsel %vm988_vm5, %v7686_v31, %v2760_v14  ;;  %v2768_v17 = vsel %vm988_vm5, %v7687_v60, %v6647_v53  ;;  %v7691_v41 = vld [vmem:[#allocation72_spill] sm:$0xff] }
 0x683   :  { %v2728_v0 = vmul.f32 %v2694_v16, %v7683_v52  ;;  %v2729_v9 = vmul.f32 %v2695_v54, %v7684_v40  ;;  %3421 = vmatmul.mubr.f32.vlgmr.msra.gmra.mrb[16].mxu1 %v6661_v55  ;;  %4274 = vmatprep.subr.bf16.mxu0 %v4273_v5  ;;  %v2802_v26 = vmul.f32 %v2769_v8, %v7688_v27  ;;  %v7692_v8 = vld [vmem:[#allocation88_spill] sm:$0xff] }
 0x684   :  { %v2803_v57 = vmul.f32 %v2770_v19, %v7689_v39  ;;  %4276 = vmatpush1.bf16.msra.mxu0 %v4275_v49  ;;  %4312 = vmatpush1.bf16.msra.mxu1 %v4311_v21  ;;  %v2851_v29 = vsel %vm1062_vm3, %v6651_v4, %v6653_v34  ;;  %v7690_v35 = vpack.c.bf16 %v6501_v42, %v6505_v51  ;;  %v7694_v21 = vld [vmem:[#allocation27_spill] sm:$0xff]  ;;  %v7696_v16 = vld [vmem:[#allocation64_spill] sm:$0xff] }
 0x685   :  { %v4315_v43 = vpack.c.bf16 %v2729_v9, %v2721_v32  ;;  %v2842_v46 = vpop.permute.xlu0 %2841  ;;  %v2762_v2 = vpop.permute.xlu1 %2761  ;;  %3838 = vmatprep.mubr.msk.f32.mxu1 %vm914_vm2, %v6672_v56  ;;  %v4277_v53 = vpack.c.bf16 %v2728_v0, %v2720_v58  ;;  %v4279_v45 = vpack.c.bf16 %v2727_v37, %v2719_v25  ;;  %v2809_v63 = vmul.f32 %v2775_v44, %v7691_v41  ;;  %v7693_v25 = vld [vmem:[#allocation13_spill] sm:$0xff]  ;;  %v7697_v31 = vld [vmem:[#allocation36_spill] sm:$0xff]  ;;  %v7698_v9 = vld [vmem:[#allocation86_spill] sm:$0xff] }
 0x686   :  { %4314 = vmatprep.subr.bf16.mxu1 %v7690_v35  ;;  %v2776_v52 = vsel %vm988_vm5, %v2760_v14, %v2762_v2  ;;  %v2777_v40 = vsel %vm988_vm5, %v2762_v2, %v6402_v24  ;;  %v2857_v32 = vsel %vm1062_vm3, %v7692_v8, %v2842_v46  ;;  %v2801_v51 = vmul.f32 %v2768_v17, %v7691_v41 }
 0x687   :  { %v2810_v19 = vmul.f32 %v2776_v52, %v7688_v27  ;;  %v2811_v42 = vmul.f32 %v2777_v40, %v7689_v39  ;;  %3427 = vmatmul.mubr.f32.gmra.mrb[18].mxu1 %v6694_v48  ;;  %4278 = vmatprep.subr.bf16.mxu0 %v4277_v53  ;;  %v2850_v58 = vsel %vm1062_vm3, %v7693_v25, %v6651_v4  ;;  %v7705_v53 = vld [vmem:[#allocation48_spill] sm:$0xff] }
 0x688   :  { %v2852_v24 = vsel %vm1062_vm3, %v6653_v34, %v6446_v36  ;;  %4280 = vmatpush1.bf16.msra.mxu0 %v4279_v45  ;;  %4316 = vmatpush1.bf16.msra.mxu1 %v4315_v43  ;;  %v2884_v14 = vmul.f32 %v2851_v29, %v7694_v21  ;;  %v7695_v5 = vpack.c.bf16 %v6528_v12, %v6532_v62  ;;  %v7701_v29 = vld [vmem:[#allocation99_spill] sm:$0xff]  ;;  %v7707_v40 = vld [vmem:[#allocation16_spill] sm:$0xff] }
 0x689   :  { %v4319_v3 = vpack.c.bf16 %v2811_v42, %v2803_v57  ;;  %v6895_v33 = vpop.permute.xlu0 %3073  ;;  %v2844_v49 = vpop.permute.xlu1 %2843  ;;  %3839 = vmatprep.mubr.msk.f32.mxu1 %vm914_vm2, %v6702_v61  ;;  %v4281_v4 = vpack.c.bf16 %v2810_v19, %v2802_v26  ;;  %v4283_v37 = vpack.c.bf16 %v2809_v63, %v2801_v51  ;;  %v2891_v54 = vmul.f32 %v2857_v32, %v7696_v16  ;;  %v7700_v57 = vld [vmem:[#allocation42_spill] sm:$0xff]  ;;  %v7706_v63 = vld [vmem:[#allocation17_spill] sm:$0xff]  ;;  %v7708_v32 = vld [vmem:[#allocation71_spill] sm:$0xff] }
 0x68a   :  { %4318 = vmatprep.subr.bf16.mxu1 %v7695_v5  ;;  %v2858_v36 = vsel %vm1062_vm3, %v2842_v46, %v2844_v49  ;;  %v2859_v34 = vsel %vm1062_vm3, %v2844_v49, %v6410_v7  ;;  %v2885_v44 = vmul.f32 %v2852_v24, %v7697_v31  ;;  %v3042_v62 = vsel %vm1209_vm8, %v6487_v1, %v7633_v22  ;;  %v7699_v7 = vld [vmem:[#allocation98_spill] sm:$0xff]  ;;  %v7711_v25 = vld [vmem:[#allocation44_spill] sm:$0xff] }
 0x68b   :  { %v2892_v0 = vmul.f32 %v2858_v36, %v7694_v21  ;;  %v2893_v12 = vmul.f32 %v2859_v34, %v7697_v31  ;;  %3433 = vmatmul.mubr.f32.gmra.mrb[20].mxu1 %v6735_v38  ;;  %4282 = vmatprep.subr.bf16.mxu0 %v4281_v4  ;;  %v6915_v60 = vmul.f32 %v6811_v18, %v7698_v9  ;;  %v7703_v46 = vld [vmem:[#allocation46_spill] sm:$0xff]  ;;  %v7714_v5 = vld [vmem:[#allocation12_spill] sm:$0xff]  ;;  %v7716_v36 = vld [vmem:[#allocation31_spill] sm:$0xff] }
 0x68c   :  { %v2883_v17 = vmul.f32 %v2850_v58, %v7696_v16  ;;  %4284 = vmatpush1.bf16.msra.mxu0 %v4283_v37  ;;  %4320 = vmatpush1.bf16.msra.mxu1 %v4319_v3  ;;  %v3041_v27 = vsel %vm1209_vm8, %v7699_v7, %v7637_v59  ;;  %v7702_v43 = vpack.c.bf16 %v7700_v57, %v7701_v29  ;;  %v7704_v59 = vld [vmem:[#allocation54_spill] sm:$0xff] }
 0x68d   :  { %v4323_v26 = vpack.c.bf16 %v2893_v12, %v2885_v44  ;;  %v6921_v39 = vpop.permute.xlu0 %3151  ;;  %v3072_v1 = vpop.permute.xlu1 %3071  ;;  %3840 = vmatprep.mubr.msk.f32.mxu1 %vm914_vm2, %v6744_v6  ;;  %v4285_v22 = vpack.c.bf16 %v2892_v0, %v2884_v14  ;;  %v2975_v18 = vmul.f32 %v6780_v15, %v7698_v9  ;;  %v2968_v35 = vmul.f32 %v6816_v20, %v7703_v46  ;;  %v7709_v20 = vld [vmem:[#allocation61_spill] sm:$0xff]  ;;  %v7712_v58 = vld [vmem:[#allocation58_spill] sm:$0xff]  ;;  %v7717_v44 = vld [vmem:[#allocation39_spill] sm:$0xff] }
 0x68e   :  { %4322 = vmatprep.subr.bf16.mxu1 %v7702_v43  ;;  %v4287_v2 = vpack.c.bf16 %v2891_v54, %v2883_v17  ;;  %v4289_v45 = vpack.c.bf16 %v7705_v53, %v7704_v59  ;;  %v2976_v41 = vmul.f32 %v6787_v50, %v7703_v46  ;;  %v6938_v52 = vmul.f32 %v6792_v30, %v7706_v63  ;;  %v7710_v50 = vld [vmem:[#allocation63_spill] sm:$0xff]  ;;  %v7715_v16 = vld [vmem:[#allocation30_spill] sm:$0xff] }
 0x68f   :  { %v3058_v8 = vmul.f32 %v3042_v62, %v7707_v40  ;;  %3439 = vmatmul.mubr.f32.gmra.mrb[22].mxu1 %v6769_v11  ;;  %4286 = vmatprep.subr.bf16.mxu0 %v4285_v22  ;;  %v3050_v15 = vmul.f32 %v3041_v27, %v7707_v40  ;;  %v2931_v19 = vsel %vm1135_vm6, %v7709_v20, %v7708_v32  ;;  %v7718_v12 = vld [vmem:[#allocation38_spill] sm:$0xff]  ;;  %v7719_v62 = vld [vmem:[#allocation45_spill] sm:$0xff]  ;;  %v7728_v59 = vld [vmem:[#allocation51_spill] sm:$0xff] }
 0x690   :  { %v2932_v42 = vsel %vm1135_vm6, %v7708_v32, %v7675_v47  ;;  %4288 = vmatpush1.bf16.msra.mxu0 %v4287_v2  ;;  %4324 = vmatpush1.bf16.msra.mxu1 %v4323_v26  ;;  %v4331_v30 = vpack.c.bf16 %v2975_v18, %v6915_v60  ;;  %v3015_v51 = vsel %vm1209_vm8, %v7710_v50, %v7699_v7  ;;  %v7722_v60 = vld [vmem:[#allocation41_spill] sm:$0xff]  ;;  %v7725_v26 = vld [vmem:[#allocation24_spill] sm:$0xff]  ;;  %v7726_v57 = vld [vmem:[#allocation62_spill] sm:$0xff] }
 0x691   :  { %v3013_v24 = vsel %vm1209_vm8, %v7712_v58, %v7711_v25  ;;  %v2922_v21 = vpop.permute.xlu0 %2921  ;;  %4290 = vmatprep.subr.bf16.mxu0 %v4289_v45  ;;  %v7713_v14 = vpack.c.bf16 %v6002_v23, %v5965_v13  ;;  %v3088_v3 = vpop.permute.xlu1 %3087  ;;  %v3014_v47 = vsel %vm1209_vm8, %v7711_v25, %v7710_v50  ;;  %v4329_v37 = vpack.c.bf16 %v2976_v41, %v2968_v35  ;;  %v7724_v7 = vld [vmem:[#allocation37_spill] sm:$0xff]  ;;  %v7727_v35 = vld [vmem:[#allocation94_spill] sm:$0xff]  ;;  %v7729_v45 = vld [vmem:[#allocation67_spill] sm:$0xff] }
 0x692   :  { %v2938_v49 = vsel %vm1135_vm6, %v7714_v5, %v2922_v21  ;;  %v2939_v4 = vsel %vm1135_vm6, %v2922_v21, %v7670_v28  ;;  %3845 = vmatprep.mubr.msk.f32.mxu1 %vm914_vm2, %v7674_v10  ;;  %v2965_v54 = vmul.f32 %v2931_v19, %v7715_v16  ;;  %v2966_v13 = vmul.f32 %v2932_v42, %v7716_v36  ;;  %v7721_v28 = vld [vmem:[#allocation25_spill] sm:$0xff] }
 0x693   :  { %4326 = vmatprep.subr.bf16.mxu1 %v7713_v14  ;;  %v2973_v23 = vmul.f32 %v2938_v49, %v7715_v16  ;;  %v2974_v34 = vmul.f32 %v2939_v4, %v7716_v36  ;;  %v3049_v31 = vmul.f32 %v3015_v51, %v7706_v63  ;;  %v3047_v0 = vmul.f32 %v3013_v24, %v7717_v44  ;;  %v7730_v63 = vld [vmem:[#allocation95_spill] sm:$0xff]  ;;  %v7731_v20 = vld [vmem:[#allocation57_spill] sm:$0xff] }
 0x694   :  { %v7720_v9 = vpack.c.bf16 %v7718_v12, %v7719_v62  ;;  %v7723_v17 = vpack.c.bf16 %v7721_v28, %v7722_v60  ;;  %v4333_v10 = vpack.c.bf16 %v3058_v8, %v3050_v15  ;;  %v3048_v27 = vmul.f32 %v3014_v47, %v7724_v7  ;;  %v7732_v47 = vld [vmem:[#allocation33_spill] sm:$0xff] }
 0x695   :  { %v3095_v29 = vsel %vm1283_vm7, %v7726_v57, %v7725_v26  ;;  %v4295_v43 = vpack.c.bf16 %v2973_v23, %v2965_v54  ;;  %v3004_v22 = vpop.permute.xlu0 %3003  ;;  %v3090_v18 = vpop.permute.xlu1 %3089  ;;  %v4293_v46 = vpack.c.bf16 %v2974_v34, %v2966_v13  ;;  %v3123_v2 = vsel %vm1283_vm7, %v6895_v33, %v7727_v35  ;;  %v7733_v49 = vld [vmem:[#allocation85_spill] sm:$0xff]  ;;  %v7736_v13 = vld [vmem:[#allocation91_spill] sm:$0xff] }
 0x696   :  { %4292 = vmatpush1.bf16.msra.mxu0 %v7720_v9  ;;  %4328 = vmatpush1.bf16.msra.mxu1 %v7723_v17  ;;  %v3020_v53 = vsel %vm1209_vm8, %v7728_v59, %v3004_v22  ;;  %v3021_v41 = vsel %vm1209_vm8, %v3004_v22, %v7729_v45  ;;  %v3124_v40 = vsel %vm1283_vm7, %v3090_v18, %v7730_v63  ;;  %v7737_v9 = vld [vmem:[#allocation53_spill] sm:$0xff]  ;;  %v4383_v17 = vld [vmem:[%s7160_s5 + $0x60] ss:$0 sm:$0xff]  ;;  %v4385_v45 = vld [vmem:[%s7160_s5 + $0x70] ss:$0 sm:$0xff] }
 0x697   :  { %4330 = vmatprep.subr.bf16.mxu1 %v4329_v37  ;;  %v3055_v8 = vmul.f32 %v3020_v53, %v7717_v44  ;;  %v3056_v15 = vmul.f32 %v3021_v41, %v7724_v7  ;;  %v3104_v32 = vsel %vm1283_vm7, %v3088_v3, %v3090_v18  ;;  %v3140_v19 = vmul.f32 %v3124_v40, %v7731_v20  ;;  %v7739_v59 = vld [vmem:[#allocation97_spill] sm:$0xff] }
 0x698   :  { %4294 = vmatprep.subr.bf16.mxu0 %v4293_v46  ;;  %v4335_v42 = vpack.c.bf16 %v6938_v52, %v3049_v31  ;;  %v3096_v50 = vsel %vm1283_vm7, %v7725_v26, %v3072_v1  ;;  %v3132_v51 = vmul.f32 %v3123_v2, %v7731_v20  ;;  %v3097_v25 = vsel %vm1283_vm7, %v3072_v1, %v6895_v33  ;;  %v7734_v52 = vld [vmem:[#allocation90_spill] sm:$0xff]  ;;  %v7738_v46 = vld [vmem:[#allocation96_spill] sm:$0xff]  ;;  %v4386_v63 = vld [vmem:[%s7160_s5 + $0x78] ss:$0 sm:$0xff] }
 0x699   :  { %v4299_v58 = vpack.c.bf16 %v3055_v8, %v3047_v0  ;;  %v3086_v24 = vpop.permute.xlu0 %3085  ;;  %v3154_v21 = vpop.permute.xlu1 %3153  ;;  %v4297_v14 = vpack.c.bf16 %v3056_v15, %v3048_v27  ;;  %v3129_v5 = vmul.f32 %v3095_v29, %v7732_v47  ;;  %v3139_v4 = vmul.f32 %v3104_v32, %v7733_v49 }
 0x69a   :  { %4296 = vmatpush1.bf16.msra.mxu0 %v4295_v43  ;;  %4332 = vmatpush1.bf16.msra.mxu1 %v4331_v30  ;;  %v3102_v37 = vsel %vm1283_vm7, %v7734_v52, %v3086_v24  ;;  %v3103_v16 = vsel %vm1283_vm7, %v3086_v24, %v3088_v3  ;;  %v7735_v30 = vld [vmem:[#allocation32_spill] sm:$0xff]  ;;  %v4337_v1 = vpack.c.bf16 %v3140_v19, %v3132_v51 }
 0x69b   :  { %4334 = vmatprep.subr.bf16.mxu1 %v4333_v10  ;;  %v3130_v54 = vmul.f32 %v3096_v50, %v7735_v30  ;;  %v3137_v36 = vmul.f32 %v3102_v37, %v7732_v47  ;;  %v3138_v33 = vmul.f32 %v3103_v16, %v7735_v30  ;;  %4298 = vmatprep.subr.bf16.mxu0 %v4297_v14 }
 0x69c   :  { %v3177_v23 = vsel %vm1357_vm9, %v7736_v13, %v6921_v39  ;;  %v3131_v34 = vmul.f32 %v3097_v25, %v7733_v49  ;;  %v3178_v31 = vsel %vm1357_vm9, %v6921_v39, %v3154_v21  ;;  %v4384_v39 = vld [vmem:[%s7160_s5 + $0x68] ss:$0 sm:$0xff] }
 0x69d   :  { %v4303_v3 = vpack.c.bf16 %v3137_v36, %v3129_v5  ;;  %v3168_v44 = vpop.permute.xlu0 %3167  ;;  %v3170_v0 = vpop.permute.xlu1 %3169  ;;  %v4301_v12 = vpack.c.bf16 %v3138_v33, %v3130_v54  ;;  %v3211_v10 = vmul.f32 %v4383_v17, %v3177_v23  ;;  %v3212_v7 = vmul.f32 %v4384_v39, %v3178_v31 }
 0x69e   :  { %4300 = vmatpush1.bf16.msra.mxu0 %v4299_v58  ;;  %4336 = vmatpush1.bf16.msra.mxu1 %v4335_v42  ;;  %v4339_v62 = vpack.c.bf16 %v3139_v4, %v3131_v34  ;;  %v3184_v28 = vsel %vm1357_vm9, %v7737_v9, %v3168_v44  ;;  %v3185_v60 = vsel %vm1357_vm9, %v3168_v44, %v3170_v0 }
 0x69f   :  { %4338 = vmatprep.subr.bf16.mxu1 %v4337_v1  ;;  %v3219_v27 = vmul.f32 %v4383_v17, %v3184_v28  ;;  %v3220_v26 = vmul.f32 %v4384_v39, %v3185_v60  ;;  %4302 = vmatprep.subr.bf16.mxu0 %v4301_v12 }
 0x6a1   :  { %v4307_v57 = vpack.c.bf16 %v3219_v27, %v3211_v10  ;;  %v3156_v29 = vpop.permute.xlu0 %3155  ;;  %v3172_v43 = vpop.permute.xlu1 %3171  ;;  %v4305_v22 = vpack.c.bf16 %v3220_v26, %v3212_v7 }
 0x6a2   :  { %4304 = vmatpush1.bf16.msra.mxu0 %v4303_v3  ;;  %4340 = vmatpush1.bf16.msra.mxu1 %v4339_v62  ;;  %v3179_v18 = vsel %vm1357_vm9, %v3154_v21, %v3156_v29  ;;  %v3205_v35 = vsel %vm1357_vm9, %v3156_v29, %v7738_v46  ;;  %v3186_v2 = vsel %vm1357_vm9, %v3170_v0, %v3172_v43 }
 0x6a3   :  { %v3206_v53 = vsel %vm1357_vm9, %v3172_v43, %v7739_v59  ;;  %v3213_v41 = vmul.f32 %v4385_v45, %v3179_v18  ;;  %v3214_v40 = vmul.f32 %v4386_v63, %v3205_v35  ;;  %v3221_v8 = vmul.f32 %v4385_v45, %v3186_v2  ;;  %4306 = vmatprep.subr.bf16.mxu0 %v4305_v22 }
 0x6a4   :  { %v3222_v15 = vmul.f32 %v4386_v63, %v3206_v53 }
 0x6a5   :  { %v4343_v32 = vpack.c.bf16 %v3221_v8, %v3213_v41 }
 0x6a6   :  { %4308 = vmatpush1.bf16.msra.mxu0 %v4307_v57  ;;  %v4341_v20 = vpack.c.bf16 %v3222_v15, %v3214_v40 }
 0x6a8   :  { %4342 = vmatprep.subr.bf16.mxu1 %v4341_v20 }
 0x6a9   :  { %3510 = vmatmul.mubr.f32.vlgmr.msra.gmra.mrb[24].mxu0 %v6661_v55  ;;  %4344 = vmatpush1.bf16.msra.mxu1 %v4343_v32 }
 0x6aa   :  { %3842 = vmatprep.mubr.msk.f32.mxu0 %vm914_vm2, %v6672_v56 }
 0x6ac   :  { %3599 = vmatmul.mubr.f32.vlgmr.msra.gmra.mrb[24].mxu1 %v6661_v55 }
 0x6ad   :  { %3516 = vmatmul.mubr.f32.gmra.mrb[26].mxu0 %v6694_v48  ;;  %3846 = vmatprep.mubr.msk.f32.mxu1 %vm914_vm2, %v6672_v56 }
 0x6ae   :  { %3843 = vmatprep.mubr.msk.f32.mxu0 %vm914_vm2, %v6702_v61 }
 0x6b0   :  { %3605 = vmatmul.mubr.f32.gmra.mrb[26].mxu1 %v6694_v48 }
 0x6b1   :  { %3522 = vmatmul.mubr.f32.gmra.mrb[28].mxu0 %v6735_v38  ;;  %3847 = vmatprep.mubr.msk.f32.mxu1 %vm914_vm2, %v6702_v61 }
 0x6b2   :  { %3844 = vmatprep.mubr.msk.f32.mxu0 %vm914_vm2, %v6744_v6  ;;  %v7058_v55 = vpop.permute.xlu0 %3237  ;;  %v7060_v56 = vpop.permute.xlu1 %3242 }
 0x6b4   :  { %3611 = vmatmul.mubr.f32.gmra.mrb[28].mxu1 %v6735_v38 }
 0x6b5   :  { %3528 = vmatmul.mubr.f32.gmra.mrb[30].mxu0 %v6769_v11  ;;  %3848 = vmatprep.mubr.msk.f32.mxu1 %vm914_vm2, %v6744_v6 }
 0x6b6   :  { %v7062_v48 = vpop.permute.xlu0 %3247  ;;  %v7064_v42 = vpop.permute.xlu1 %3252 }
 0x6b8   :  { %3617 = vmatmul.mubr.f32.gmra.mrb[30].mxu1 %v6769_v11 }
 0x6e3   :  { %v251_v19 = vpop.xlane.xlu0 %250 }
 0x6e4   :  { %v252_v50 = vrot.slane %v251_v19, 4 }
 0x6e6   :  { %v253_v61 = vadd.f32 %v252_v50, %v251_v19 }
 0x6e7   :  { %v3700_v51 = vpop.xlane.xlu0 %3699 }
 0x6e8   :  { %v254_v25 = vrot.slane %v253_v61, 2  ;;  %v3701_v58 = vrot.slane %v3700_v51, 4  ;;  %v3667_v38 = vpop.xlane.xlu1 %3666 }
 0x6e9   :  { %v3668_v24 = vrot.slane %v3667_v38, 4 }
 0x6ea   :  { %v3702_v21 = vadd.f32 %v3701_v58, %v3700_v51  ;;  %v255_v6 = vadd.f32 %v254_v25, %v253_v61 }
 0x6eb   :  { %v3669_v14 = vadd.f32 %v3668_v24, %v3667_v38 }
 0x6ec   :  { %v3703_v11 = vrot.slane %v3702_v21, 2  ;;  %v256_v47 = vrot.slane %v255_v6, 1 }
 0x6ed   :  { %v3670_v5 = vrot.slane %v3669_v14, 2 }
 0x6ee   :  { %v257_v49 = vadd.f32 %v256_v47, %v255_v6  ;;  %v3704_v4 = vadd.f32 %v3703_v11, %v3702_v21 }
 0x6ef   :  { %v3671_v52 = vadd.f32 %v3670_v5, %v3669_v14 }
 0x6f0   :  { %4349 = vpush %v257_v49  ;;  %v3705_v37 = vrot.slane %v3704_v4, 1 }
 0x6f1   :  { %v3672_v16 = vrot.slane %v3671_v52, 1 }
 0x6f2   :  { %v3706_v30 = vadd.f32 %v3705_v37, %v3704_v4 }
 0x6f3   :  { %v3673_v54 = vadd.f32 %v3672_v16, %v3671_v52 }
 0x6f5   :  { %4351 = vpush %v3673_v54 }
 0x6f6   :  { %4353 = vpush %v3706_v30 }
 0x721   :  { %s4350_s5 = spop %4349 }
 0x722   :  { %s259_s7 = smul.f32 0.00048828125, %s4350_s5 }
 0x724   :  { %v260_v36 = vstv %s259_s7 }
 0x725   :  { %262 = vst.msk [vmem:[#allocation5] sm:$0x1] %vm261_vm12, %v260_v36 }
 0x741   :  { %v3333_v33 = vpop.f32.mrb[16].mxu0 }
 0x742   :  { %v3335_v1 = vpop.f32.mrb[17].mxu0  ;;  %v3334_v39 = vadd.f32 %v3333_v33, %v7058_v55 }
 0x743   :  { %v3336_v7 = vadd.f32 %v3335_v1, %v7058_v55 }
 0x744   :  { %v3623_v18 = vmax.f32 %v3334_v39, 0.0 }
 0x745   :  { %v3339_v13 = vpop.f32.mrb[18].mxu0  ;;  %v3624_v53 = vmax.f32 %v3336_v7, 0.0 }
 0x746   :  { %v3341_v23 = vpop.f32.mrb[19].mxu0  ;;  %v3340_v27 = vadd.f32 %v3339_v13, %v7060_v56 }
 0x747   :  { %v3342_v26 = vadd.f32 %v3341_v23, %v7060_v56 }
 0x748   :  { %v3631_v45 = vmax.f32 %v3340_v27, 0.0 }
 0x749   :  { %v3345_v34 = vpop.f32.mrb[20].mxu0  ;;  %v3632_v8 = vmax.f32 %v3342_v26, 0.0 }
 0x74a   :  { %v3347_v31 = vpop.f32.mrb[21].mxu0  ;;  %v7076_v57 = vadd.f32 %v3345_v34, %v7062_v48 }
 0x74b   :  { %v7079_v29 = vadd.f32 %v3347_v31, %v7062_v48 }
 0x74c   :  { %v3639_v15 = vmax.f32 %v7076_v57, 0.0 }
 0x74d   :  { %v3351_v3 = vpop.f32.mrb[22].mxu0  ;;  %v3640_v32 = vmax.f32 %v7079_v29, 0.0 }
 0x74e   :  { %v3353_v44 = vpop.f32.mrb[23].mxu0  ;;  %v7082_v43 = vadd.f32 %v3351_v3, %v7064_v42 }
 0x74f   :  { %v7085_v22 = vadd.f32 %v3353_v44, %v7064_v42 }
 0x750   :  { %v3647_v19 = vmax.f32 %v7082_v43, 0.0 }
 0x751   :  { %v3648_v50 = vmax.f32 %v7085_v22, 0.0 }
 0x756   :  { %v3422_v0 = vpop.f32.mrb[16].mxu1 }
 0x757   :  { %v3424_v12 = vpop.f32.mrb[17].mxu1  ;;  %v3423_v46 = vadd.f32 %v3422_v0, %v7058_v55 }
 0x758   :  { %v3425_v35 = vadd.f32 %v3424_v12, %v7058_v55 }
 0x759   :  { %v3625_v25 = vmax.f32 %v3423_v46, 0.0 }
 0x75a   :  { %v3428_v62 = vpop.f32.mrb[18].mxu1  ;;  %v3626_v58 = vmax.f32 %v3425_v35, 0.0 }
 0x75b   :  { %v3430_v9 = vpop.f32.mrb[19].mxu1  ;;  %v3429_v2 = vadd.f32 %v3428_v62, %v7060_v56 }
 0x75c   :  { %v7091_v41 = vadd.f32 %v3430_v9, %v7060_v56 }
 0x75d   :  { %v3633_v38 = vmax.f32 %v3429_v2, 0.0 }
 0x75e   :  { %v3434_v28 = vpop.f32.mrb[20].mxu1  ;;  %v3634_v14 = vmax.f32 %v7091_v41, 0.0 }
 0x75f   :  { %v3436_v60 = vpop.f32.mrb[21].mxu1  ;;  %v7100_v61 = vadd.f32 %v3434_v28, %v7062_v48 }
 0x760   :  { %v7106_v52 = vadd.f32 %v3436_v60, %v7062_v48 }
 0x761   :  { %v3641_v54 = vmax.f32 %v7100_v61, 0.0 }
 0x762   :  { %v7067_v17 = vpop.f32.mrb[22].mxu1  ;;  %v3642_v27 = vmax.f32 %v7106_v52, 0.0 }
 0x763   :  { %v7069_v10 = vpop.f32.mrb[23].mxu1 }
 0x77c   :  { %v3511_v59 = vpop.f32.mrb[24].mxu0 }
 0x77d   :  { %v3512_v63 = vadd.f32 %v3511_v59, %v7058_v55  ;;  %v3513_v40 = vpop.f32.mrb[25].mxu0 }
 0x77e   :  { %v3514_v20 = vadd.f32 %v3513_v40, %v7058_v55 }
 0x77f   :  { %v3627_v51 = vmax.f32 %v3512_v63, 0.0  ;;  %v3600_v6 = vpop.f32.mrb[24].mxu1 }
 0x780   :  { %v3628_v24 = vmax.f32 %v3514_v20, 0.0  ;;  %v3517_v21 = vpop.f32.mrb[26].mxu0  ;;  %v3601_v5 = vadd.f32 %v3600_v6, %v7058_v55  ;;  %v3602_v4 = vpop.f32.mrb[25].mxu1 }
 0x781   :  { %v3710_v11 = vsub.f32 %v3623_v18, %v3627_v51  ;;  %v3518_v47 = vadd.f32 %v3517_v21, %v7060_v56  ;;  %v3519_v49 = vpop.f32.mrb[27].mxu0  ;;  %v3603_v30 = vadd.f32 %v3602_v4, %v7058_v55  ;;  %v3441_v18 = vadd.f32 %v7067_v17, %v7064_v42 }
 0x782   :  { %v3711_v37 = vsub.f32 %v3624_v53, %v3628_v24  ;;  %v3520_v16 = vadd.f32 %v3519_v49, %v7060_v56  ;;  %v3629_v1 = vmax.f32 %v3601_v5, 0.0  ;;  %v3443_v17 = vadd.f32 %v7069_v10, %v7064_v42 }
 0x783   :  { %v3726_v36 = vand.u32 2147483647, %v3710_v11  ;;  %v3635_v33 = vmax.f32 %v3518_v47, 0.0  ;;  %v3630_v34 = vmax.f32 %v3603_v30, 0.0  ;;  %v3606_v3 = vpop.f32.mrb[26].mxu1 }
 0x784   :  { %v3727_v13 = vand.u32 2147483647, %v3711_v37  ;;  %v3636_v23 = vmax.f32 %v3520_v16, 0.0  ;;  %v3523_v31 = vpop.f32.mrb[28].mxu0  ;;  %v3712_v0 = vsub.f32 %v3625_v25, %v3629_v1  ;;  %v3607_v62 = vadd.f32 %v3606_v3, %v7060_v56  ;;  %v3608_v28 = vpop.f32.mrb[27].mxu1 }
 0x785   :  { %v3714_v44 = vsub.f32 %v3631_v45, %v3635_v33  ;;  %v3524_v12 = vadd.f32 %v3523_v31, %v7062_v48  ;;  %v3525_v9 = vpop.f32.mrb[29].mxu0  ;;  %v3713_v39 = vsub.f32 %v3626_v58, %v3630_v34  ;;  %v3609_v2 = vadd.f32 %v3608_v28, %v7060_v56 }
 0x786   :  { %v3742_v60 = vadd.f32 %v3727_v13, %v3726_v36  ;;  %v3715_v55 = vsub.f32 %v3632_v8, %v3636_v23  ;;  %v3526_v7 = vadd.f32 %v3525_v9, %v7062_v48  ;;  %v3728_v26 = vand.u32 2147483647, %v3712_v0 }
 0x787   :  { %v3643_v57 = vmax.f32 %v3524_v12, 0.0  ;;  %v3637_v29 = vmax.f32 %v3607_v62, 0.0  ;;  %v3729_v46 = vand.u32 2147483647, %v3713_v39  ;;  %v3612_v40 = vpop.f32.mrb[28].mxu1  ;;  %v3638_v61 = vmax.f32 %v3609_v2, 0.0 }
 0x788   :  { %v3644_v35 = vmax.f32 %v3526_v7, 0.0  ;;  %v3529_v59 = vpop.f32.mrb[30].mxu0  ;;  %v3743_v53 = vadd.f32 %v3742_v60, %v3728_v26  ;;  %v3613_v51 = vadd.f32 %v3612_v40, %v7062_v48  ;;  %v3614_v58 = vpop.f32.mrb[29].mxu1  ;;  %v3730_v24 = vand.u32 2147483647, %v3714_v44 }
 0x789   :  { %v3718_v45 = vsub.f32 %v3639_v15, %v3643_v57  ;;  %v3716_v41 = vsub.f32 %v3633_v38, %v3637_v29  ;;  %v3530_v63 = vadd.f32 %v3529_v59, %v7064_v42  ;;  %v3531_v8 = vpop.f32.mrb[31].mxu0  ;;  %v3731_v6 = vand.u32 2147483647, %v3715_v55 }
 0x78a   :  { %v3719_v20 = vsub.f32 %v3640_v32, %v3644_v35  ;;  %v3532_v25 = vadd.f32 %v3531_v8, %v7064_v42  ;;  %v3744_v56 = vadd.f32 %v3743_v53, %v3729_v46  ;;  %v3717_v15 = vsub.f32 %v3634_v14, %v3638_v61 }
 0x78b   :  { %v3651_v21 = vmax.f32 %v3530_v63, 0.0  ;;  %v3645_v38 = vmax.f32 %v3613_v51, 0.0  ;;  %v3618_v47 = vpop.f32.mrb[30].mxu1  ;;  %v3615_v49 = vadd.f32 %v3614_v58, %v7062_v48  ;;  %v3649_v37 = vmax.f32 %v3441_v18, 0.0 }
 0x78c   :  { %v3652_v11 = vmax.f32 %v3532_v25, 0.0  ;;  %v3745_v5 = vadd.f32 %v3744_v56, %v3730_v24  ;;  %v3619_v4 = vadd.f32 %v3618_v47, %v7064_v42  ;;  %v3620_v52 = vpop.f32.mrb[31].mxu1  ;;  %v3732_v14 = vand.u32 2147483647, %v3716_v41 }
 0x78d   :  { %v3722_v32 = vsub.f32 %v3647_v19, %v3651_v21  ;;  %v3720_v16 = vsub.f32 %v3641_v54, %v3645_v38  ;;  %v3621_v30 = vadd.f32 %v3620_v52, %v7064_v42  ;;  %v3646_v33 = vmax.f32 %v3615_v49, 0.0 }
 0x78e   :  { %v3723_v10 = vsub.f32 %v3648_v50, %v3652_v11  ;;  %v3746_v36 = vadd.f32 %v3745_v5, %v3731_v6  ;;  %v3653_v1 = vmax.f32 %v3619_v4, 0.0  ;;  %v3650_v13 = vmax.f32 %v3443_v17, 0.0 }
 0x78f   :  { %v3654_v23 = vmax.f32 %v3621_v30, 0.0  ;;  %v3733_v19 = vand.u32 2147483647, %v3717_v15  ;;  %v3721_v34 = vsub.f32 %v3642_v27, %v3646_v33  ;;  %v3734_v3 = vand.u32 2147483647, %v3718_v45 }
 0x790   :  { %v3747_v43 = vadd.f32 %v3746_v36, %v3732_v14  ;;  %v3724_v48 = vsub.f32 %v3649_v37, %v3653_v1  ;;  %v3735_v0 = vand.u32 2147483647, %v3719_v20  ;;  %v3736_v12 = vand.u32 2147483647, %v3720_v16 }
 0x791   :  { %v3725_v31 = vsub.f32 %v3650_v13, %v3654_v23  ;;  %v3737_v62 = vand.u32 2147483647, %v3721_v34  ;;  %v3738_v42 = vand.u32 2147483647, %v3722_v32  ;;  %v3739_v28 = vand.u32 2147483647, %v3723_v10 }
 0x792   :  { %v3748_v44 = vadd.f32 %v3747_v43, %v3733_v19  ;;  %v3740_v55 = vand.u32 2147483647, %v3724_v48 }
 0x793   :  { %v3741_v26 = vand.u32 2147483647, %v3725_v31 }
 0x794   :  { %v3749_v54 = vadd.f32 %v3748_v44, %v3734_v3 }
 0x796   :  { %v3750_v22 = vadd.f32 %v3749_v54, %v3735_v0 }
 0x798   :  { %v3751_v50 = vadd.f32 %v3750_v22, %v3736_v12 }
 0x79a   :  { %v3752_v9 = vadd.f32 %v3751_v50, %v3737_v62 }
 0x79c   :  { %v3753_v60 = vadd.f32 %v3752_v9, %v3738_v42 }
 0x79e   :  { %v3754_v39 = vadd.f32 %v3753_v60, %v3739_v28 }
 0x7a0   :  { %v3755_v7 = vadd.f32 %v3754_v39, %v3740_v55 }
 0x7a2   :  { %v3756_v57 = vadd.f32 %v3755_v7, %v3741_v26 }
 0x7a4   :  { %3757 = vadd.xlane.f32.xlu0 %v3756_v57 }
 0x7a5   :  { %4420 = shalt.err (!%p4417_p12)
}
 0x7a6   :  { %s4421_s3 = scalar_lea.hbm %s7167_s12, 16 }
 0x7a7   :  { %p4422_p13 = scmp.ne.s32.totalorder %s7167_s12, %s4421_s3  ;;  %p4425_p0 = scmp.lt.u32.totalorder %s4421_s3, %s7167_s12 }
 0x7a9   :  { %p4427_p1 = pnand %p4425_p0, %p4422_p13 }
 0x7ab   :  { %4430 = shalt.err (!%p4427_p1)
}
 0x7ac   :  { %3779 = dma.vmem_to_hbm [thread:$0]  %s3777_s24, 16, %s7167_s12, [#allocation4]  }
 0x7ad   :  { %s4352_s6 = spop %4351  ;;  %s4473_s14 = smov [#allocation6]  }
 0x7ae   :  { %s4354_s8 = spop %4353  ;;  %s3675_s21 = smul.f32 0.00024414063, %s4352_s6 }
 0x7af   :  { %s3708_s2 = smul.f32 0.00012207031, %s4354_s8  ;;  %s3786_s17 = sshll.u32 %s4473_s14, 4  ;;  %s3787_s17 = int_to_ptr.vmem [resolvable:$true] %s3786_s17 }
 0x7b0   :  { %s4431_s12 = scalar_lea.vmem %s3787_s17, 16  ;;  %s4435_s19 = scalar_lea.vmem %s3787_s17, 32 }
 0x7b1   :  { %s3709_s10 = sadd.f32 %s3708_s2, %s3675_s21  ;;  %p4432_p2 = scmp.ne.s32.totalorder %s3787_s17, %s4431_s12 }
 0x7b2   :  { %p4436_p3 = scmp.lt.s32.totalorder %s3787_s17, %s3787_s17  ;;  %p4437_p4 = scmp.lt.s32.totalorder %s4435_s19, %s4431_s12 }
 0x7b4   :  { %p4438_p5 = por %p4437_p4, %p4436_p3 }
 0x7b6   :  { %p4439_p6 = pnand %p4438_p5, %p4432_p2 }
 0x831   :  { %v3758_v27 = vpop.xlane.xlu0 %3757 }
 0x832   :  { %v3759_v29 = vrot.slane %v3758_v27, 4 }
 0x834   :  { %v3760_v18 = vadd.f32 %v3759_v29, %v3758_v27 }
 0x836   :  { %v3761_v46 = vrot.slane %v3760_v18, 2 }
 0x838   :  { %v3762_v35 = vadd.f32 %v3761_v46, %v3760_v18 }
 0x83a   :  { %v3763_v2 = vrot.slane %v3762_v35, 1 }
 0x83c   :  { %v3764_v59 = vadd.f32 %v3763_v2, %v3762_v35 }
 0x83e   :  { %4355 = vpush %v3764_v59 }
 0x86f   :  { %s4356_s29 = spop %4355 }
 0x870   :  { %s3766_s30 = smul.f32 6.1035156e-05, %s4356_s29 }
 0x872   :  { %s3767_s18 = sadd.f32 %s3766_s30, %s3709_s10 }
 0x874   :  { %v3768_v53 = vstv %s3767_s18 }
 0x875   :  { %3769 = vst.msk [vmem:[#allocation6] sm:$0x1] %vm261_vm12, %v3768_v53 }
 0x876   :  { %4442 = shalt.err (!%p4439_p6)
}
 0x877   :  { %s4443_s22 = scalar_lea.hbm %s7168_s13, 16 }
 0x878   :  { %p4444_p7 = scmp.ne.s32.totalorder %s7168_s13, %s4443_s22  ;;  %p4447_p8 = scmp.lt.u32.totalorder %s4443_s22, %s7168_s13 }
 0x87a   :  { %p4449_p9 = pnand %p4447_p8, %p4444_p7 }
 0x87c   :  { %4452 = shalt.err (!%p4449_p9)
}
 0x87d   :  { %3789 = dma.vmem_to_hbm [thread:$0]  %s3787_s17, 16, %s7168_s13, [#allocation7]  }
 0x87e   :  { %4455 = dma.done.wait [#allocation4], 16  }
 0x87f   :  { %4456 = vsyncadd [#allocation4], 4294967280 }
 0x880   :  { %4457 = dma.done.wait [#allocation7], 16  }
 0x881   :  { %4458 = vsyncadd [#allocation7], 4294967280 }
 0x882   :  { %3796 = vsyncpa [#allocation3], 1 }
 0x883   :  { %3797 = vsyncpa [#allocation4], 1 }
 0x884   :  { %3798 = vsyncpa [#allocation7], 1 }

</bundles_post_ra>
